<compile_context>
chip_gen: v5e
topology: v5e:2x2
jax: 0.10.0
libtpu: 0.0.40
codegen_flags: <defaults>
</compile_context>

<pallas_src>
import math

import jax
import jax.numpy as jnp
from jax import lax
from jax.experimental import pallas as pl
from jax.experimental.pallas import tpu as pltpu

# ----------------------------- configuration --------------------------------
INPUT_DIM = 16
HIDDEN_DIM = 32
OUTPUT_DIM = 4
NUM_LAYERS = 2
NHEAD = 2                       # TransformerEncoderLayer(nhead=2)
HEAD_DIM = HIDDEN_DIM // NHEAD
FF_DIM = 2048                   # nn.TransformerEncoderLayer default dim_feedforward
LN_EPS = 1e-5
BN_EPS = 1e-5
PK_LANES = 4 * HIDDEN_DIM       # 128: lane width of the packed parameter slab
OUT_PAD = 128                   # fc2 output padded to a full lane row


def _vmem_spec():
    return pl.BlockSpec(memory_space=pltpu.MemorySpace.VMEM)


def _align8(n):
    return ((n + 7) // 8) * 8


def _pack_layout(input_dim, hidden_dim, num_layers):
    """Row layout (name -> (row_offset, rows)) of the packed (R,128) f32 slab."""
    segs = []
    for l in range(num_layers):
        din = input_dim if l == 0 else hidden_dim
        segs += [(f"w_ih{l}", din), (f"w_hh{l}", hidden_dim), (f"b{l}", 1)]
    segs += [("in_w", hidden_dim), ("in_b", 1),
             ("out_w", hidden_dim), ("out_b", 1),
             ("ln1_w", 1), ("ln1_b", 1), ("ln2_w", 1), ("ln2_b", 1),
             ("fc1_w", hidden_dim), ("fc1_b", 1),
             ("fc2_w", hidden_dim), ("fc2_b", 1),
             ("ff2_b", 1)]
    layout, off = {}, 0
    for name, rows in segs:
        layout[name] = (off, rows)
        off += _align8(rows)            # 8-aligned starts => tile-aligned slices
    return layout, off


# --------------------------- fully fused kernel ------------------------------
def make_fused_kernel(T, B, layout):
    H = HIDDEN_DIM
    hd = HEAD_DIM
    nl = NUM_LAYERS
    f32 = jnp.float32
    bf16 = jnp.bfloat16

    def kernel(x_ref, pk_ref, ffw_ref, ff1b_ref, o_ref):
        def seg(name):
            off, rows = layout[name]
            return pk_ref[off:off + rows, :]          # static, tile-aligned slice

        # ---- loop-invariant weight loads + bf16 pre-casts (once, outside t-loop)
        w_ih = [seg(f"w_ih{l}").astype(bf16) for l in range(nl)]   # (din,4H)/(H,4H)
        w_hh = [seg(f"w_hh{l}").astype(bf16) for l in range(nl)]   # (H,4H)
        bias = [seg(f"b{l}") for l in range(nl)]                   # (1,4H) f32

        # Hoisted layer-0 input projection over the whole sequence: one MXU call,
        # bf16 operands, f32 accumulation.  Rows are time-major (row = t*B + b).
        gates0 = jnp.dot(x_ref[...].astype(bf16), w_ih[0],
                         preferred_element_type=f32) + bias[0]     # (T*B, 4H)

        def cell(g, c):
            # full-vreg EUP pushes; 32-lane slices only for the recombine
            sg = jax.nn.sigmoid(g)                                 # (B, 4H) f32
            tg = jnp.tanh(g)
            i_g = sg[:, 0 * H:1 * H]
            f_g = sg[:, 1 * H:2 * H]
            g_g = tg[:, 2 * H:3 * H]
            o_g = sg[:, 3 * H:4 * H]
            c_new = f_g * c + i_g * g_g
            return o_g * jnp.tanh(c_new), c_new

        h = [jnp.zeros((B, H), f32) for _ in range(nl)]
        hb = [jnp.zeros((B, H), bf16) for _ in range(nl)]
        c = [jnp.zeros((B, H), f32) for _ in range(nl)]
        # Interleaved stacked recurrence: layer l's step t depends only on layer
        # l-1's step t and layer l's step t-1, so the fully-unrolled dataflow
        # exposes `nl` independent chains the LLO scheduler can overlap.
        for t in range(T):                                         # static unroll
            for l in range(nl):
                if l == 0:
                    g_in = gates0[t * B:(t + 1) * B, :]
                else:
                    g_in = jnp.dot(hb[l - 1], w_ih[l],
                                   preferred_element_type=f32) + bias[l]
                g = g_in + jnp.dot(hb[l], w_hh[l], preferred_element_type=f32)
                h[l], c[l] = cell(g, c[l])
                hb[l] = h[l].astype(bf16)
                # TODO(synk): nn.LSTM inter-layer dropout(0.5) omitted (eval-mode identity).
        x = h[nl - 1]                                              # lstm_out[:, -1, :]  (B, H)

        # --- TransformerEncoderLayer: 2-D input => attention over the batch axis ---
        # in_w is zero-padded (H,128): cols 3H..127 of qkv are exactly 0, unused.
        qkv = jnp.dot(x, seg("in_w"), preferred_element_type=f32) + seg("in_b")
        q, k, v = qkv[:, 0:H], qkv[:, H:2 * H], qkv[:, 2 * H:3 * H]
        out_w = seg("out_w")[:, :H]                                # (H, H)
        scale = 1.0 / math.sqrt(hd)
        attn = None
        for hh in range(NHEAD):
            sl = slice(hh * hd, (hh + 1) * hd)
            qh, kh, vh = q[:, sl], k[:, sl], v[:, sl]
            sc = lax.dot_general(qh, kh, (((1,), (1,)), ((), ())),
                                 preferred_element_type=f32) * scale   # (B, B)
            sc = sc - jnp.max(sc, axis=-1, keepdims=True)
            pr = jnp.exp(sc)
            pr = pr * pl.reciprocal(jnp.sum(pr, axis=-1, keepdims=True), approx=True)
            oh = jnp.dot(pr, vh, preferred_element_type=f32)           # (B, hd)
            # per-head output projection (== concat-then-project, no lane concat)
            ph = jnp.dot(oh, out_w[sl, :], preferred_element_type=f32)  # (B, H)
            attn = ph if attn is None else attn + ph
        attn = attn + seg("out_b")[:, :H]

        def layer_norm(z, w, b):
            mu = jnp.mean(z, axis=-1, keepdims=True)
            var = jnp.mean((z - mu) ** 2, axis=-1, keepdims=True)
            return (z - mu) * lax.rsqrt(var + LN_EPS) * w + b

        # post-norm encoder layer (eval mode: dropouts are identity)
        x = layer_norm(x + attn, seg("ln1_w")[:, :H], seg("ln1_b")[:, :H])

        # feed-forward: lane-dense bf16 weights, f32 accumulation
        ff1_w = ffw_ref[0:H, :]                       # (H, FF) bf16  (x @ W1^T form)
        ff2_w = ffw_ref[H:2 * H, :]                   # (H, FF) bf16  (PyTorch-native W2)
        ff = jnp.dot(x.astype(bf16), ff1_w,
                     preferred_element_type=f32) + ff1b_ref[...]
        ff = jnp.maximum(ff, 0.0)
        ff = lax.dot_general(ff.astype(bf16), ff2_w,             # "NT" contraction:
                             (((1,), (1,)), ((), ())),           # keeps W2 lane-dense
                             preferred_element_type=f32) + seg("ff2_b")[:, :H]
        x = layer_norm(x + ff, seg("ln2_w")[:, :H], seg("ln2_b")[:, :H])

        # BatchNorm1d (eval) is folded into fc1_w / fc1_b at pack time.
        y = jnp.maximum(
            jnp.dot(x, seg("fc1_w")[:, :H], preferred_element_type=f32)
            + seg("fc1_b")[:, :H], 0.0)
        # fc2 weight/bias are zero-padded to 128 lanes -> full unmasked store.
        o_ref[...] = (jnp.dot(y, seg("fc2_w"), preferred_element_type=f32)
                      + seg("fc2_b"))

    return kernel


# ------------------------------- full forward -------------------------------
def forward(packed, x):
    """x: (B, T, input_dim), batch_first like the PyTorch module."""
    B, T, D = x.shape
    assert D == INPUT_DIM, (D, INPUT_DIM)
    layout, _ = _pack_layout(INPUT_DIM, HIDDEN_DIM, NUM_LAYERS)
    # Time-major rows (row = t*B + b) so every recurrence step is a contiguous,
    # tile-aligned 8-row slice inside the kernel.  This 4 KiB transpose is the
    # only wrapper-side op; folding it into the kernel would trade a trivial
    # XLA copy for per-step sublane gathers.
    x2d = jnp.transpose(x, (1, 0, 2)).reshape(T * B, D).astype(jnp.float32)
    out = pl.pallas_call(
        make_fused_kernel(T, B, layout),
        out_shape=jax.ShapeDtypeStruct((B, OUT_PAD), jnp.float32),
        in_specs=[_vmem_spec()] * 4,
        out_specs=_vmem_spec(),
    )(x2d, packed["pk"], packed["ffw"], packed["ff1_b"])
    return out[:, :OUTPUT_DIM]


# ---------------------------- deterministic params ---------------------------
def init_params(key):
    """Raw parameters in PyTorch-native shapes."""
    keys = iter(jax.random.split(key, 64))

    def nrm(shape, scale=0.1):
        return scale * jax.random.normal(next(keys), shape, dtype=jnp.float32)

    p = {}
    lstm = []
    for l in range(NUM_LAYERS):
        din = INPUT_DIM if l == 0 else HIDDEN_DIM
        lstm.append(dict(w_ih=nrm((4 * HIDDEN_DIM, din)),        # PyTorch (4H, din)
                         w_hh=nrm((4 * HIDDEN_DIM, HIDDEN_DIM)),
                         b_ih=nrm((4 * HIDDEN_DIM,)),
                         b_hh=nrm((4 * HIDDEN_DIM,))))
    p["lstm"] = lstm
    p["in_w"] = nrm((3 * HIDDEN_DIM, HIDDEN_DIM))                # in_proj_weight
    p["in_b"] = nrm((3 * HIDDEN_DIM,))
    p["out_w"] = nrm((HIDDEN_DIM, HIDDEN_DIM))                   # out_proj.weight
    p["out_b"] = nrm((HIDDEN_DIM,))
    p["ln1_w"] = 1.0 + nrm((HIDDEN_DIM,)); p["ln1_b"] = nrm((HIDDEN_DIM,))
    p["ln2_w"] = 1.0 + nrm((HIDDEN_DIM,)); p["ln2_b"] = nrm((HIDDEN_DIM,))
    p["lin1_w"] = nrm((FF_DIM, HIDDEN_DIM)); p["lin1_b"] = nrm((FF_DIM,))
    p["lin2_w"] = nrm((HIDDEN_DIM, FF_DIM)); p["lin2_b"] = nrm((HIDDEN_DIM,))
    p["bn_g"] = 1.0 + nrm((HIDDEN_DIM,)); p["bn_b"] = nrm((HIDDEN_DIM,))
    p["bn_rm"] = nrm((HIDDEN_DIM,)); p["bn_rv"] = 0.5 + jnp.abs(nrm((HIDDEN_DIM,)))
    p["fc1_w"] = nrm((HIDDEN_DIM, HIDDEN_DIM)); p["fc1_b"] = nrm((HIDDEN_DIM,))
    p["fc2_w"] = nrm((OUTPUT_DIM, HIDDEN_DIM)); p["fc2_b"] = nrm((OUTPUT_DIM,))
    return p


def pack_params(p):
    """Fold eval-mode BatchNorm into fc1 and pack everything into 3 arrays:
       pk    : (R, 128)  f32  - LSTM weights/biases + all small head params
       ffw   : (2H, FF)  bf16 - lane-dense feed-forward weights
       ff1_b : (1, FF)   f32
    """
    layout, total_rows = _pack_layout(INPUT_DIM, HIDDEN_DIM, NUM_LAYERS)
    pk = jnp.zeros((total_rows, PK_LANES), jnp.float32)

    def put(buf, name, mat):
        mat = jnp.asarray(mat, jnp.float32)
        if mat.ndim == 1:
            mat = mat[None, :]
        off, _ = layout[name]
        r, ccols = mat.shape
        return buf.at[off:off + r, :ccols].set(mat)

    for l, lp in enumerate(p["lstm"]):
        pk = put(pk, f"w_ih{l}", lp["w_ih"].T)                    # (din, 4H)
        pk = put(pk, f"w_hh{l}", lp["w_hh"].T)                    # (H, 4H)
        pk = put(pk, f"b{l}", lp["b_ih"] + lp["b_hh"])

    pk = put(pk, "in_w", p["in_w"].T)                             # (H, 3H)
    pk = put(pk, "in_b", p["in_b"])
    pk = put(pk, "out_w", p["out_w"].T)                           # (H, H)
    pk = put(pk, "out_b", p["out_b"])
    pk = put(pk, "ln1_w", p["ln1_w"]); pk = put(pk, "ln1_b", p["ln1_b"])
    pk = put(pk, "ln2_w", p["ln2_w"]); pk = put(pk, "ln2_b", p["ln2_b"])

    # Eval-mode BatchNorm1d: y = x*s + t (per-channel affine), commuted into fc1.
    s = p["bn_g"] / jnp.sqrt(p["bn_rv"] + BN_EPS)
    t = p["bn_b"] - p["bn_rm"] * s
    w1 = p["fc1_w"].T                                             # (H_in, H_out), x @ W form
    pk = put(pk, "fc1_w", w1 * s[:, None])
    pk = put(pk, "fc1_b", p["fc1_b"] + t @ w1)
    pk = put(pk, "fc2_w", p["fc2_w"].T)                           # (H, OUT) -> zero-padded lanes
    pk = put(pk, "fc2_b", p["fc2_b"])
    pk = put(pk, "ff2_b", p["lin2_b"])

    ffw = jnp.concatenate([p["lin1_w"].T,                         # (H, FF): x @ W1^T
                           p["lin2_w"]], axis=0)                  # (H, FF): PyTorch-native W2
    return dict(pk=pk,
                ffw=ffw.astype(jnp.bfloat16),
                ff1_b=p["lin1_b"][None, :].astype(jnp.float32))


if __name__ == "__main__":
    key = jax.random.PRNGKey(0)
    pkey, xkey = jax.random.split(key)
    params = init_params(pkey)
    packed = pack_params(params)

    B, T = 8, 8
    x = jax.random.normal(xkey, (B, T, INPUT_DIM), dtype=jnp.float32)

    fwd = jax.jit(forward)
    out = jax.block_until_ready(fwd(packed, x))

    assert out.shape == (B, OUTPUT_DIM), out.shape
    assert bool(jnp.isfinite(out).all())
    print("KERNEL_OK")
</pallas_src>

<mosaic_0001>
module attributes {stable_mosaic.version = 11 : i64} {
  func.func @kernel(%arg0: memref<64x16xf32, #tpu.memory_space<vmem>>, %arg1: memref<328x128xf32, #tpu.memory_space<vmem>>, %arg2: memref<64x2048xbf16, #tpu.memory_space<vmem>>, %arg3: memref<1x2048xf32, #tpu.memory_space<vmem>>, %arg4: memref<8x128xf32, #tpu.memory_space<vmem>>) attributes {dimension_semantics = [], scalar_prefetch = 0 : i64, scratch_operands = 0 : i64, tpu.core_type = #tpu.core_type<tc>} {
    %c0 = arith.constant 0 : index
    %c0_0 = arith.constant 0 : index
    %0 = vector.load %arg1[%c0, %c0_0] : memref<328x128xf32, #tpu.memory_space<vmem>>, vector<16x128xf32>
    %1 = arith.truncf %0 : vector<16x128xf32> to vector<16x128xbf16>
    %c56 = arith.constant 56 : index
    %c0_1 = arith.constant 0 : index
    %2 = vector.load %arg1[%c56, %c0_1] : memref<328x128xf32, #tpu.memory_space<vmem>>, vector<32x128xf32>
    %3 = arith.truncf %2 : vector<32x128xf32> to vector<32x128xbf16>
    %c16 = arith.constant 16 : index
    %c0_2 = arith.constant 0 : index
    %4 = vector.load %arg1[%c16, %c0_2] : memref<328x128xf32, #tpu.memory_space<vmem>>, vector<32x128xf32>
    %5 = arith.truncf %4 : vector<32x128xf32> to vector<32x128xbf16>
    %c88 = arith.constant 88 : index
    %c0_3 = arith.constant 0 : index
    %6 = vector.load %arg1[%c88, %c0_3] : memref<328x128xf32, #tpu.memory_space<vmem>>, vector<32x128xf32>
    %7 = arith.truncf %6 : vector<32x128xf32> to vector<32x128xbf16>
    %c48 = arith.constant 48 : index
    %c0_4 = arith.constant 0 : index
    %8 = vector.load %arg1[%c48, %c0_4] : memref<328x128xf32, #tpu.memory_space<vmem>>, vector<1x128xf32>
    %c120 = arith.constant 120 : index
    %c0_5 = arith.constant 0 : index
    %9 = vector.load %arg1[%c120, %c0_5] : memref<328x128xf32, #tpu.memory_space<vmem>>, vector<1x128xf32>
    %c0_6 = arith.constant 0 : index
    %c0_7 = arith.constant 0 : index
    %10 = vector.load %arg0[%c0_6, %c0_7] : memref<64x16xf32, #tpu.memory_space<vmem>>, vector<64x16xf32>
    %11 = arith.truncf %10 : vector<64x16xf32> to vector<64x16xbf16>
    %cst = arith.constant dense<0.000000e+00> : vector<64x128xf32>
    %12 = tpu.matmul %11, %1, %cst {dimension_numbers = #tpu.dot_dimension_numbers<[1], [0], [0], [1], [0, 0, 1, 1], [], []>} : vector<64x16xbf16>, vector<16x128xbf16>, vector<64x128xf32> -> vector<64x128xf32>
    %13 = vector.broadcast %8 : vector<1x128xf32> to vector<64x128xf32>
    %14 = arith.addf %12, %13 : vector<64x128xf32>
    %cst_8 = arith.constant 0.000000e+00 : bf16
    %15 = vector.broadcast %cst_8 : bf16 to vector<8x32xbf16>
    %cst_9 = arith.constant 0.000000e+00 : bf16
    %16 = vector.broadcast %cst_9 : bf16 to vector<8x32xbf16>
    %cst_10 = arith.constant 0.000000e+00 : f32
    %17 = vector.broadcast %cst_10 : f32 to vector<8x32xf32>
    %cst_11 = arith.constant 0.000000e+00 : f32
    %18 = vector.broadcast %cst_11 : f32 to vector<8x32xf32>
    %19 = vector.extract_strided_slice %14 {offsets = [0, 0], sizes = [8, 128], strides = [1, 1]} : vector<64x128xf32> to vector<8x128xf32>
    %cst_12 = arith.constant dense<0.000000e+00> : vector<8x128xf32>
    %20 = tpu.matmul %15, %5, %cst_12 {dimension_numbers = #tpu.dot_dimension_numbers<[1], [0], [0], [1], [0, 0, 1, 1], [], []>} : vector<8x32xbf16>, vector<32x128xbf16>, vector<8x128xf32> -> vector<8x128xf32>
    %21 = arith.addf %19, %20 : vector<8x128xf32>
    %22 = arith.negf %21 : vector<8x128xf32>
    %23 = math.exp %22 : vector<8x128xf32>
    %cst_13 = arith.constant 1.000000e+00 : f32
    %24 = vector.broadcast %cst_13 : f32 to vector<8x128xf32>
    %25 = arith.addf %24, %23 : vector<8x128xf32>
    %26 = arith.divf %24, %25 : vector<8x128xf32>
    %27 = math.tanh %21 : vector<8x128xf32>
    %28 = vector.extract_strided_slice %26 {offsets = [0, 0], sizes = [8, 32], strides = [1, 1]} : vector<8x128xf32> to vector<8x32xf32>
    %29 = vector.extract_strided_slice %26 {offsets = [0, 32], sizes = [8, 32], strides = [1, 1]} : vector<8x128xf32> to vector<8x32xf32>
    %30 = vector.extract_strided_slice %27 {offsets = [0, 64], sizes = [8, 32], strides = [1, 1]} : vector<8x128xf32> to vector<8x32xf32>
    %31 = vector.extract_strided_slice %26 {offsets = [0, 96], sizes = [8, 32], strides = [1, 1]} : vector<8x128xf32> to vector<8x32xf32>
    %32 = arith.mulf %29, %17 : vector<8x32xf32>
    %33 = arith.mulf %28, %30 : vector<8x32xf32>
    %34 = arith.addf %32, %33 : vector<8x32xf32>
    %35 = math.tanh %34 : vector<8x32xf32>
    %36 = arith.mulf %31, %35 : vector<8x32xf32>
    %37 = arith.truncf %36 : vector<8x32xf32> to vector<8x32xbf16>
    %cst_14 = arith.constant dense<0.000000e+00> : vector<8x128xf32>
    %38 = tpu.matmul %37, %3, %cst_14 {dimension_numbers = #tpu.dot_dimension_numbers<[1], [0], [0], [1], [0, 0, 1, 1], [], []>} : vector<8x32xbf16>, vector<32x128xbf16>, vector<8x128xf32> -> vector<8x128xf32>
    %39 = vector.broadcast %9 : vector<1x128xf32> to vector<8x128xf32>
    %40 = arith.addf %38, %39 : vector<8x128xf32>
    %cst_15 = arith.constant dense<0.000000e+00> : vector<8x128xf32>
    %41 = tpu.matmul %16, %7, %cst_15 {dimension_numbers = #tpu.dot_dimension_numbers<[1], [0], [0], [1], [0, 0, 1, 1], [], []>} : vector<8x32xbf16>, vector<32x128xbf16>, vector<8x128xf32> -> vector<8x128xf32>
    %42 = arith.addf %40, %41 : vector<8x128xf32>
    %43 = arith.negf %42 : vector<8x128xf32>
    %44 = math.exp %43 : vector<8x128xf32>
    %cst_16 = arith.constant 1.000000e+00 : f32
    %45 = vector.broadcast %cst_16 : f32 to vector<8x128xf32>
    %46 = arith.addf %45, %44 : vector<8x128xf32>
    %47 = arith.divf %45, %46 : vector<8x128xf32>
    %48 = math.tanh %42 : vector<8x128xf32>
    %49 = vector.extract_strided_slice %47 {offsets = [0, 0], sizes = [8, 32], strides = [1, 1]} : vector<8x128xf32> to vector<8x32xf32>
    %50 = vector.extract_strided_slice %47 {offsets = [0, 32], sizes = [8, 32], strides = [1, 1]} : vector<8x128xf32> to vector<8x32xf32>
    %51 = vector.extract_strided_slice %48 {offsets = [0, 64], sizes = [8, 32], strides = [1, 1]} : vector<8x128xf32> to vector<8x32xf32>
    %52 = vector.extract_strided_slice %47 {offsets = [0, 96], sizes = [8, 32], strides = [1, 1]} : vector<8x128xf32> to vector<8x32xf32>
    %53 = arith.mulf %50, %18 : vector<8x32xf32>
    %54 = arith.mulf %49, %51 : vector<8x32xf32>
    %55 = arith.addf %53, %54 : vector<8x32xf32>
    %56 = math.tanh %55 : vector<8x32xf32>
    %57 = arith.mulf %52, %56 : vector<8x32xf32>
    %58 = arith.truncf %57 : vector<8x32xf32> to vector<8x32xbf16>
    %59 = vector.extract_strided_slice %14 {offsets = [8, 0], sizes = [8, 128], strides = [1, 1]} : vector<64x128xf32> to vector<8x128xf32>
    %cst_17 = arith.constant dense<0.000000e+00> : vector<8x128xf32>
    %60 = tpu.matmul %37, %5, %cst_17 {dimension_numbers = #tpu.dot_dimension_numbers<[1], [0], [0], [1], [0, 0, 1, 1], [], []>} : vector<8x32xbf16>, vector<32x128xbf16>, vector<8x128xf32> -> vector<8x128xf32>
    %61 = arith.addf %59, %60 : vector<8x128xf32>
    %62 = arith.negf %61 : vector<8x128xf32>
    %63 = math.exp %62 : vector<8x128xf32>
    %cst_18 = arith.constant 1.000000e+00 : f32
    %64 = vector.broadcast %cst_18 : f32 to vector<8x128xf32>
    %65 = arith.addf %64, %63 : vector<8x128xf32>
    %66 = arith.divf %64, %65 : vector<8x128xf32>
    %67 = math.tanh %61 : vector<8x128xf32>
    %68 = vector.extract_strided_slice %66 {offsets = [0, 0], sizes = [8, 32], strides = [1, 1]} : vector<8x128xf32> to vector<8x32xf32>
    %69 = vector.extract_strided_slice %66 {offsets = [0, 32], sizes = [8, 32], strides = [1, 1]} : vector<8x128xf32> to vector<8x32xf32>
    %70 = vector.extract_strided_slice %67 {offsets = [0, 64], sizes = [8, 32], strides = [1, 1]} : vector<8x128xf32> to vector<8x32xf32>
    %71 = vector.extract_strided_slice %66 {offsets = [0, 96], sizes = [8, 32], strides = [1, 1]} : vector<8x128xf32> to vector<8x32xf32>
    %72 = arith.mulf %69, %34 : vector<8x32xf32>
    %73 = arith.mulf %68, %70 : vector<8x32xf32>
    %74 = arith.addf %72, %73 : vector<8x32xf32>
    %75 = math.tanh %74 : vector<8x32xf32>
    %76 = arith.mulf %71, %75 : vector<8x32xf32>
    %77 = arith.truncf %76 : vector<8x32xf32> to vector<8x32xbf16>
    %cst_19 = arith.constant dense<0.000000e+00> : vector<8x128xf32>
    %78 = tpu.matmul %77, %3, %cst_19 {dimension_numbers = #tpu.dot_dimension_numbers<[1], [0], [0], [1], [0, 0, 1, 1], [], []>} : vector<8x32xbf16>, vector<32x128xbf16>, vector<8x128xf32> -> vector<8x128xf32>
    %79 = vector.broadcast %9 : vector<1x128xf32> to vector<8x128xf32>
    %80 = arith.addf %78, %79 : vector<8x128xf32>
    %cst_20 = arith.constant dense<0.000000e+00> : vector<8x128xf32>
    %81 = tpu.matmul %58, %7, %cst_20 {dimension_numbers = #tpu.dot_dimension_numbers<[1], [0], [0], [1], [0, 0, 1, 1], [], []>} : vector<8x32xbf16>, vector<32x128xbf16>, vector<8x128xf32> -> vector<8x128xf32>
    %82 = arith.addf %80, %81 : vector<8x128xf32>
    %83 = arith.negf %82 : vector<8x128xf32>
    %84 = math.exp %83 : vector<8x128xf32>
    %cst_21 = arith.constant 1.000000e+00 : f32
    %85 = vector.broadcast %cst_21 : f32 to vector<8x128xf32>
    %86 = arith.addf %85, %84 : vector<8x128xf32>
    %87 = arith.divf %85, %86 : vector<8x128xf32>
    %88 = math.tanh %82 : vector<8x128xf32>
    %89 = vector.extract_strided_slice %87 {offsets = [0, 0], sizes = [8, 32], strides = [1, 1]} : vector<8x128xf32> to vector<8x32xf32>
    %90 = vector.extract_strided_slice %87 {offsets = [0, 32], sizes = [8, 32], strides = [1, 1]} : vector<8x128xf32> to vector<8x32xf32>
    %91 = vector.extract_strided_slice %88 {offsets = [0, 64], sizes = [8, 32], strides = [1, 1]} : vector<8x128xf32> to vector<8x32xf32>
    %92 = vector.extract_strided_slice %87 {offsets = [0, 96], sizes = [8, 32], strides = [1, 1]} : vector<8x128xf32> to vector<8x32xf32>
    %93 = arith.mulf %90, %55 : vector<8x32xf32>
    %94 = arith.mulf %89, %91 : vector<8x32xf32>
    %95 = arith.addf %93, %94 : vector<8x32xf32>
    %96 = math.tanh %95 : vector<8x32xf32>
    %97 = arith.mulf %92, %96 : vector<8x32xf32>
    %98 = arith.truncf %97 : vector<8x32xf32> to vector<8x32xbf16>
    %99 = vector.extract_strided_slice %14 {offsets = [16, 0], sizes = [8, 128], strides = [1, 1]} : vector<64x128xf32> to vector<8x128xf32>
    %cst_22 = arith.constant dense<0.000000e+00> : vector<8x128xf32>
    %100 = tpu.matmul %77, %5, %cst_22 {dimension_numbers = #tpu.dot_dimension_numbers<[1], [0], [0], [1], [0, 0, 1, 1], [], []>} : vector<8x32xbf16>, vector<32x128xbf16>, vector<8x128xf32> -> vector<8x128xf32>
    %101 = arith.addf %99, %100 : vector<8x128xf32>
    %102 = arith.negf %101 : vector<8x128xf32>
    %103 = math.exp %102 : vector<8x128xf32>
    %cst_23 = arith.constant 1.000000e+00 : f32
    %104 = vector.broadcast %cst_23 : f32 to vector<8x128xf32>
    %105 = arith.addf %104, %103 : vector<8x128xf32>
    %106 = arith.divf %104, %105 : vector<8x128xf32>
    %107 = math.tanh %101 : vector<8x128xf32>
    %108 = vector.extract_strided_slice %106 {offsets = [0, 0], sizes = [8, 32], strides = [1, 1]} : vector<8x128xf32> to vector<8x32xf32>
    %109 = vector.extract_strided_slice %106 {offsets = [0, 32], sizes = [8, 32], strides = [1, 1]} : vector<8x128xf32> to vector<8x32xf32>
    %110 = vector.extract_strided_slice %107 {offsets = [0, 64], sizes = [8, 32], strides = [1, 1]} : vector<8x128xf32> to vector<8x32xf32>
    %111 = vector.extract_strided_slice %106 {offsets = [0, 96], sizes = [8, 32], strides = [1, 1]} : vector<8x128xf32> to vector<8x32xf32>
    %112 = arith.mulf %109, %74 : vector<8x32xf32>
    %113 = arith.mulf %108, %110 : vector<8x32xf32>
    %114 = arith.addf %112, %113 : vector<8x32xf32>
    %115 = math.tanh %114 : vector<8x32xf32>
    %116 = arith.mulf %111, %115 : vector<8x32xf32>
    %117 = arith.truncf %116 : vector<8x32xf32> to vector<8x32xbf16>
    %cst_24 = arith.constant dense<0.000000e+00> : vector<8x128xf32>
    %118 = tpu.matmul %117, %3, %cst_24 {dimension_numbers = #tpu.dot_dimension_numbers<[1], [0], [0], [1], [0, 0, 1, 1], [], []>} : vector<8x32xbf16>, vector<32x128xbf16>, vector<8x128xf32> -> vector<8x128xf32>
    %119 = vector.broadcast %9 : vector<1x128xf32> to vector<8x128xf32>
    %120 = arith.addf %118, %119 : vector<8x128xf32>
    %cst_25 = arith.constant dense<0.000000e+00> : vector<8x128xf32>
    %121 = tpu.matmul %98, %7, %cst_25 {dimension_numbers = #tpu.dot_dimension_numbers<[1], [0], [0], [1], [0, 0, 1, 1], [], []>} : vector<8x32xbf16>, vector<32x128xbf16>, vector<8x128xf32> -> vector<8x128xf32>
    %122 = arith.addf %120, %121 : vector<8x128xf32>
    %123 = arith.negf %122 : vector<8x128xf32>
    %124 = math.exp %123 : vector<8x128xf32>
    %cst_26 = arith.constant 1.000000e+00 : f32
    %125 = vector.broadcast %cst_26 : f32 to vector<8x128xf32>
    %126 = arith.addf %125, %124 : vector<8x128xf32>
    %127 = arith.divf %125, %126 : vector<8x128xf32>
    %128 = math.tanh %122 : vector<8x128xf32>
    %129 = vector.extract_strided_slice %127 {offsets = [0, 0], sizes = [8, 32], strides = [1, 1]} : vector<8x128xf32> to vector<8x32xf32>
    %130 = vector.extract_strided_slice %127 {offsets = [0, 32], sizes = [8, 32], strides = [1, 1]} : vector<8x128xf32> to vector<8x32xf32>
    %131 = vector.extract_strided_slice %128 {offsets = [0, 64], sizes = [8, 32], strides = [1, 1]} : vector<8x128xf32> to vector<8x32xf32>
    %132 = vector.extract_strided_slice %127 {offsets = [0, 96], sizes = [8, 32], strides = [1, 1]} : vector<8x128xf32> to vector<8x32xf32>
    %133 = arith.mulf %130, %95 : vector<8x32xf32>
    %134 = arith.mulf %129, %131 : vector<8x32xf32>
    %135 = arith.addf %133, %134 : vector<8x32xf32>
    %136 = math.tanh %135 : vector<8x32xf32>
    %137 = arith.mulf %132, %136 : vector<8x32xf32>
    %138 = arith.truncf %137 : vector<8x32xf32> to vector<8x32xbf16>
    %139 = vector.extract_strided_slice %14 {offsets = [24, 0], sizes = [8, 128], strides = [1, 1]} : vector<64x128xf32> to vector<8x128xf32>
    %cst_27 = arith.constant dense<0.000000e+00> : vector<8x128xf32>
    %140 = tpu.matmul %117, %5, %cst_27 {dimension_numbers = #tpu.dot_dimension_numbers<[1], [0], [0], [1], [0, 0, 1, 1], [], []>} : vector<8x32xbf16>, vector<32x128xbf16>, vector<8x128xf32> -> vector<8x128xf32>
    %141 = arith.addf %139, %140 : vector<8x128xf32>
    %142 = arith.negf %141 : vector<8x128xf32>
    %143 = math.exp %142 : vector<8x128xf32>
    %cst_28 = arith.constant 1.000000e+00 : f32
    %144 = vector.broadcast %cst_28 : f32 to vector<8x128xf32>
    %145 = arith.addf %144, %143 : vector<8x128xf32>
    %146 = arith.divf %144, %145 : vector<8x128xf32>
    %147 = math.tanh %141 : vector<8x128xf32>
    %148 = vector.extract_strided_slice %146 {offsets = [0, 0], sizes = [8, 32], strides = [1, 1]} : vector<8x128xf32> to vector<8x32xf32>
    %149 = vector.extract_strided_slice %146 {offsets = [0, 32], sizes = [8, 32], strides = [1, 1]} : vector<8x128xf32> to vector<8x32xf32>
    %150 = vector.extract_strided_slice %147 {offsets = [0, 64], sizes = [8, 32], strides = [1, 1]} : vector<8x128xf32> to vector<8x32xf32>
    %151 = vector.extract_strided_slice %146 {offsets = [0, 96], sizes = [8, 32], strides = [1, 1]} : vector<8x128xf32> to vector<8x32xf32>
    %152 = arith.mulf %149, %114 : vector<8x32xf32>
    %153 = arith.mulf %148, %150 : vector<8x32xf32>
    %154 = arith.addf %152, %153 : vector<8x32xf32>
    %155 = math.tanh %154 : vector<8x32xf32>
    %156 = arith.mulf %151, %155 : vector<8x32xf32>
    %157 = arith.truncf %156 : vector<8x32xf32> to vector<8x32xbf16>
    %cst_29 = arith.constant dense<0.000000e+00> : vector<8x128xf32>
    %158 = tpu.matmul %157, %3, %cst_29 {dimension_numbers = #tpu.dot_dimension_numbers<[1], [0], [0], [1], [0, 0, 1, 1], [], []>} : vector<8x32xbf16>, vector<32x128xbf16>, vector<8x128xf32> -> vector<8x128xf32>
    %159 = vector.broadcast %9 : vector<1x128xf32> to vector<8x128xf32>
    %160 = arith.addf %158, %159 : vector<8x128xf32>
    %cst_30 = arith.constant dense<0.000000e+00> : vector<8x128xf32>
    %161 = tpu.matmul %138, %7, %cst_30 {dimension_numbers = #tpu.dot_dimension_numbers<[1], [0], [0], [1], [0, 0, 1, 1], [], []>} : vector<8x32xbf16>, vector<32x128xbf16>, vector<8x128xf32> -> vector<8x128xf32>
    %162 = arith.addf %160, %161 : vector<8x128xf32>
    %163 = arith.negf %162 : vector<8x128xf32>
    %164 = math.exp %163 : vector<8x128xf32>
    %cst_31 = arith.constant 1.000000e+00 : f32
    %165 = vector.broadcast %cst_31 : f32 to vector<8x128xf32>
    %166 = arith.addf %165, %164 : vector<8x128xf32>
    %167 = arith.divf %165, %166 : vector<8x128xf32>
    %168 = math.tanh %162 : vector<8x128xf32>
    %169 = vector.extract_strided_slice %167 {offsets = [0, 0], sizes = [8, 32], strides = [1, 1]} : vector<8x128xf32> to vector<8x32xf32>
    %170 = vector.extract_strided_slice %167 {offsets = [0, 32], sizes = [8, 32], strides = [1, 1]} : vector<8x128xf32> to vector<8x32xf32>
    %171 = vector.extract_strided_slice %168 {offsets = [0, 64], sizes = [8, 32], strides = [1, 1]} : vector<8x128xf32> to vector<8x32xf32>
    %172 = vector.extract_strided_slice %167 {offsets = [0, 96], sizes = [8, 32], strides = [1, 1]} : vector<8x128xf32> to vector<8x32xf32>
    %173 = arith.mulf %170, %135 : vector<8x32xf32>
    %174 = arith.mulf %169, %171 : vector<8x32xf32>
    %175 = arith.addf %173, %174 : vector<8x32xf32>
    %176 = math.tanh %175 : vector<8x32xf32>
    %177 = arith.mulf %172, %176 : vector<8x32xf32>
    %178 = arith.truncf %177 : vector<8x32xf32> to vector<8x32xbf16>
    %179 = vector.extract_strided_slice %14 {offsets = [32, 0], sizes = [8, 128], strides = [1, 1]} : vector<64x128xf32> to vector<8x128xf32>
    %cst_32 = arith.constant dense<0.000000e+00> : vector<8x128xf32>
    %180 = tpu.matmul %157, %5, %cst_32 {dimension_numbers = #tpu.dot_dimension_numbers<[1], [0], [0], [1], [0, 0, 1, 1], [], []>} : vector<8x32xbf16>, vector<32x128xbf16>, vector<8x128xf32> -> vector<8x128xf32>
    %181 = arith.addf %179, %180 : vector<8x128xf32>
    %182 = arith.negf %181 : vector<8x128xf32>
    %183 = math.exp %182 : vector<8x128xf32>
    %cst_33 = arith.constant 1.000000e+00 : f32
    %184 = vector.broadcast %cst_33 : f32 to vector<8x128xf32>
    %185 = arith.addf %184, %183 : vector<8x128xf32>
    %186 = arith.divf %184, %185 : vector<8x128xf32>
    %187 = math.tanh %181 : vector<8x128xf32>
    %188 = vector.extract_strided_slice %186 {offsets = [0, 0], sizes = [8, 32], strides = [1, 1]} : vector<8x128xf32> to vector<8x32xf32>
    %189 = vector.extract_strided_slice %186 {offsets = [0, 32], sizes = [8, 32], strides = [1, 1]} : vector<8x128xf32> to vector<8x32xf32>
    %190 = vector.extract_strided_slice %187 {offsets = [0, 64], sizes = [8, 32], strides = [1, 1]} : vector<8x128xf32> to vector<8x32xf32>
    %191 = vector.extract_strided_slice %186 {offsets = [0, 96], sizes = [8, 32], strides = [1, 1]} : vector<8x128xf32> to vector<8x32xf32>
    %192 = arith.mulf %189, %154 : vector<8x32xf32>
    %193 = arith.mulf %188, %190 : vector<8x32xf32>
    %194 = arith.addf %192, %193 : vector<8x32xf32>
    %195 = math.tanh %194 : vector<8x32xf32>
    %196 = arith.mulf %191, %195 : vector<8x32xf32>
    %197 = arith.truncf %196 : vector<8x32xf32> to vector<8x32xbf16>
    %cst_34 = arith.constant dense<0.000000e+00> : vector<8x128xf32>
    %198 = tpu.matmul %197, %3, %cst_34 {dimension_numbers = #tpu.dot_dimension_numbers<[1], [0], [0], [1], [0, 0, 1, 1], [], []>} : vector<8x32xbf16>, vector<32x128xbf16>, vector<8x128xf32> -> vector<8x128xf32>
    %199 = vector.broadcast %9 : vector<1x128xf32> to vector<8x128xf32>
    %200 = arith.addf %198, %199 : vector<8x128xf32>
    %cst_35 = arith.constant dense<0.000000e+00> : vector<8x128xf32>
    %201 = tpu.matmul %178, %7, %cst_35 {dimension_numbers = #tpu.dot_dimension_numbers<[1], [0], [0], [1], [0, 0, 1, 1], [], []>} : vector<8x32xbf16>, vector<32x128xbf16>, vector<8x128xf32> -> vector<8x128xf32>
    %202 = arith.addf %200, %201 : vector<8x128xf32>
    %203 = arith.negf %202 : vector<8x128xf32>
    %204 = math.exp %203 : vector<8x128xf32>
    %cst_36 = arith.constant 1.000000e+00 : f32
    %205 = vector.broadcast %cst_36 : f32 to vector<8x128xf32>
    %206 = arith.addf %205, %204 : vector<8x128xf32>
    %207 = arith.divf %205, %206 : vector<8x128xf32>
    %208 = math.tanh %202 : vector<8x128xf32>
    %209 = vector.extract_strided_slice %207 {offsets = [0, 0], sizes = [8, 32], strides = [1, 1]} : vector<8x128xf32> to vector<8x32xf32>
    %210 = vector.extract_strided_slice %207 {offsets = [0, 32], sizes = [8, 32], strides = [1, 1]} : vector<8x128xf32> to vector<8x32xf32>
    %211 = vector.extract_strided_slice %208 {offsets = [0, 64], sizes = [8, 32], strides = [1, 1]} : vector<8x128xf32> to vector<8x32xf32>
    %212 = vector.extract_strided_slice %207 {offsets = [0, 96], sizes = [8, 32], strides = [1, 1]} : vector<8x128xf32> to vector<8x32xf32>
    %213 = arith.mulf %210, %175 : vector<8x32xf32>
    %214 = arith.mulf %209, %211 : vector<8x32xf32>
    %215 = arith.addf %213, %214 : vector<8x32xf32>
    %216 = math.tanh %215 : vector<8x32xf32>
    %217 = arith.mulf %212, %216 : vector<8x32xf32>
    %218 = arith.truncf %217 : vector<8x32xf32> to vector<8x32xbf16>
    %219 = vector.extract_strided_slice %14 {offsets = [40, 0], sizes = [8, 128], strides = [1, 1]} : vector<64x128xf32> to vector<8x128xf32>
    %cst_37 = arith.constant dense<0.000000e+00> : vector<8x128xf32>
    %220 = tpu.matmul %197, %5, %cst_37 {dimension_numbers = #tpu.dot_dimension_numbers<[1], [0], [0], [1], [0, 0, 1, 1], [], []>} : vector<8x32xbf16>, vector<32x128xbf16>, vector<8x128xf32> -> vector<8x128xf32>
    %221 = arith.addf %219, %220 : vector<8x128xf32>
    %222 = arith.negf %221 : vector<8x128xf32>
    %223 = math.exp %222 : vector<8x128xf32>
    %cst_38 = arith.constant 1.000000e+00 : f32
    %224 = vector.broadcast %cst_38 : f32 to vector<8x128xf32>
    %225 = arith.addf %224, %223 : vector<8x128xf32>
    %226 = arith.divf %224, %225 : vector<8x128xf32>
    %227 = math.tanh %221 : vector<8x128xf32>
    %228 = vector.extract_strided_slice %226 {offsets = [0, 0], sizes = [8, 32], strides = [1, 1]} : vector<8x128xf32> to vector<8x32xf32>
    %229 = vector.extract_strided_slice %226 {offsets = [0, 32], sizes = [8, 32], strides = [1, 1]} : vector<8x128xf32> to vector<8x32xf32>
    %230 = vector.extract_strided_slice %227 {offsets = [0, 64], sizes = [8, 32], strides = [1, 1]} : vector<8x128xf32> to vector<8x32xf32>
    %231 = vector.extract_strided_slice %226 {offsets = [0, 96], sizes = [8, 32], strides = [1, 1]} : vector<8x128xf32> to vector<8x32xf32>
    %232 = arith.mulf %229, %194 : vector<8x32xf32>
    %233 = arith.mulf %228, %230 : vector<8x32xf32>
    %234 = arith.addf %232, %233 : vector<8x32xf32>
    %235 = math.tanh %234 : vector<8x32xf32>
    %236 = arith.mulf %231, %235 : vector<8x32xf32>
    %237 = arith.truncf %236 : vector<8x32xf32> to vector<8x32xbf16>
    %cst_39 = arith.constant dense<0.000000e+00> : vector<8x128xf32>
    %238 = tpu.matmul %237, %3, %cst_39 {dimension_numbers = #tpu.dot_dimension_numbers<[1], [0], [0], [1], [0, 0, 1, 1], [], []>} : vector<8x32xbf16>, vector<32x128xbf16>, vector<8x128xf32> -> vector<8x128xf32>
    %239 = vector.broadcast %9 : vector<1x128xf32> to vector<8x128xf32>
    %240 = arith.addf %238, %239 : vector<8x128xf32>
    %cst_40 = arith.constant dense<0.000000e+00> : vector<8x128xf32>
    %241 = tpu.matmul %218, %7, %cst_40 {dimension_numbers = #tpu.dot_dimension_numbers<[1], [0], [0], [1], [0, 0, 1, 1], [], []>} : vector<8x32xbf16>, vector<32x128xbf16>, vector<8x128xf32> -> vector<8x128xf32>
    %242 = arith.addf %240, %241 : vector<8x128xf32>
    %243 = arith.negf %242 : vector<8x128xf32>
    %244 = math.exp %243 : vector<8x128xf32>
    %cst_41 = arith.constant 1.000000e+00 : f32
    %245 = vector.broadcast %cst_41 : f32 to vector<8x128xf32>
    %246 = arith.addf %245, %244 : vector<8x128xf32>
    %247 = arith.divf %245, %246 : vector<8x128xf32>
    %248 = math.tanh %242 : vector<8x128xf32>
    %249 = vector.extract_strided_slice %247 {offsets = [0, 0], sizes = [8, 32], strides = [1, 1]} : vector<8x128xf32> to vector<8x32xf32>
    %250 = vector.extract_strided_slice %247 {offsets = [0, 32], sizes = [8, 32], strides = [1, 1]} : vector<8x128xf32> to vector<8x32xf32>
    %251 = vector.extract_strided_slice %248 {offsets = [0, 64], sizes = [8, 32], strides = [1, 1]} : vector<8x128xf32> to vector<8x32xf32>
    %252 = vector.extract_strided_slice %247 {offsets = [0, 96], sizes = [8, 32], strides = [1, 1]} : vector<8x128xf32> to vector<8x32xf32>
    %253 = arith.mulf %250, %215 : vector<8x32xf32>
    %254 = arith.mulf %249, %251 : vector<8x32xf32>
    %255 = arith.addf %253, %254 : vector<8x32xf32>
    %256 = math.tanh %255 : vector<8x32xf32>
    %257 = arith.mulf %252, %256 : vector<8x32xf32>
    %258 = arith.truncf %257 : vector<8x32xf32> to vector<8x32xbf16>
    %259 = vector.extract_strided_slice %14 {offsets = [48, 0], sizes = [8, 128], strides = [1, 1]} : vector<64x128xf32> to vector<8x128xf32>
    %cst_42 = arith.constant dense<0.000000e+00> : vector<8x128xf32>
    %260 = tpu.matmul %237, %5, %cst_42 {dimension_numbers = #tpu.dot_dimension_numbers<[1], [0], [0], [1], [0, 0, 1, 1], [], []>} : vector<8x32xbf16>, vector<32x128xbf16>, vector<8x128xf32> -> vector<8x128xf32>
    %261 = arith.addf %259, %260 : vector<8x128xf32>
    %262 = arith.negf %261 : vector<8x128xf32>
    %263 = math.exp %262 : vector<8x128xf32>
    %cst_43 = arith.constant 1.000000e+00 : f32
    %264 = vector.broadcast %cst_43 : f32 to vector<8x128xf32>
    %265 = arith.addf %264, %263 : vector<8x128xf32>
    %266 = arith.divf %264, %265 : vector<8x128xf32>
    %267 = math.tanh %261 : vector<8x128xf32>
    %268 = vector.extract_strided_slice %266 {offsets = [0, 0], sizes = [8, 32], strides = [1, 1]} : vector<8x128xf32> to vector<8x32xf32>
    %269 = vector.extract_strided_slice %266 {offsets = [0, 32], sizes = [8, 32], strides = [1, 1]} : vector<8x128xf32> to vector<8x32xf32>
    %270 = vector.extract_strided_slice %267 {offsets = [0, 64], sizes = [8, 32], strides = [1, 1]} : vector<8x128xf32> to vector<8x32xf32>
    %271 = vector.extract_strided_slice %266 {offsets = [0, 96], sizes = [8, 32], strides = [1, 1]} : vector<8x128xf32> to vector<8x32xf32>
    %272 = arith.mulf %269, %234 : vector<8x32xf32>
    %273 = arith.mulf %268, %270 : vector<8x32xf32>
    %274 = arith.addf %272, %273 : vector<8x32xf32>
    %275 = math.tanh %274 : vector<8x32xf32>
    %276 = arith.mulf %271, %275 : vector<8x32xf32>
    %277 = arith.truncf %276 : vector<8x32xf32> to vector<8x32xbf16>
    %cst_44 = arith.constant dense<0.000000e+00> : vector<8x128xf32>
    %278 = tpu.matmul %277, %3, %cst_44 {dimension_numbers = #tpu.dot_dimension_numbers<[1], [0], [0], [1], [0, 0, 1, 1], [], []>} : vector<8x32xbf16>, vector<32x128xbf16>, vector<8x128xf32> -> vector<8x128xf32>
    %279 = vector.broadcast %9 : vector<1x128xf32> to vector<8x128xf32>
    %280 = arith.addf %278, %279 : vector<8x128xf32>
    %cst_45 = arith.constant dense<0.000000e+00> : vector<8x128xf32>
    %281 = tpu.matmul %258, %7, %cst_45 {dimension_numbers = #tpu.dot_dimension_numbers<[1], [0], [0], [1], [0, 0, 1, 1], [], []>} : vector<8x32xbf16>, vector<32x128xbf16>, vector<8x128xf32> -> vector<8x128xf32>
    %282 = arith.addf %280, %281 : vector<8x128xf32>
    %283 = arith.negf %282 : vector<8x128xf32>
    %284 = math.exp %283 : vector<8x128xf32>
    %cst_46 = arith.constant 1.000000e+00 : f32
    %285 = vector.broadcast %cst_46 : f32 to vector<8x128xf32>
    %286 = arith.addf %285, %284 : vector<8x128xf32>
    %287 = arith.divf %285, %286 : vector<8x128xf32>
    %288 = math.tanh %282 : vector<8x128xf32>
    %289 = vector.extract_strided_slice %287 {offsets = [0, 0], sizes = [8, 32], strides = [1, 1]} : vector<8x128xf32> to vector<8x32xf32>
    %290 = vector.extract_strided_slice %287 {offsets = [0, 32], sizes = [8, 32], strides = [1, 1]} : vector<8x128xf32> to vector<8x32xf32>
    %291 = vector.extract_strided_slice %288 {offsets = [0, 64], sizes = [8, 32], strides = [1, 1]} : vector<8x128xf32> to vector<8x32xf32>
    %292 = vector.extract_strided_slice %287 {offsets = [0, 96], sizes = [8, 32], strides = [1, 1]} : vector<8x128xf32> to vector<8x32xf32>
    %293 = arith.mulf %290, %255 : vector<8x32xf32>
    %294 = arith.mulf %289, %291 : vector<8x32xf32>
    %295 = arith.addf %293, %294 : vector<8x32xf32>
    %296 = math.tanh %295 : vector<8x32xf32>
    %297 = arith.mulf %292, %296 : vector<8x32xf32>
    %298 = arith.truncf %297 : vector<8x32xf32> to vector<8x32xbf16>
    %299 = vector.extract_strided_slice %14 {offsets = [56, 0], sizes = [8, 128], strides = [1, 1]} : vector<64x128xf32> to vector<8x128xf32>
    %cst_47 = arith.constant dense<0.000000e+00> : vector<8x128xf32>
    %300 = tpu.matmul %277, %5, %cst_47 {dimension_numbers = #tpu.dot_dimension_numbers<[1], [0], [0], [1], [0, 0, 1, 1], [], []>} : vector<8x32xbf16>, vector<32x128xbf16>, vector<8x128xf32> -> vector<8x128xf32>
    %301 = arith.addf %299, %300 : vector<8x128xf32>
    %302 = arith.negf %301 : vector<8x128xf32>
    %303 = math.exp %302 : vector<8x128xf32>
    %cst_48 = arith.constant 1.000000e+00 : f32
    %304 = vector.broadcast %cst_48 : f32 to vector<8x128xf32>
    %305 = arith.addf %304, %303 : vector<8x128xf32>
    %306 = arith.divf %304, %305 : vector<8x128xf32>
    %307 = math.tanh %301 : vector<8x128xf32>
    %308 = vector.extract_strided_slice %306 {offsets = [0, 0], sizes = [8, 32], strides = [1, 1]} : vector<8x128xf32> to vector<8x32xf32>
    %309 = vector.extract_strided_slice %306 {offsets = [0, 32], sizes = [8, 32], strides = [1, 1]} : vector<8x128xf32> to vector<8x32xf32>
    %310 = vector.extract_strided_slice %307 {offsets = [0, 64], sizes = [8, 32], strides = [1, 1]} : vector<8x128xf32> to vector<8x32xf32>
    %311 = vector.extract_strided_slice %306 {offsets = [0, 96], sizes = [8, 32], strides = [1, 1]} : vector<8x128xf32> to vector<8x32xf32>
    %312 = arith.mulf %309, %274 : vector<8x32xf32>
    %313 = arith.mulf %308, %310 : vector<8x32xf32>
    %314 = arith.addf %312, %313 : vector<8x32xf32>
    %315 = math.tanh %314 : vector<8x32xf32>
    %316 = arith.mulf %311, %315 : vector<8x32xf32>
    %317 = arith.truncf %316 : vector<8x32xf32> to vector<8x32xbf16>
    %cst_49 = arith.constant dense<0.000000e+00> : vector<8x128xf32>
    %318 = tpu.matmul %317, %3, %cst_49 {dimension_numbers = #tpu.dot_dimension_numbers<[1], [0], [0], [1], [0, 0, 1, 1], [], []>} : vector<8x32xbf16>, vector<32x128xbf16>, vector<8x128xf32> -> vector<8x128xf32>
    %319 = vector.broadcast %9 : vector<1x128xf32> to vector<8x128xf32>
    %320 = arith.addf %318, %319 : vector<8x128xf32>
    %cst_50 = arith.constant dense<0.000000e+00> : vector<8x128xf32>
    %321 = tpu.matmul %298, %7, %cst_50 {dimension_numbers = #tpu.dot_dimension_numbers<[1], [0], [0], [1], [0, 0, 1, 1], [], []>} : vector<8x32xbf16>, vector<32x128xbf16>, vector<8x128xf32> -> vector<8x128xf32>
    %322 = arith.addf %320, %321 : vector<8x128xf32>
    %323 = arith.negf %322 : vector<8x128xf32>
    %324 = math.exp %323 : vector<8x128xf32>
    %cst_51 = arith.constant 1.000000e+00 : f32
    %325 = vector.broadcast %cst_51 : f32 to vector<8x128xf32>
    %326 = arith.addf %325, %324 : vector<8x128xf32>
    %327 = arith.divf %325, %326 : vector<8x128xf32>
    %328 = math.tanh %322 : vector<8x128xf32>
    %329 = vector.extract_strided_slice %327 {offsets = [0, 0], sizes = [8, 32], strides = [1, 1]} : vector<8x128xf32> to vector<8x32xf32>
    %330 = vector.extract_strided_slice %327 {offsets = [0, 32], sizes = [8, 32], strides = [1, 1]} : vector<8x128xf32> to vector<8x32xf32>
    %331 = vector.extract_strided_slice %328 {offsets = [0, 64], sizes = [8, 32], strides = [1, 1]} : vector<8x128xf32> to vector<8x32xf32>
    %332 = vector.extract_strided_slice %327 {offsets = [0, 96], sizes = [8, 32], strides = [1, 1]} : vector<8x128xf32> to vector<8x32xf32>
    %333 = arith.mulf %330, %295 : vector<8x32xf32>
    %334 = arith.mulf %329, %331 : vector<8x32xf32>
    %335 = arith.addf %333, %334 : vector<8x32xf32>
    %336 = math.tanh %335 : vector<8x32xf32>
    %337 = arith.mulf %332, %336 : vector<8x32xf32>
    %c128 = arith.constant 128 : index
    %c0_52 = arith.constant 0 : index
    %338 = vector.load %arg1[%c128, %c0_52] : memref<328x128xf32, #tpu.memory_space<vmem>>, vector<32x128xf32>
    %cst_53 = arith.constant dense<0.000000e+00> : vector<8x128xf32>
    %339 = tpu.matmul %337, %338, %cst_53 {dimension_numbers = #tpu.dot_dimension_numbers<[1], [0], [0], [1], [0, 0, 1, 1], [], []>} : vector<8x32xf32>, vector<32x128xf32>, vector<8x128xf32> -> vector<8x128xf32>
    %c160 = arith.constant 160 : index
    %c0_54 = arith.constant 0 : index
    %340 = vector.load %arg1[%c160, %c0_54] : memref<328x128xf32, #tpu.memory_space<vmem>>, vector<1x128xf32>
    %341 = vector.broadcast %340 : vector<1x128xf32> to vector<8x128xf32>
    %342 = arith.addf %339, %341 : vector<8x128xf32>
    %343 = vector.extract_strided_slice %342 {offsets = [0, 0], sizes = [8, 32], strides = [1, 1]} : vector<8x128xf32> to vector<8x32xf32>
    %344 = vector.extract_strided_slice %342 {offsets = [0, 32], sizes = [8, 32], strides = [1, 1]} : vector<8x128xf32> to vector<8x32xf32>
    %345 = vector.extract_strided_slice %342 {offsets = [0, 64], sizes = [8, 32], strides = [1, 1]} : vector<8x128xf32> to vector<8x32xf32>
    %c168 = arith.constant 168 : index
    %c0_55 = arith.constant 0 : index
    %346 = vector.load %arg1[%c168, %c0_55] : memref<328x128xf32, #tpu.memory_space<vmem>>, vector<32x128xf32>
    %347 = vector.extract_strided_slice %346 {offsets = [0, 0], sizes = [32, 32], strides = [1, 1]} : vector<32x128xf32> to vector<32x32xf32>
    %348 = vector.extract_strided_slice %343 {offsets = [0, 0], sizes = [8, 16], strides = [1, 1]} : vector<8x32xf32> to vector<8x16xf32>
    %349 = vector.extract_strided_slice %344 {offsets = [0, 0], sizes = [8, 16], strides = [1, 1]} : vector<8x32xf32> to vector<8x16xf32>
    %350 = vector.extract_strided_slice %345 {offsets = [0, 0], sizes = [8, 16], strides = [1, 1]} : vector<8x32xf32> to vector<8x16xf32>
    %cst_56 = arith.constant dense<0.000000e+00> : vector<8x8xf32>
    %351 = tpu.matmul %348, %349, %cst_56 {dimension_numbers = #tpu.dot_dimension_numbers<[1], [1], [0], [0], [0, 0, 1, 0], [], []>} : vector<8x16xf32>, vector<8x16xf32>, vector<8x8xf32> -> vector<8x8xf32>
    %cst_57 = arith.constant 2.500000e-01 : f32
    %352 = vector.broadcast %cst_57 : f32 to vector<8x8xf32>
    %353 = arith.mulf %351, %352 : vector<8x8xf32>
    %cst_58 = arith.constant dense<0xFF800000> : vector<8xf32>
    %354 = vector.multi_reduction <maximumf>, %353, %cst_58 [1] : vector<8x8xf32> to vector<8xf32>
    %355 = vector.shape_cast %354 : vector<8xf32> to vector<8x1xf32>
    %356 = vector.broadcast %355 : vector<8x1xf32> to vector<8x8xf32>
    %357 = arith.subf %353, %356 : vector<8x8xf32>
    %358 = math.exp %357 : vector<8x8xf32>
    %cst_59 = arith.constant dense<0.000000e+00> : vector<8xf32>
    %359 = vector.multi_reduction <add>, %358, %cst_59 [1] : vector<8x8xf32> to vector<8xf32>
    %360 = vector.shape_cast %359 : vector<8xf32> to vector<8x1xf32>
    %361 = tpu.reciprocal %360 {approx = true} : vector<8x1xf32> -> vector<8x1xf32>
    %362 = vector.broadcast %361 : vector<8x1xf32> to vector<8x8xf32>
    %363 = arith.mulf %358, %362 : vector<8x8xf32>
    %cst_60 = arith.constant dense<0.000000e+00> : vector<8x16xf32>
    %364 = tpu.matmul %363, %350, %cst_60 {dimension_numbers = #tpu.dot_dimension_numbers<[1], [0], [0], [1], [0, 0, 1, 1], [], []>} : vector<8x8xf32>, vector<8x16xf32>, vector<8x16xf32> -> vector<8x16xf32>
    %365 = vector.extract_strided_slice %347 {offsets = [0, 0], sizes = [16, 32], strides = [1, 1]} : vector<32x32xf32> to vector<16x32xf32>
    %cst_61 = arith.constant dense<0.000000e+00> : vector<8x32xf32>
    %366 = tpu.matmul %364, %365, %cst_61 {dimension_numbers = #tpu.dot_dimension_numbers<[1], [0], [0], [1], [0, 0, 1, 1], [], []>} : vector<8x16xf32>, vector<16x32xf32>, vector<8x32xf32> -> vector<8x32xf32>
    %367 = vector.extract_strided_slice %343 {offsets = [0, 16], sizes = [8, 16], strides = [1, 1]} : vector<8x32xf32> to vector<8x16xf32>
    %368 = vector.extract_strided_slice %344 {offsets = [0, 16], sizes = [8, 16], strides = [1, 1]} : vector<8x32xf32> to vector<8x16xf32>
    %369 = vector.extract_strided_slice %345 {offsets = [0, 16], sizes = [8, 16], strides = [1, 1]} : vector<8x32xf32> to vector<8x16xf32>
    %cst_62 = arith.constant dense<0.000000e+00> : vector<8x8xf32>
    %370 = tpu.matmul %367, %368, %cst_62 {dimension_numbers = #tpu.dot_dimension_numbers<[1], [1], [0], [0], [0, 0, 1, 0], [], []>} : vector<8x16xf32>, vector<8x16xf32>, vector<8x8xf32> -> vector<8x8xf32>
    %cst_63 = arith.constant 2.500000e-01 : f32
    %371 = vector.broadcast %cst_63 : f32 to vector<8x8xf32>
    %372 = arith.mulf %370, %371 : vector<8x8xf32>
    %cst_64 = arith.constant dense<0xFF800000> : vector<8xf32>
    %373 = vector.multi_reduction <maximumf>, %372, %cst_64 [1] : vector<8x8xf32> to vector<8xf32>
    %374 = vector.shape_cast %373 : vector<8xf32> to vector<8x1xf32>
    %375 = vector.broadcast %374 : vector<8x1xf32> to vector<8x8xf32>
    %376 = arith.subf %372, %375 : vector<8x8xf32>
    %377 = math.exp %376 : vector<8x8xf32>
    %cst_65 = arith.constant dense<0.000000e+00> : vector<8xf32>
    %378 = vector.multi_reduction <add>, %377, %cst_65 [1] : vector<8x8xf32> to vector<8xf32>
    %379 = vector.shape_cast %378 : vector<8xf32> to vector<8x1xf32>
    %380 = tpu.reciprocal %379 {approx = true} : vector<8x1xf32> -> vector<8x1xf32>
    %381 = vector.broadcast %380 : vector<8x1xf32> to vector<8x8xf32>
    %382 = arith.mulf %377, %381 : vector<8x8xf32>
    %cst_66 = arith.constant dense<0.000000e+00> : vector<8x16xf32>
    %383 = tpu.matmul %382, %369, %cst_66 {dimension_numbers = #tpu.dot_dimension_numbers<[1], [0], [0], [1], [0, 0, 1, 1], [], []>} : vector<8x8xf32>, vector<8x16xf32>, vector<8x16xf32> -> vector<8x16xf32>
    %384 = vector.extract_strided_slice %347 {offsets = [16, 0], sizes = [16, 32], strides = [1, 1]} : vector<32x32xf32> to vector<16x32xf32>
    %cst_67 = arith.constant dense<0.000000e+00> : vector<8x32xf32>
    %385 = tpu.matmul %383, %384, %cst_67 {dimension_numbers = #tpu.dot_dimension_numbers<[1], [0], [0], [1], [0, 0, 1, 1], [], []>} : vector<8x16xf32>, vector<16x32xf32>, vector<8x32xf32> -> vector<8x32xf32>
    %386 = arith.addf %366, %385 : vector<8x32xf32>
    %c200 = arith.constant 200 : index
    %c0_68 = arith.constant 0 : index
    %387 = vector.load %arg1[%c200, %c0_68] : memref<328x128xf32, #tpu.memory_space<vmem>>, vector<1x128xf32>
    %388 = vector.extract_strided_slice %387 {offsets = [0, 0], sizes = [1, 32], strides = [1, 1]} : vector<1x128xf32> to vector<1x32xf32>
    %389 = vector.broadcast %388 : vector<1x32xf32> to vector<8x32xf32>
    %390 = arith.addf %386, %389 : vector<8x32xf32>
    %391 = arith.addf %337, %390 : vector<8x32xf32>
    %c208 = arith.constant 208 : index
    %c0_69 = arith.constant 0 : index
    %392 = vector.load %arg1[%c208, %c0_69] : memref<328x128xf32, #tpu.memory_space<vmem>>, vector<1x128xf32>
    %393 = vector.extract_strided_slice %392 {offsets = [0, 0], sizes = [1, 32], strides = [1, 1]} : vector<1x128xf32> to vector<1x32xf32>
    %c216 = arith.constant 216 : index
    %c0_70 = arith.constant 0 : index
    %394 = vector.load %arg1[%c216, %c0_70] : memref<328x128xf32, #tpu.memory_space<vmem>>, vector<1x128xf32>
    %395 = vector.extract_strided_slice %394 {offsets = [0, 0], sizes = [1, 32], strides = [1, 1]} : vector<1x128xf32> to vector<1x32xf32>
    %cst_71 = arith.constant dense<0.000000e+00> : vector<8xf32>
    %396 = vector.multi_reduction <add>, %391, %cst_71 [1] : vector<8x32xf32> to vector<8xf32>
    %397 = vector.shape_cast %396 : vector<8xf32> to vector<8x1xf32>
    %cst_72 = arith.constant 3.200000e+01 : f32
    %398 = vector.broadcast %cst_72 : f32 to vector<8x1xf32>
    %399 = arith.divf %397, %398 : vector<8x1xf32>
    %400 = vector.broadcast %399 : vector<8x1xf32> to vector<8x32xf32>
    %401 = arith.subf %391, %400 : vector<8x32xf32>
    %402 = arith.mulf %401, %401 : vector<8x32xf32>
    %cst_73 = arith.constant dense<0.000000e+00> : vector<8xf32>
    %403 = vector.multi_reduction <add>, %402, %cst_73 [1] : vector<8x32xf32> to vector<8xf32>
    %404 = vector.shape_cast %403 : vector<8xf32> to vector<8x1xf32>
    %cst_74 = arith.constant 3.200000e+01 : f32
    %405 = vector.broadcast %cst_74 : f32 to vector<8x1xf32>
    %406 = arith.divf %404, %405 : vector<8x1xf32>
    %407 = vector.broadcast %399 : vector<8x1xf32> to vector<8x32xf32>
    %408 = arith.subf %391, %407 : vector<8x32xf32>
    %cst_75 = arith.constant 9.99999974E-6 : f32
    %409 = vector.broadcast %cst_75 : f32 to vector<8x1xf32>
    %410 = arith.addf %406, %409 : vector<8x1xf32>
    %411 = math.rsqrt %410 : vector<8x1xf32>
    %412 = vector.broadcast %411 : vector<8x1xf32> to vector<8x32xf32>
    %413 = arith.mulf %408, %412 : vector<8x32xf32>
    %414 = vector.broadcast %393 : vector<1x32xf32> to vector<8x32xf32>
    %415 = arith.mulf %413, %414 : vector<8x32xf32>
    %416 = vector.broadcast %395 : vector<1x32xf32> to vector<8x32xf32>
    %417 = arith.addf %415, %416 : vector<8x32xf32>
    %c0_76 = arith.constant 0 : index
    %c0_77 = arith.constant 0 : index
    %418 = vector.load %arg2[%c0_76, %c0_77] : memref<64x2048xbf16, #tpu.memory_space<vmem>>, vector<32x2048xbf16>
    %c32 = arith.constant 32 : index
    %c0_78 = arith.constant 0 : index
    %419 = vector.load %arg2[%c32, %c0_78] : memref<64x2048xbf16, #tpu.memory_space<vmem>>, vector<32x2048xbf16>
    %420 = arith.truncf %417 : vector<8x32xf32> to vector<8x32xbf16>
    %cst_79 = arith.constant dense<0.000000e+00> : vector<8x2048xf32>
    %421 = tpu.matmul %420, %418, %cst_79 {dimension_numbers = #tpu.dot_dimension_numbers<[1], [0], [0], [1], [0, 0, 1, 1], [], []>} : vector<8x32xbf16>, vector<32x2048xbf16>, vector<8x2048xf32> -> vector<8x2048xf32>
    %c0_80 = arith.constant 0 : index
    %c0_81 = arith.constant 0 : index
    %422 = vector.load %arg3[%c0_80, %c0_81] : memref<1x2048xf32, #tpu.memory_space<vmem>>, vector<1x2048xf32>
    %423 = vector.broadcast %422 : vector<1x2048xf32> to vector<8x2048xf32>
    %424 = arith.addf %421, %423 : vector<8x2048xf32>
    %cst_82 = arith.constant 0.000000e+00 : f32
    %425 = vector.broadcast %cst_82 : f32 to vector<8x2048xf32>
    %426 = arith.maximumf %424, %425 : vector<8x2048xf32>
    %427 = arith.truncf %426 : vector<8x2048xf32> to vector<8x2048xbf16>
    %cst_83 = arith.constant dense<0.000000e+00> : vector<8x32xf32>
    %428 = tpu.matmul %427, %419, %cst_83 {dimension_numbers = #tpu.dot_dimension_numbers<[1], [1], [0], [0], [0, 0, 1, 0], [], []>} : vector<8x2048xbf16>, vector<32x2048xbf16>, vector<8x32xf32> -> vector<8x32xf32>
    %c320 = arith.constant 320 : index
    %c0_84 = arith.constant 0 : index
    %429 = vector.load %arg1[%c320, %c0_84] : memref<328x128xf32, #tpu.memory_space<vmem>>, vector<1x128xf32>
    %430 = vector.extract_strided_slice %429 {offsets = [0, 0], sizes = [1, 32], strides = [1, 1]} : vector<1x128xf32> to vector<1x32xf32>
    %431 = vector.broadcast %430 : vector<1x32xf32> to vector<8x32xf32>
    %432 = arith.addf %428, %431 : vector<8x32xf32>
    %433 = arith.addf %417, %432 : vector<8x32xf32>
    %c224 = arith.constant 224 : index
    %c0_85 = arith.constant 0 : index
    %434 = vector.load %arg1[%c224, %c0_85] : memref<328x128xf32, #tpu.memory_space<vmem>>, vector<1x128xf32>
    %435 = vector.extract_strided_slice %434 {offsets = [0, 0], sizes = [1, 32], strides = [1, 1]} : vector<1x128xf32> to vector<1x32xf32>
    %c232 = arith.constant 232 : index
    %c0_86 = arith.constant 0 : index
    %436 = vector.load %arg1[%c232, %c0_86] : memref<328x128xf32, #tpu.memory_space<vmem>>, vector<1x128xf32>
    %437 = vector.extract_strided_slice %436 {offsets = [0, 0], sizes = [1, 32], strides = [1, 1]} : vector<1x128xf32> to vector<1x32xf32>
    %cst_87 = arith.constant dense<0.000000e+00> : vector<8xf32>
    %438 = vector.multi_reduction <add>, %433, %cst_87 [1] : vector<8x32xf32> to vector<8xf32>
    %439 = vector.shape_cast %438 : vector<8xf32> to vector<8x1xf32>
    %cst_88 = arith.constant 3.200000e+01 : f32
    %440 = vector.broadcast %cst_88 : f32 to vector<8x1xf32>
    %441 = arith.divf %439, %440 : vector<8x1xf32>
    %442 = vector.broadcast %441 : vector<8x1xf32> to vector<8x32xf32>
    %443 = arith.subf %433, %442 : vector<8x32xf32>
    %444 = arith.mulf %443, %443 : vector<8x32xf32>
    %cst_89 = arith.constant dense<0.000000e+00> : vector<8xf32>
    %445 = vector.multi_reduction <add>, %444, %cst_89 [1] : vector<8x32xf32> to vector<8xf32>
    %446 = vector.shape_cast %445 : vector<8xf32> to vector<8x1xf32>
    %cst_90 = arith.constant 3.200000e+01 : f32
    %447 = vector.broadcast %cst_90 : f32 to vector<8x1xf32>
    %448 = arith.divf %446, %447 : vector<8x1xf32>
    %449 = vector.broadcast %441 : vector<8x1xf32> to vector<8x32xf32>
    %450 = arith.subf %433, %449 : vector<8x32xf32>
    %cst_91 = arith.constant 9.99999974E-6 : f32
    %451 = vector.broadcast %cst_91 : f32 to vector<8x1xf32>
    %452 = arith.addf %448, %451 : vector<8x1xf32>
    %453 = math.rsqrt %452 : vector<8x1xf32>
    %454 = vector.broadcast %453 : vector<8x1xf32> to vector<8x32xf32>
    %455 = arith.mulf %450, %454 : vector<8x32xf32>
    %456 = vector.broadcast %435 : vector<1x32xf32> to vector<8x32xf32>
    %457 = arith.mulf %455, %456 : vector<8x32xf32>
    %458 = vector.broadcast %437 : vector<1x32xf32> to vector<8x32xf32>
    %459 = arith.addf %457, %458 : vector<8x32xf32>
    %c240 = arith.constant 240 : index
    %c0_92 = arith.constant 0 : index
    %460 = vector.load %arg1[%c240, %c0_92] : memref<328x128xf32, #tpu.memory_space<vmem>>, vector<32x128xf32>
    %461 = vector.extract_strided_slice %460 {offsets = [0, 0], sizes = [32, 32], strides = [1, 1]} : vector<32x128xf32> to vector<32x32xf32>
    %cst_93 = arith.constant dense<0.000000e+00> : vector<8x32xf32>
    %462 = tpu.matmul %459, %461, %cst_93 {dimension_numbers = #tpu.dot_dimension_numbers<[1], [0], [0], [1], [0, 0, 1, 1], [], []>} : vector<8x32xf32>, vector<32x32xf32>, vector<8x32xf32> -> vector<8x32xf32>
    %c272 = arith.constant 272 : index
    %c0_94 = arith.constant 0 : index
    %463 = vector.load %arg1[%c272, %c0_94] : memref<328x128xf32, #tpu.memory_space<vmem>>, vector<1x128xf32>
    %464 = vector.extract_strided_slice %463 {offsets = [0, 0], sizes = [1, 32], strides = [1, 1]} : vector<1x128xf32> to vector<1x32xf32>
    %465 = vector.broadcast %464 : vector<1x32xf32> to vector<8x32xf32>
    %466 = arith.addf %462, %465 : vector<8x32xf32>
    %cst_95 = arith.constant 0.000000e+00 : f32
    %467 = vector.broadcast %cst_95 : f32 to vector<8x32xf32>
    %468 = arith.maximumf %466, %467 : vector<8x32xf32>
    %c280 = arith.constant 280 : index
    %c0_96 = arith.constant 0 : index
    %469 = vector.load %arg1[%c280, %c0_96] : memref<328x128xf32, #tpu.memory_space<vmem>>, vector<32x128xf32>
    %cst_97 = arith.constant dense<0.000000e+00> : vector<8x128xf32>
    %470 = tpu.matmul %468, %469, %cst_97 {dimension_numbers = #tpu.dot_dimension_numbers<[1], [0], [0], [1], [0, 0, 1, 1], [], []>} : vector<8x32xf32>, vector<32x128xf32>, vector<8x128xf32> -> vector<8x128xf32>
    %c312 = arith.constant 312 : index
    %c0_98 = arith.constant 0 : index
    %471 = vector.load %arg1[%c312, %c0_98] : memref<328x128xf32, #tpu.memory_space<vmem>>, vector<1x128xf32>
    %472 = vector.broadcast %471 : vector<1x128xf32> to vector<8x128xf32>
    %473 = arith.addf %470, %472 : vector<8x128xf32>
    %c0_99 = arith.constant 0 : index
    %c0_100 = arith.constant 0 : index
    %474 = vector.load %arg4[%c0_99, %c0_100] : memref<8x128xf32, #tpu.memory_space<vmem>>, vector<8x128xf32>
    tpu.vector_store %arg4[%c0_99, %c0_100], %473 {strides = array<i32>} : memref<8x128xf32, #tpu.memory_space<vmem>>, vector<8x128xf32>,
    return
  }
}

</mosaic_0001>

<bundles_post_ra>
// kernel: forward.1
= control target key start
LH: loop header
LB: loop body
LE: loop exit
PB: predicated region body
PF: predicated region fallthrough
CT: control target
= control target key end

     0   :  { %9 = vsyncpa [#allocation3], 0  ;;  %s3448_s0 = inlined_call_operand.vmem [shape: f32[64,16], index: 0, kind: input, shape index: {}]   ;;  %s3449_s1 = inlined_call_operand.hbm [shape: f32[328,128], index: 1, kind: input, shape index: {}]   ;;  %s3450_s2 = inlined_call_operand.hbm [shape: bf16[64,2048], index: 2, kind: input, shape index: {}]   ;;  %s3451_s3 = inlined_call_operand.vmem [shape: f32[1,2048], index: 3, kind: input, shape index: {}]   ;;  %s3452_s4 = inlined_call_operand.vmem [shape: f32[8,128], index: 4, kind: output, shape index: {}]  }
   0x1   :  { %s17_s17 = sshll.u32 %s3449_s1, 4  ;;  %s18_s17 = int_to_ptr.hbm [resolvable:$true] %s17_s17 }
   0x2   :  { %10 = vsyncpa [#allocation5], 0  ;;  %s3033_s18 = smov [#allocation2]   ;;  %s30_s22 = sshll.u32 %s3450_s2, 4  ;;  %s31_s22 = int_to_ptr.hbm [resolvable:$true] %s30_s22 }
   0x3   :  { %s19_s19 = sshll.u32 %s3033_s18, 4  ;;  %s3034_s23 = smov 128   ;;  %s20_s19 = int_to_ptr.vmem [resolvable:$true] %s19_s19 }
   0x4   :  { %s3035_s24 = smov 8   ;;  %s3036_s25 = smov [#allocation4]  }
   0x5   :  { %25 = dma.hbm_to_vmem [thread:$0]  %s18_s17, 5248, %s20_s19, [#allocation3], %s3034_s23, %s3034_s23, %s3035_s24  }
   0x6   :  { %s32_s26 = sshll.u32 %s3036_s25, 4  ;;  %s3037_s27 = smov 1024   ;;  %s33_s26 = int_to_ptr.vmem [resolvable:$true] %s32_s26 }
   0x7   :  { %s3038_s28 = smov 64  }
   0x8   :  { %38 = dma.hbm_to_vmem [thread:$0]  %s31_s22, 8192, %s33_s26, [#allocation5], %s3037_s27, %s3037_s27, %s3038_s28  }
   0x9   :  { %3029 = dma.done.wait [#allocation3], 5248  }
   0xa   :  { %3030 = vsyncadd [#allocation3], 4294962048 }
   0xb   :  { %3031 = dma.done.wait [#allocation5], 8192  }
   0xc   :  { %3032 = vsyncadd [#allocation5], 4294959104  ;;  %v50_v0 = vld [vmem:[#allocation2] sm:$0xff]  ;;  %v51_v1 = vld [vmem:[#allocation2 + $0x8] sm:$0xff]  ;;  %vm86_vm0 = vcmask 130048   ;;  %v3039_v12 = vmov 0  }
   0xd   :  { %v61_v2 = vld [vmem:[#allocation2 + $0x20] sm:$0xff]  ;;  %v52_v3 = vpack.c.bf16 %v51_v1, %v50_v0  ;;  %v62_v4 = vld [vmem:[#allocation2 + $0x28] sm:$0xff]  ;;  %v59_v9 = vld [vmem:[#allocation2 + $0x10] sm:$0xff]  ;;  %s3040_s5 = smov 32   ;;  %vm128_vm5 = vcmask 261120   ;;  %s3042_s18 = smov 80  }
   0xe   :  { %v73_v5 = vld [vmem:[%s3448_s0] sm:$0xff]  ;;  %v74_v6 = vld [vmem:[%s3448_s0 + $0x8] sm:$0xff]  ;;  %v3084_v7 = vpack.c.bf16 %v62_v4, %v61_v2  ;;  %v60_v10 = vld [vmem:[#allocation2 + $0x18] sm:$0xff]  ;;  %s3043_s19 = smov 96   ;;  %s3044_s20 = smov 48  }
   0xf   :  { %v81_v8 = vpack.c.bf16 %v74_v6, %v73_v5  ;;  %106 = vmatpush.bf16.msra.mxu0 %v52_v3  ;;  %v3087_v11 = vpack.c.bf16 %v60_v10, %v59_v9  ;;  %v3097_v13 = vld [vmem:[#allocation2 + $0x30] ss:$0 sm:$0xff]  ;;  %v67_v39 = vld [vmem:[#allocation2 + $0x68] sm:$0xff]  ;;  %v65_v41 = vld [vmem:[#allocation2 + $0x58] sm:$0xff] }
  0x10   :  { %138 = vmatpush.bf16.msra.mxu1 %v3084_v7  ;;  %v68_v40 = vld [vmem:[#allocation2 + $0x70] sm:$0xff]  ;;  %v66_v43 = vld [vmem:[#allocation2 + $0x60] sm:$0xff]  ;;  %v55_v44 = vld [vmem:[#allocation2 + $0x48] sm:$0xff] }
  0x11   :  { %v3106_v42 = vpack.c.bf16 %v68_v40, %v67_v39  ;;  %v56_v45 = vld [vmem:[#allocation2 + $0x50] sm:$0xff]  ;;  %v53_v47 = vld [vmem:[#allocation2 + $0x38] sm:$0xff]  ;;  %v54_v48 = vld [vmem:[#allocation2 + $0x40] sm:$0xff]  ;;  %v3111_v49 = vpack.c.bf16 %v66_v43, %v65_v41 }
  0x12   :  { %2424 = vmatmul.msk.bf16.vlgmr.msra.gmra.mxu0 %vm86_vm0, %v81_v8  ;;  %v3108_v46 = vpack.c.bf16 %v56_v45, %v55_v44  ;;  %v3114_v50 = vpack.c.bf16 %v54_v48, %v53_v47  ;;  %v3134_v61 = vld [vmem:[#allocation2 + $0x78] ss:$0 sm:$0xff] }
  0x13   :  { %649 = vmatpush.bf16.msrb.mxu0 %v3084_v7  ;;  %210 = vmatpush.bf16.msra.mxu3 %v3106_v42 }
  0x14   :  { %139 = vmatpush.bf16.msra.mxu1 %v3087_v11  ;;  %197 = vmatpush.bf16.msra.mxu2 %v3108_v46 }
  0x17   :  { %650 = vmatpush.bf16.msrb.mxu0 %v3087_v11  ;;  %140 = vmatmul.bf16.vlgmr.msra.gmra.mxu1 %v3039_v12 }
  0x18   :  { %262 = vmatpush.bf16.msrb.mxu1 %v3084_v7  ;;  %211 = vmatpush.bf16.msra.mxu3 %v3111_v49 }
  0x19   :  { %198 = vmatpush.bf16.msra.mxu2 %v3114_v50 }
  0x1b   :  { %836 = vmatpush.bf16.msra.mxu0 %v3108_v46  ;;  %212 = vmatmul.bf16.vlgmr.msra.gmra.mxu3 %v3039_v12 }
  0x1c   :  { %263 = vmatpush.bf16.msrb.mxu1 %v3087_v11  ;;  %339 = vmatpush.bf16.msrb.mxu3 %v3106_v42 }
  0x1d   :  { %320 = vmatpush.bf16.msrb.mxu2 %v3108_v46 }
  0x1f   :  { %837 = vmatpush.bf16.msra.mxu0 %v3114_v50 }
  0x20   :  { %391 = vmatpush.bf16.msra.mxu1 %v3084_v7  ;;  %340 = vmatpush.bf16.msrb.mxu3 %v3111_v49 }
  0x21   :  { %321 = vmatpush.bf16.msrb.mxu2 %v3114_v50 }
  0x24   :  { %392 = vmatpush.bf16.msra.mxu1 %v3087_v11  ;;  %468 = vmatpush.bf16.msra.mxu3 %v3106_v42 }
  0x28   :  { %469 = vmatpush.bf16.msra.mxu3 %v3111_v49 }
  0x8f   :  { %v108_v14 = vpop.f32.mrf.mxu0 }
  0x90   :  { %v109_v15 = vadd.f32 %v3097_v13, %v108_v14 }
  0x94   :  { %v141_v16 = vpop.f32.mrf.mxu1 }
  0x95   :  { %v145_v17 = vadd.f32 %v141_v16, %v109_v15 }
  0x97   :  { %2837 = vtanh.f32 %v145_v17  ;;  %v2428_v20 = vmul.f32 -1.442695, %v145_v17  ;;  %v110_v57 = vpop.f32.mrf.mxu0 }
  0x98   :  { %v111_v58 = vadd.f32 %v3097_v13, %v110_v57 }
  0x99   :  { %2839 = vpow2.f32 %v2428_v20 }
  0x9c   :  { %v143_v18 = vpop.f32.mrf.mxu1 }
  0x9d   :  { %v2838_v19 = vpop.eup %2837 }
  0x9e   :  { %168 = vrot.lane.b32.xlu0 %v2838_v19, %s3038_s28  ;;  %v213_v54 = vpop.f32.mrf.mxu3 }
  0x9f   :  { %v2840_v21 = vpop.eup %2839 }
  0xa0   :  { %v149_v22 = vadd.f32 1.0, %v2840_v21 }
  0xa2   :  { %2841 = vrcp.f32 %v149_v22  ;;  %v161_v28 = vand.u32 2147483648, %v149_v22  ;;  %vm155_vm2 = vweird.f32 %v149_v22  ;;  %v159_v29 = vand.u32 2147483647, %v149_v22 }
  0xa4   :  { %v162_v31 = vor.u32 1.1754944e-38, %v161_v28  ;;  %vm160_vm4 = vcmp.eq.f32.partialorder %v159_v29, 8.507059e+37 }
  0xa6   :  { %v215_v56 = vpop.f32.mrf.mxu3 }
  0xa8   :  { %v2842_v23 = vpop.eup %2841 }
  0xa9   :  { %v151_v24 = vmul.f32 %v2842_v23, %v149_v22  ;;  %vm156_vm1 = vweird.f32 %v2842_v23 }
  0xaa   :  { %vm157_vm3 = vmor %vm155_vm2, %vm156_vm1 }
  0xab   :  { %v152_v25 = vsub.f32 1.0, %v151_v24 }
  0xad   :  { %v153_v26 = vmul.f32 %v2842_v23, %v152_v25 }
  0xaf   :  { %v154_v27 = vadd.f32 %v2842_v23, %v153_v26 }
  0xb1   :  { %v158_v30 = vsel %vm157_vm3, %v2842_v23, %v154_v27 }
  0xb2   :  { %v163_v33 = vsel %vm160_vm4, %v162_v31, %v158_v30 }
  0xb3   :  { %v166_v35 = vmul.f32 0.0, %v163_v33 }
 0x110   :  { %v169_v32 = vpop.permute.xlu0 %168 }
 0x111   :  { %v171_v34 = vmul.f32 %v169_v32, %v163_v33 }
 0x113   :  { %173 = vrot.lane.b32.xlu0 %v171_v34, %s3040_s5 }
 0x185   :  { %v174_v36 = vpop.permute.xlu0 %173 }
 0x186   :  { %v3102_v37 = vadd.f32 %v174_v36, %v166_v35 }
 0x188   :  { %2843 = vtanh.f32 %v3102_v37 }
 0x18e   :  { %v2844_v38 = vpop.eup %2843 }
 0x18f   :  { %179 = vrot.lane.b32.xlu1 %v2844_v38, %s3038_s28 }
 0x201   :  { %v180_v51 = vpop.permute.xlu1 %179 }
 0x202   :  { %v182_v52 = vmul.f32 %v180_v51, %v163_v33 }
 0x204   :  { %v183_v53 = vpack.c.bf16 %v182_v52, %v182_v52 }
 0x206   :  { %186 = vrot.lane.b32.xlu1 %v183_v53, %s3040_s5  ;;  %v75_v53 = vld [vmem:[%s3448_s0 + $0x10] sm:$0xff] }
 0x278   :  { %v187_v55 = vpop.permute.xlu1 %186 }
 0x279   :  { %2429 = vmatmul.msk.bf16.vlgmr.msra.gmra.mxu2 %vm128_vm5, %v187_v55  ;;  %2431 = vmatmul.msk.bf16.vlgmr.msrb.gmra.mxu1 %vm128_vm5, %v187_v55 }
 0x27a   :  { %449 = vmatpush.bf16.msra.mxu2 %v3108_v46  ;;  %520 = vmatpush.bf16.msrb.mxu1 %v3084_v7 }
 0x27e   :  { %450 = vmatpush.bf16.msra.mxu2 %v3114_v50  ;;  %521 = vmatpush.bf16.msrb.mxu1 %v3087_v11 }
 0x2f6   :  { %v265_v59 = vpop.f32.mrf.mxu1 }
 0x2f7   :  { %v269_v60 = vadd.f32 %v265_v59, %v111_v58 }
 0x2f9   :  { %2845 = vtanh.f32 %v269_v60  ;;  %v2432_v5 = vmul.f32 -1.442695, %v269_v60 }
 0x2fc   :  { %v200_v62 = vpop.f32.mrf.mxu2 }
 0x2fd   :  { %v201_v63 = vadd.f32 %v3134_v61, %v200_v62 }
 0x2fe   :  { %v267_v0 = vpop.f32.mrf.mxu1 }
 0x2ff   :  { %v2846_v1 = vpop.eup %2845  ;;  %v217_v2 = vadd.f32 %v213_v54, %v201_v63  ;;  %v76_v54 = vld [vmem:[%s3448_s0 + $0x18] sm:$0xff] }
 0x300   :  { %292 = vrot.lane.b32.xlu2 %v2846_v1, %s3038_s28  ;;  %v82_v55 = vpack.c.bf16 %v76_v54, %v75_v53 }
 0x301   :  { %2847 = vtanh.f32 %v217_v2  ;;  %v2430_v6 = vmul.f32 -1.442695, %v217_v2 }
 0x302   :  { %2849 = vpow2.f32 %v2432_v5  ;;  %2425 = vmatmul.msk.bf16.gmra.mxu0 %vm86_vm0, %v82_v55 }
 0x303   :  { %2851 = vpow2.f32 %v2430_v6 }
 0x304   :  { %v202_v3 = vpop.f32.mrf.mxu2 }
 0x307   :  { %v2848_v4 = vpop.eup %2847 }
 0x308   :  { %240 = vrot.lane.b32.xlu2 %v2848_v4, %s3038_s28  ;;  %v2850_v8 = vpop.eup %2849 }
 0x309   :  { %v273_v9 = vadd.f32 1.0, %v2850_v8  ;;  %v2852_v10 = vpop.eup %2851 }
 0x30a   :  { %v221_v12 = vadd.f32 1.0, %v2852_v10 }
 0x30b   :  { %2853 = vrcp.f32 %v273_v9  ;;  %v285_v22 = vand.u32 2147483648, %v273_v9  ;;  %vm279_vm7 = vweird.f32 %v273_v9  ;;  %v283_v23 = vand.u32 2147483647, %v273_v9 }
 0x30c   :  { %2855 = vrcp.f32 %v221_v12  ;;  %v233_v31 = vand.u32 2147483648, %v221_v12  ;;  %vm227_vm11 = vweird.f32 %v221_v12  ;;  %v231_v32 = vand.u32 2147483647, %v221_v12 }
 0x30d   :  { %v286_v26 = vor.u32 1.1754944e-38, %v285_v22  ;;  %vm284_vm9 = vcmp.eq.f32.partialorder %v283_v23, 8.507059e+37 }
 0x30e   :  { %v234_v34 = vor.u32 1.1754944e-38, %v233_v31  ;;  %vm232_vm13 = vcmp.eq.f32.partialorder %v231_v32, 8.507059e+37 }
 0x311   :  { %v2854_v14 = vpop.eup %2853 }
 0x312   :  { %v275_v15 = vmul.f32 %v2854_v14, %v273_v9  ;;  %v2856_v17 = vpop.eup %2855  ;;  %vm280_vm6 = vweird.f32 %v2854_v14 }
 0x313   :  { %v223_v19 = vmul.f32 %v2856_v17, %v221_v12  ;;  %vm281_vm8 = vmor %vm279_vm7, %vm280_vm6  ;;  %vm228_vm10 = vweird.f32 %v2856_v17 }
 0x314   :  { %v276_v16 = vsub.f32 1.0, %v275_v15  ;;  %vm229_vm12 = vmor %vm227_vm11, %vm228_vm10 }
 0x315   :  { %v224_v21 = vsub.f32 1.0, %v223_v19 }
 0x316   :  { %v277_v18 = vmul.f32 %v2854_v14, %v276_v16 }
 0x317   :  { %v225_v25 = vmul.f32 %v2856_v17, %v224_v21 }
 0x318   :  { %v278_v20 = vadd.f32 %v2854_v14, %v277_v18 }
 0x319   :  { %v226_v30 = vadd.f32 %v2856_v17, %v225_v25 }
 0x31a   :  { %v282_v24 = vsel %vm281_vm8, %v2854_v14, %v278_v20 }
 0x31b   :  { %v287_v28 = vsel %vm284_vm9, %v286_v26, %v282_v24  ;;  %v230_v33 = vsel %vm229_vm12, %v2856_v17, %v226_v30 }
 0x31c   :  { %v235_v36 = vsel %vm232_vm13, %v234_v34, %v230_v33  ;;  %v290_v39 = vmul.f32 %v287_v28, %v3102_v37 }
 0x31d   :  { %v238_v43 = vmul.f32 0.0, %v235_v36 }
 0x35a   :  { %v293_v27 = vpop.permute.xlu2 %292 }
 0x35b   :  { %v295_v29 = vmul.f32 %v293_v27, %v287_v28 }
 0x35d   :  { %297 = vrot.lane.b32.xlu0 %v295_v29, %s3040_s5 }
 0x362   :  { %v241_v35 = vpop.permute.xlu2 %240 }
 0x363   :  { %v243_v38 = vmul.f32 %v241_v35, %v235_v36 }
 0x365   :  { %245 = vrot.lane.b32.xlu1 %v243_v38, %s3040_s5 }
 0x37f   :  { %v113_v62 = vpop.f32.mrf.mxu0 }
 0x380   :  { %v114_v63 = vadd.f32 %v3097_v13, %v113_v62 }
 0x3cf   :  { %v298_v40 = vpop.permute.xlu0 %297 }
 0x3d0   :  { %v3142_v41 = vadd.f32 %v298_v40, %v290_v39 }
 0x3d2   :  { %2857 = vtanh.f32 %v3142_v41 }
 0x3d7   :  { %v246_v44 = vpop.permute.xlu1 %245 }
 0x3d8   :  { %v2858_v45 = vpop.eup %2857  ;;  %v3145_v47 = vadd.f32 %v246_v44, %v238_v43 }
 0x3d9   :  { %303 = vrot.lane.b32.xlu2 %v2858_v45, %s3038_s28 }
 0x3da   :  { %2859 = vtanh.f32 %v3145_v47 }
 0x3e0   :  { %v2860_v48 = vpop.eup %2859 }
 0x3e1   :  { %251 = vrot.lane.b32.xlu0 %v2860_v48, %s3038_s28 }
 0x433   :  { %v304_v51 = vpop.permute.xlu2 %303 }
 0x434   :  { %v306_v52 = vmul.f32 %v304_v51, %v287_v28 }
 0x436   :  { %v307_v37 = vpack.c.bf16 %v306_v52, %v306_v52 }
 0x438   :  { %309 = vrot.lane.b32.xlu1 %v307_v37, %s3040_s5 }
 0x453   :  { %v252_v56 = vpop.permute.xlu0 %251 }
 0x454   :  { %v254_v57 = vmul.f32 %v252_v56, %v235_v36 }
 0x456   :  { %v255_v58 = vpack.c.bf16 %v254_v57, %v254_v57 }
 0x458   :  { %328 = vrot.lane.b32.xlu2 %v255_v58, %s3040_s5 }
 0x4aa   :  { %v310_v59 = vpop.permute.xlu1 %309 }
 0x4ab   :  { %2433 = vmatmul.msk.bf16.vlgmr.msrb.gmra.mxu2 %vm128_vm5, %v310_v59  ;;  %2436 = vmatmul.msk.bf16.vlgmr.msra.gmra.mxu1 %vm128_vm5, %v310_v59 }
 0x4ac   :  { %578 = vmatpush.bf16.msrb.mxu2 %v3108_v46  ;;  %707 = vmatpush.bf16.msra.mxu1 %v3108_v46 }
 0x4b0   :  { %579 = vmatpush.bf16.msrb.mxu2 %v3114_v50  ;;  %708 = vmatpush.bf16.msra.mxu1 %v3114_v50 }
 0x4b2   :  { %v329_v60 = vpop.permute.xlu2 %328 }
 0x4b3   :  { %2434 = vmatmul.msk.bf16.vlgmr.msrb.gmra.mxu3 %vm128_vm5, %v329_v60 }
 0x4b4   :  { %597 = vmatpush.bf16.msrb.mxu3 %v3106_v42 }
 0x4b8   :  { %598 = vmatpush.bf16.msrb.mxu3 %v3111_v49 }
 0x528   :  { %v394_v0 = vpop.f32.mrf.mxu1 }
 0x529   :  { %v398_v1 = vadd.f32 %v394_v0, %v114_v63 }
 0x52b   :  { %2861 = vtanh.f32 %v398_v1  ;;  %v2437_v14 = vmul.f32 -1.442695, %v398_v1  ;;  %v115_v1 = vpop.f32.mrf.mxu0 }
 0x52e   :  { %v323_v2 = vpop.f32.mrf.mxu2 }
 0x52f   :  { %v324_v5 = vadd.f32 %v3134_v61, %v323_v2  ;;  %v116_v2 = vadd.f32 %v3097_v13, %v115_v1 }
 0x530   :  { %v396_v3 = vpop.f32.mrf.mxu1 }
 0x531   :  { %v2862_v4 = vpop.eup %2861 }
 0x532   :  { %421 = vrot.lane.b32.xlu0 %v2862_v4, %s3038_s28 }
 0x536   :  { %v325_v6 = vpop.f32.mrf.mxu2  ;;  %v342_v8 = vpop.f32.mrf.mxu3 }
 0x537   :  { %v346_v9 = vadd.f32 %v342_v8, %v324_v5 }
 0x539   :  { %2863 = vtanh.f32 %v346_v9  ;;  %v2435_v17 = vmul.f32 -1.442695, %v346_v9 }
 0x53a   :  { %2865 = vpow2.f32 %v2437_v14 }
 0x53e   :  { %v344_v10 = vpop.f32.mrf.mxu3 }
 0x53f   :  { %v2864_v12 = vpop.eup %2863 }
 0x540   :  { %369 = vrot.lane.b32.xlu1 %v2864_v12, %s3038_s28  ;;  %v2866_v15 = vpop.eup %2865 }
 0x541   :  { %v402_v16 = vadd.f32 1.0, %v2866_v15 }
 0x543   :  { %2867 = vrcp.f32 %v402_v16  ;;  %v414_v26 = vand.u32 2147483648, %v402_v16  ;;  %vm408_vm15 = vweird.f32 %v402_v16  ;;  %v412_v27 = vand.u32 2147483647, %v402_v16 }
 0x544   :  { %2869 = vpow2.f32 %v2435_v17 }
 0x545   :  { %v415_v30 = vor.u32 1.1754944e-38, %v414_v26  ;;  %vm413_vm2 = vcmp.eq.f32.partialorder %v412_v27, 8.507059e+37 }
 0x549   :  { %v2868_v18 = vpop.eup %2867 }
 0x54a   :  { %v2870_v19 = vpop.eup %2869  ;;  %v404_v20 = vmul.f32 %v2868_v18, %v402_v16  ;;  %vm409_vm14 = vweird.f32 %v2868_v18 }
 0x54b   :  { %v350_v21 = vadd.f32 1.0, %v2870_v19  ;;  %vm410_vm1 = vmor %vm408_vm15, %vm409_vm14 }
 0x54c   :  { %v405_v22 = vsub.f32 1.0, %v404_v20 }
 0x54d   :  { %2871 = vrcp.f32 %v350_v21  ;;  %v362_v38 = vand.u32 2147483648, %v350_v21  ;;  %vm356_vm4 = vweird.f32 %v350_v21  ;;  %v360_v39 = vand.u32 2147483647, %v350_v21 }
 0x54e   :  { %v406_v23 = vmul.f32 %v2868_v18, %v405_v22 }
 0x54f   :  { %v363_v43 = vor.u32 1.1754944e-38, %v362_v38  ;;  %vm361_vm7 = vcmp.eq.f32.partialorder %v360_v39, 8.507059e+37 }
 0x550   :  { %v407_v25 = vadd.f32 %v2868_v18, %v406_v23 }
 0x552   :  { %v411_v29 = vsel %vm410_vm1, %v2868_v18, %v407_v25 }
 0x553   :  { %v2872_v24 = vpop.eup %2871  ;;  %v416_v32 = vsel %vm413_vm2, %v415_v30, %v411_v29 }
 0x554   :  { %v352_v28 = vmul.f32 %v2872_v24, %v350_v21  ;;  %vm357_vm3 = vweird.f32 %v2872_v24  ;;  %v419_v51 = vmul.f32 %v416_v32, %v3142_v41 }
 0x555   :  { %vm358_vm6 = vmor %vm356_vm4, %vm357_vm3 }
 0x556   :  { %v353_v31 = vsub.f32 1.0, %v352_v28 }
 0x558   :  { %v354_v35 = vmul.f32 %v2872_v24, %v353_v31 }
 0x55a   :  { %v355_v36 = vadd.f32 %v2872_v24, %v354_v35 }
 0x55c   :  { %v359_v40 = vsel %vm358_vm6, %v2872_v24, %v355_v36 }
 0x55d   :  { %v364_v45 = vsel %vm361_vm7, %v363_v43, %v359_v40 }
 0x55e   :  { %v367_v54 = vmul.f32 %v364_v45, %v3145_v47 }
 0x5a4   :  { %v422_v33 = vpop.permute.xlu0 %421 }
 0x5a5   :  { %v424_v34 = vmul.f32 %v422_v33, %v416_v32 }
 0x5a7   :  { %426 = vrot.lane.b32.xlu2 %v424_v34, %s3040_s5 }
 0x5b2   :  { %v370_v44 = vpop.permute.xlu1 %369 }
 0x5b3   :  { %v372_v48 = vmul.f32 %v370_v44, %v364_v45 }
 0x5b5   :  { %374 = vrot.lane.b32.xlu0 %v372_v48, %s3040_s5 }
 0x601   :  { %v427_v52 = vpop.permute.xlu2 %426 }
 0x602   :  { %v3175_v37 = vadd.f32 %v427_v52, %v419_v51 }
 0x604   :  { %2873 = vtanh.f32 %v3175_v37 }
 0x60a   :  { %v2874_v53 = vpop.eup %2873 }
 0x60b   :  { %432 = vrot.lane.b32.xlu1 %v2874_v53, %s3038_s28 }
 0x627   :  { %v375_v55 = vpop.permute.xlu0 %374 }
 0x628   :  { %v3180_v56 = vadd.f32 %v375_v55, %v367_v54 }
 0x62a   :  { %2875 = vtanh.f32 %v3180_v56 }
 0x630   :  { %v2876_v57 = vpop.eup %2875 }
 0x631   :  { %380 = vrot.lane.b32.xlu2 %v2876_v57, %s3038_s28 }
 0x67d   :  { %v433_v58 = vpop.permute.xlu1 %432 }
 0x67e   :  { %v435_v41 = vmul.f32 %v433_v58, %v416_v32 }
 0x680   :  { %v436_v59 = vpack.c.bf16 %v435_v41, %v435_v41 }
 0x682   :  { %438 = vrot.lane.b32.xlu0 %v436_v59, %s3040_s5 }
 0x68b   :  { %v381_v60 = vpop.permute.xlu2 %380 }
 0x68c   :  { %v383_v62 = vmul.f32 %v381_v60, %v364_v45 }
 0x68e   :  { %v384_v63 = vpack.c.bf16 %v383_v62, %v383_v62 }
 0x690   :  { %457 = vrot.lane.b32.xlu1 %v384_v63, %s3040_s5  ;;  %v78_v63 = vld [vmem:[%s3448_s0 + $0x28] sm:$0xff] }
 0x6f4   :  { %v439_v0 = vpop.permute.xlu0 %438 }
 0x6f5   :  { %2438 = vmatmul.msk.bf16.vlgmr.msra.gmra.mxu2 %vm128_vm5, %v439_v0  ;;  %2441 = vmatmul.msk.bf16.vlgmr.msrb.gmra.mxu1 %vm128_vm5, %v439_v0 }
 0x6f6   :  { %726 = vmatpush.bf16.msra.mxu2 %v3106_v42  ;;  %855 = vmatpush.bf16.msrb.mxu1 %v3106_v42 }
 0x6fa   :  { %727 = vmatpush.bf16.msra.mxu2 %v3111_v49  ;;  %856 = vmatpush.bf16.msrb.mxu1 %v3111_v49 }
 0x702   :  { %v458_v47 = vpop.permute.xlu1 %457 }
 0x703   :  { %2439 = vmatmul.msk.bf16.vlgmr.msra.gmra.mxu3 %vm128_vm5, %v458_v47 }
 0x704   :  { %778 = vmatpush.bf16.msra.mxu3 %v3084_v7 }
 0x708   :  { %779 = vmatpush.bf16.msra.mxu3 %v3087_v11 }
 0x772   :  { %v523_v3 = vpop.f32.mrf.mxu1 }
 0x773   :  { %v527_v4 = vadd.f32 %v523_v3, %v116_v2  ;;  %v79_v2 = vld [vmem:[%s3448_s0 + $0x30] sm:$0xff]  ;;  %v80_v3 = vld [vmem:[%s3448_s0 + $0x38] sm:$0xff] }
 0x775   :  { %2877 = vtanh.f32 %v527_v4  ;;  %v2442_v17 = vmul.f32 -1.442695, %v527_v4  ;;  %v84_v4 = vpack.c.bf16 %v80_v3, %v79_v2 }
 0x778   :  { %v452_v5 = vpop.f32.mrf.mxu2 }
 0x779   :  { %v453_v10 = vadd.f32 %v3134_v61, %v452_v5 }
 0x77a   :  { %v525_v6 = vpop.f32.mrf.mxu1 }
 0x77b   :  { %v2878_v8 = vpop.eup %2877 }
 0x77c   :  { %550 = vrot.lane.b32.xlu2 %v2878_v8, %s3038_s28 }
 0x780   :  { %v454_v9 = vpop.f32.mrf.mxu2 }
 0x786   :  { %v471_v12 = vpop.f32.mrf.mxu3 }
 0x787   :  { %v475_v14 = vadd.f32 %v471_v12, %v453_v10 }
 0x789   :  { %2879 = vtanh.f32 %v475_v14  ;;  %v2440_v29 = vmul.f32 -1.442695, %v475_v14 }
 0x78a   :  { %2881 = vpow2.f32 %v2442_v17 }
 0x78e   :  { %v473_v15 = vpop.f32.mrf.mxu3 }
 0x78f   :  { %v2880_v16 = vpop.eup %2879 }
 0x790   :  { %498 = vrot.lane.b32.xlu0 %v2880_v16, %s3038_s28  ;;  %v2882_v18 = vpop.eup %2881 }
 0x791   :  { %v531_v19 = vadd.f32 1.0, %v2882_v18 }
 0x793   :  { %2883 = vrcp.f32 %v531_v19  ;;  %v543_v25 = vand.u32 2147483648, %v531_v19  ;;  %vm537_vm9 = vweird.f32 %v531_v19  ;;  %v541_v26 = vand.u32 2147483647, %v531_v19 }
 0x794   :  { %2885 = vpow2.f32 %v2440_v29 }
 0x795   :  { %v544_v28 = vor.u32 1.1754944e-38, %v543_v25  ;;  %vm542_vm11 = vcmp.eq.f32.partialorder %v541_v26, 8.507059e+37 }
 0x799   :  { %v2884_v20 = vpop.eup %2883 }
 0x79a   :  { %v533_v21 = vmul.f32 %v2884_v20, %v531_v19  ;;  %vm538_vm8 = vweird.f32 %v2884_v20  ;;  %v2886_v33 = vpop.eup %2885 }
 0x79b   :  { %vm539_vm10 = vmor %vm537_vm9, %vm538_vm8  ;;  %v479_v34 = vadd.f32 1.0, %v2886_v33 }
 0x79c   :  { %v534_v22 = vsub.f32 1.0, %v533_v21 }
 0x79d   :  { %2887 = vrcp.f32 %v479_v34  ;;  %v491_v43 = vand.u32 2147483648, %v479_v34  ;;  %vm485_vm13 = vweird.f32 %v479_v34  ;;  %v489_v44 = vand.u32 2147483647, %v479_v34 }
 0x79e   :  { %v535_v23 = vmul.f32 %v2884_v20, %v534_v22 }
 0x79f   :  { %v492_v48 = vor.u32 1.1754944e-38, %v491_v43  ;;  %vm490_vm15 = vcmp.eq.f32.partialorder %v489_v44, 8.507059e+37 }
 0x7a0   :  { %v536_v24 = vadd.f32 %v2884_v20, %v535_v23 }
 0x7a2   :  { %v540_v27 = vsel %vm539_vm10, %v2884_v20, %v536_v24 }
 0x7a3   :  { %v545_v31 = vsel %vm542_vm11, %v544_v28, %v540_v27  ;;  %v2888_v35 = vpop.eup %2887 }
 0x7a4   :  { %v481_v36 = vmul.f32 %v2888_v35, %v479_v34  ;;  %vm486_vm12 = vweird.f32 %v2888_v35  ;;  %v548_v54 = vmul.f32 %v545_v31, %v3175_v37  ;;  %v77_v37 = vld [vmem:[%s3448_s0 + $0x20] sm:$0xff]  ;;  %s3041_s0 = smov 112  }
 0x7a5   :  { %vm487_vm14 = vmor %vm485_vm13, %vm486_vm12  ;;  %v83_v0 = vpack.c.bf16 %v78_v63, %v77_v37 }
 0x7a6   :  { %v482_v38 = vsub.f32 1.0, %v481_v36 }
 0x7a7   :  { %2426 = vmatmul.msk.bf16.gmra.mxu0 %vm86_vm0, %v83_v0 }
 0x7a8   :  { %v483_v39 = vmul.f32 %v2888_v35, %v482_v38 }
 0x7aa   :  { %v484_v40 = vadd.f32 %v2888_v35, %v483_v39 }
 0x7ac   :  { %v488_v45 = vsel %vm487_vm14, %v2888_v35, %v484_v40 }
 0x7ad   :  { %v493_v52 = vsel %vm490_vm15, %v492_v48, %v488_v45 }
 0x7ae   :  { %v496_v41 = vmul.f32 %v493_v52, %v3180_v56 }
 0x7b7   :  { %2427 = vmatmul.msk.bf16.gmra.mxu0 %vm86_vm0, %v84_v4 }
 0x7d6   :  { %v551_v30 = vpop.permute.xlu2 %550 }
 0x7d7   :  { %v553_v32 = vmul.f32 %v551_v30, %v545_v31 }
 0x7d9   :  { %555 = vrot.lane.b32.xlu1 %v553_v32, %s3040_s5 }
 0x802   :  { %v499_v51 = vpop.permute.xlu0 %498 }
 0x803   :  { %v501_v53 = vmul.f32 %v499_v51, %v493_v52 }
 0x805   :  { %503 = vrot.lane.b32.xlu2 %v501_v53, %s3040_s5 }
 0x824   :  { %v118_v12 = vpop.f32.mrf.mxu0 }
 0x825   :  { %v119_v17 = vadd.f32 %v3097_v13, %v118_v12 }
 0x82c   :  { %v3236_v14 = vpop.f32.mrf.mxu0 }
 0x834   :  { %v3238_v15 = vpop.f32.mrf.mxu0 }
 0x83c   :  { %v3240_v16 = vpop.f32.mrf.mxu0 }
 0x84b   :  { %v556_v55 = vpop.permute.xlu1 %555 }
 0x84c   :  { %v3202_v57 = vadd.f32 %v556_v55, %v548_v54 }
 0x84e   :  { %2889 = vtanh.f32 %v3202_v57 }
 0x854   :  { %v2890_v58 = vpop.eup %2889 }
 0x855   :  { %561 = vrot.lane.b32.xlu0 %v2890_v58, %s3038_s28 }
 0x85f   :  { %v504_v59 = vpop.permute.xlu2 %503 }
 0x860   :  { %v3207_v60 = vadd.f32 %v504_v59, %v496_v41 }
 0x862   :  { %2891 = vtanh.f32 %v3207_v60 }
 0x868   :  { %v2892_v62 = vpop.eup %2891 }
 0x869   :  { %509 = vrot.lane.b32.xlu1 %v2892_v62, %s3038_s28 }
 0x8c7   :  { %v562_v56 = vpop.permute.xlu0 %561 }
 0x8c8   :  { %v564_v47 = vmul.f32 %v562_v56, %v545_v31 }
 0x8ca   :  { %v565_v1 = vpack.c.bf16 %v564_v47, %v564_v47 }
 0x8cc   :  { %567 = vrot.lane.b32.xlu2 %v565_v1, %s3040_s5 }
 0x8db   :  { %v510_v5 = vpop.permute.xlu1 %509 }
 0x8dc   :  { %v512_v6 = vmul.f32 %v510_v5, %v493_v52 }
 0x8de   :  { %v513_v8 = vpack.c.bf16 %v512_v6, %v512_v6 }
 0x8e0   :  { %586 = vrot.lane.b32.xlu0 %v513_v8, %s3040_s5 }
 0x926   :  { %v568_v9 = vpop.permute.xlu2 %567 }
 0x927   :  { %2443 = vmatmul.msk.bf16.vlgmr.msrb.gmra.mxu2 %vm128_vm5, %v568_v9  ;;  %2446 = vmatmul.msk.bf16.vlgmr.msrb.gmra.mxu0 %vm128_vm5, %v568_v9 }
 0x928   :  { %907 = vmatpush.bf16.msrb.mxu2 %v3084_v7  ;;  %984 = vmatpush.bf16.msrb.mxu0 %v3106_v42 }
 0x92c   :  { %908 = vmatpush.bf16.msrb.mxu2 %v3087_v11  ;;  %985 = vmatpush.bf16.msrb.mxu0 %v3111_v49 }
 0x952   :  { %v587_v10 = vpop.permute.xlu0 %586 }
 0x953   :  { %2444 = vmatmul.msk.bf16.vlgmr.msrb.gmra.mxu3 %vm128_vm5, %v587_v10 }
 0x954   :  { %965 = vmatpush.bf16.msrb.mxu3 %v3108_v46 }
 0x958   :  { %966 = vmatpush.bf16.msrb.mxu3 %v3114_v50 }
 0x9a4   :  { %v652_v18 = vpop.f32.mrf.mxu0 }
 0x9a5   :  { %v656_v19 = vadd.f32 %v652_v18, %v119_v17 }
 0x9a7   :  { %2893 = vtanh.f32 %v656_v19  ;;  %v2447_v29 = vmul.f32 -1.442695, %v656_v19 }
 0x9aa   :  { %v581_v20 = vpop.f32.mrf.mxu2 }
 0x9ab   :  { %v582_v24 = vadd.f32 %v3134_v61, %v581_v20 }
 0x9ac   :  { %v654_v21 = vpop.f32.mrf.mxu0 }
 0x9ad   :  { %v2894_v22 = vpop.eup %2893 }
 0x9ae   :  { %679 = vrot.lane.b32.xlu1 %v2894_v22, %s3038_s28 }
 0x9b2   :  { %v583_v23 = vpop.f32.mrf.mxu2 }
 0x9b3   :  { %v121_v23 = vadd.f32 %v3097_v13, %v3236_v14 }
 0x9d6   :  { %v600_v25 = vpop.f32.mrf.mxu3 }
 0x9d7   :  { %v604_v26 = vadd.f32 %v600_v25, %v582_v24 }
 0x9d9   :  { %2895 = vtanh.f32 %v604_v26  ;;  %v2445_v33 = vmul.f32 -1.442695, %v604_v26 }
 0x9da   :  { %2897 = vpow2.f32 %v2447_v29 }
 0x9de   :  { %v602_v27 = vpop.f32.mrf.mxu3 }
 0x9df   :  { %v2896_v28 = vpop.eup %2895 }
 0x9e0   :  { %627 = vrot.lane.b32.xlu2 %v2896_v28, %s3038_s28  ;;  %v2898_v30 = vpop.eup %2897 }
 0x9e1   :  { %v660_v31 = vadd.f32 1.0, %v2898_v30 }
 0x9e3   :  { %2899 = vrcp.f32 %v660_v31  ;;  %v672_v43 = vand.u32 2147483648, %v660_v31  ;;  %vm666_vm2 = vweird.f32 %v660_v31  ;;  %v670_v44 = vand.u32 2147483647, %v660_v31 }
 0x9e4   :  { %2901 = vpow2.f32 %v2445_v33 }
 0x9e5   :  { %v673_v48 = vor.u32 1.1754944e-38, %v672_v43  ;;  %vm671_vm4 = vcmp.eq.f32.partialorder %v670_v44, 8.507059e+37 }
 0x9e9   :  { %v2900_v32 = vpop.eup %2899 }
 0x9ea   :  { %v662_v34 = vmul.f32 %v2900_v32, %v660_v31  ;;  %v2902_v38 = vpop.eup %2901  ;;  %vm667_vm1 = vweird.f32 %v2900_v32 }
 0x9eb   :  { %v608_v40 = vadd.f32 1.0, %v2902_v38  ;;  %vm668_vm3 = vmor %vm666_vm2, %vm667_vm1 }
 0x9ec   :  { %v663_v35 = vsub.f32 1.0, %v662_v34 }
 0x9ed   :  { %2903 = vrcp.f32 %v608_v40  ;;  %v620_v62 = vand.u32 2147483648, %v608_v40  ;;  %vm614_vm7 = vweird.f32 %v608_v40  ;;  %v618_v37 = vand.u32 2147483647, %v608_v40 }
 0x9ee   :  { %v664_v36 = vmul.f32 %v2900_v32, %v663_v35 }
 0x9ef   :  { %v621_v0 = vor.u32 1.1754944e-38, %v620_v62  ;;  %vm619_vm9 = vcmp.eq.f32.partialorder %v618_v37, 8.507059e+37 }
 0x9f0   :  { %v665_v39 = vadd.f32 %v2900_v32, %v664_v36 }
 0x9f2   :  { %v669_v45 = vsel %vm668_vm3, %v2900_v32, %v665_v39 }
 0x9f3   :  { %v674_v51 = vsel %vm671_vm4, %v673_v48, %v669_v45  ;;  %v2904_v54 = vpop.eup %2903 }
 0x9f4   :  { %v610_v55 = vmul.f32 %v2904_v54, %v608_v40  ;;  %vm615_vm6 = vweird.f32 %v2904_v54  ;;  %v677_v2 = vmul.f32 %v674_v51, %v3202_v57 }
 0x9f5   :  { %vm616_vm8 = vmor %vm614_vm7, %vm615_vm6 }
 0x9f6   :  { %v611_v58 = vsub.f32 1.0, %v610_v55 }
 0x9f8   :  { %v612_v41 = vmul.f32 %v2904_v54, %v611_v58 }
 0x9fa   :  { %v613_v59 = vadd.f32 %v2904_v54, %v612_v41 }
 0x9fc   :  { %v617_v63 = vsel %vm616_vm8, %v2904_v54, %v613_v59 }
 0x9fd   :  { %v622_v47 = vsel %vm619_vm9, %v621_v0, %v617_v63 }
 0x9fe   :  { %v625_v6 = vmul.f32 %v622_v47, %v3207_v60 }
 0xa20   :  { %v680_v52 = vpop.permute.xlu1 %679 }
 0xa21   :  { %v682_v53 = vmul.f32 %v680_v52, %v674_v51 }
 0xa23   :  { %684 = vrot.lane.b32.xlu0 %v682_v53, %s3040_s5 }
 0xa3a   :  { %v628_v56 = vpop.permute.xlu2 %627 }
 0xa3b   :  { %v630_v1 = vmul.f32 %v628_v56, %v622_v47 }
 0xa3d   :  { %632 = vrot.lane.b32.xlu1 %v630_v1, %s3040_s5 }
 0xa95   :  { %v685_v3 = vpop.permute.xlu0 %684 }
 0xa96   :  { %v3249_v4 = vadd.f32 %v685_v3, %v677_v2 }
 0xa98   :  { %2905 = vtanh.f32 %v3249_v4 }
 0xa9e   :  { %v2906_v5 = vpop.eup %2905 }
 0xa9f   :  { %690 = vrot.lane.b32.xlu2 %v2906_v5, %s3038_s28 }
 0xaaf   :  { %v633_v8 = vpop.permute.xlu1 %632 }
 0xab0   :  { %v3254_v9 = vadd.f32 %v633_v8, %v625_v6 }
 0xab2   :  { %2907 = vtanh.f32 %v3254_v9 }
 0xab8   :  { %v2908_v10 = vpop.eup %2907 }
 0xab9   :  { %638 = vrot.lane.b32.xlu0 %v2908_v10, %s3038_s28 }
 0xaf9   :  { %v691_v12 = vpop.permute.xlu2 %690 }
 0xafa   :  { %v693_v57 = vmul.f32 %v691_v12, %v674_v51 }
 0xafc   :  { %v694_v17 = vpack.c.bf16 %v693_v57, %v693_v57 }
 0xafe   :  { %696 = vrot.lane.b32.xlu1 %v694_v17, %s3040_s5 }
 0xb2b   :  { %v639_v18 = vpop.permute.xlu0 %638 }
 0xb2c   :  { %v641_v19 = vmul.f32 %v639_v18, %v622_v47 }
 0xb2e   :  { %v642_v20 = vpack.c.bf16 %v641_v19, %v641_v19 }
 0xb30   :  { %715 = vrot.lane.b32.xlu2 %v642_v20, %s3040_s5 }
 0xb70   :  { %v697_v21 = vpop.permute.xlu1 %696 }
 0xb71   :  { %2448 = vmatmul.msk.bf16.vlgmr.msra.gmra.mxu1 %vm128_vm5, %v697_v21  ;;  %2451 = vmatmul.msk.bf16.vlgmr.msra.gmra.mxu3 %vm128_vm5, %v697_v21  ;;  %v3291_v21 = vld [vmem:[#allocation2 + $0x30] ss:$0 sm:$0xff] }
 0xb72   :  { %1036 = vmatpush.bf16.msra.mxu1 %v3084_v7  ;;  %1113 = vmatpush.bf16.msra.mxu3 %v3106_v42 }
 0xb76   :  { %1037 = vmatpush.bf16.msra.mxu1 %v3087_v11  ;;  %1114 = vmatpush.bf16.msra.mxu3 %v3111_v49 }
 0xb8a   :  { %v716_v60 = vpop.permute.xlu2 %715 }
 0xb8b   :  { %2449 = vmatmul.msk.bf16.vlgmr.msra.gmra.mxu2 %vm128_vm5, %v716_v60  ;;  %v124_v60 = vadd.f32 %v3291_v21, %v3238_v15 }
 0xb8c   :  { %1094 = vmatpush.bf16.msra.mxu2 %v3108_v46 }
 0xb90   :  { %1095 = vmatpush.bf16.msra.mxu2 %v3114_v50 }
 0xbee   :  { %v710_v22 = vpop.f32.mrf.mxu1 }
 0xbef   :  { %v711_v11 = vadd.f32 %v3134_v61, %v710_v22 }
 0xbf4   :  { %v781_v24 = vpop.f32.mrf.mxu3 }
 0xbf5   :  { %v785_v25 = vadd.f32 %v781_v24, %v121_v23 }
 0xbf6   :  { %v712_v7 = vpop.f32.mrf.mxu1 }
 0xbf7   :  { %2909 = vtanh.f32 %v785_v25  ;;  %v2452_v50 = vmul.f32 -1.442695, %v785_v25 }
 0xbfc   :  { %v783_v42 = vpop.f32.mrf.mxu3 }
 0xbfd   :  { %v2910_v26 = vpop.eup %2909 }
 0xbfe   :  { %808 = vrot.lane.b32.xlu0 %v2910_v26, %s3038_s28 }
 0xc0e   :  { %v729_v49 = vpop.f32.mrf.mxu2 }
 0xc0f   :  { %v733_v27 = vadd.f32 %v729_v49, %v711_v11 }
 0xc11   :  { %2911 = vtanh.f32 %v733_v27  ;;  %v2450_v30 = vmul.f32 -1.442695, %v733_v27 }
 0xc12   :  { %2913 = vpow2.f32 %v2452_v50 }
 0xc16   :  { %v731_v46 = vpop.f32.mrf.mxu2 }
 0xc17   :  { %v2912_v28 = vpop.eup %2911 }
 0xc18   :  { %756 = vrot.lane.b32.xlu1 %v2912_v28, %s3038_s28  ;;  %v2914_v13 = vpop.eup %2913 }
 0xc19   :  { %v789_v14 = vadd.f32 1.0, %v2914_v13 }
 0xc1b   :  { %2915 = vrcp.f32 %v789_v14  ;;  %v801_v38 = vand.u32 2147483648, %v789_v14  ;;  %vm795_vm11 = vweird.f32 %v789_v14  ;;  %v799_v39 = vand.u32 2147483647, %v789_v14 }
 0xc1c   :  { %2917 = vpow2.f32 %v2450_v30 }
 0xc1d   :  { %v802_v43 = vor.u32 1.1754944e-38, %v801_v38  ;;  %vm800_vm13 = vcmp.eq.f32.partialorder %v799_v39, 8.507059e+37 }
 0xc21   :  { %v2916_v29 = vpop.eup %2915 }
 0xc22   :  { %v791_v31 = vmul.f32 %v2916_v29, %v789_v14  ;;  %v2918_v34 = vpop.eup %2917  ;;  %vm796_vm10 = vweird.f32 %v2916_v29 }
 0xc23   :  { %v737_v36 = vadd.f32 1.0, %v2918_v34  ;;  %vm797_vm12 = vmor %vm795_vm11, %vm796_vm10 }
 0xc24   :  { %v792_v32 = vsub.f32 1.0, %v791_v31 }
 0xc25   :  { %2919 = vrcp.f32 %v737_v36  ;;  %v749_v58 = vand.u32 2147483648, %v737_v36  ;;  %vm743_vm15 = vweird.f32 %v737_v36  ;;  %v747_v41 = vand.u32 2147483647, %v737_v36 }
 0xc26   :  { %v793_v33 = vmul.f32 %v2916_v29, %v792_v32 }
 0xc27   :  { %v750_v62 = vor.u32 1.1754944e-38, %v749_v58  ;;  %vm748_vm2 = vcmp.eq.f32.partialorder %v747_v41, 8.507059e+37 }
 0xc28   :  { %v794_v35 = vadd.f32 %v2916_v29, %v793_v33 }
 0xc2a   :  { %v798_v40 = vsel %vm797_vm12, %v2916_v29, %v794_v35 }
 0xc2b   :  { %v803_v45 = vsel %vm800_vm13, %v802_v43, %v798_v40  ;;  %v2920_v51 = vpop.eup %2919 }
 0xc2c   :  { %v739_v52 = vmul.f32 %v2920_v51, %v737_v36  ;;  %vm744_vm14 = vweird.f32 %v2920_v51  ;;  %v806_v56 = vmul.f32 %v803_v45, %v3249_v4 }
 0xc2d   :  { %vm745_vm1 = vmor %vm743_vm15, %vm744_vm14 }
 0xc2e   :  { %v740_v53 = vsub.f32 1.0, %v739_v52 }
 0xc30   :  { %v741_v54 = vmul.f32 %v2920_v51, %v740_v53 }
 0xc32   :  { %v742_v55 = vadd.f32 %v2920_v51, %v741_v54 }
 0xc34   :  { %v746_v59 = vsel %vm745_vm1, %v2920_v51, %v742_v55 }
 0xc35   :  { %v751_v63 = vsel %vm748_vm2, %v750_v62, %v746_v59 }
 0xc36   :  { %v754_v3 = vmul.f32 %v751_v63, %v3254_v9 }
 0xc70   :  { %v809_v44 = vpop.permute.xlu0 %808 }
 0xc71   :  { %v811_v48 = vmul.f32 %v809_v44, %v803_v45 }
 0xc73   :  { %813 = vrot.lane.b32.xlu2 %v811_v48, %s3040_s5 }
 0xc8a   :  { %v757_v37 = vpop.permute.xlu1 %756 }
 0xc8b   :  { %v759_v0 = vmul.f32 %v757_v37, %v751_v63 }
 0xc8d   :  { %761 = vrot.lane.b32.xlu0 %v759_v0, %s3040_s5 }
 0xccd   :  { %v814_v47 = vpop.permute.xlu2 %813 }
 0xcce   :  { %v3277_v1 = vadd.f32 %v814_v47, %v806_v56 }
 0xcd0   :  { %2921 = vtanh.f32 %v3277_v1 }
 0xcd6   :  { %v2922_v2 = vpop.eup %2921 }
 0xcd7   :  { %819 = vrot.lane.b32.xlu1 %v2922_v2, %s3038_s28 }
 0xcff   :  { %v762_v5 = vpop.permute.xlu0 %761 }
 0xd00   :  { %v3282_v6 = vadd.f32 %v762_v5, %v754_v3 }
 0xd02   :  { %2923 = vtanh.f32 %v3282_v6 }
 0xd08   :  { %v2924_v8 = vpop.eup %2923 }
 0xd09   :  { %767 = vrot.lane.b32.xlu2 %v2924_v8, %s3038_s28 }
 0xd49   :  { %v820_v10 = vpop.permute.xlu1 %819 }
 0xd4a   :  { %v822_v4 = vmul.f32 %v820_v10, %v803_v45 }
 0xd4c   :  { %v823_v12 = vpack.c.bf16 %v822_v4, %v822_v4 }
 0xd4e   :  { %825 = vrot.lane.b32.xlu0 %v823_v12, %s3040_s5 }
 0xd63   :  { %v768_v57 = vpop.permute.xlu2 %767 }
 0xd64   :  { %v770_v17 = vmul.f32 %v768_v57, %v751_v63 }
 0xd66   :  { %v771_v18 = vpack.c.bf16 %v770_v17, %v770_v17  ;;  %v126_v17 = vadd.f32 %v3291_v21, %v3240_v16 }
 0xd68   :  { %844 = vrot.lane.b32.xlu1 %v771_v18, %s3040_s5 }
 0xdc0   :  { %v826_v19 = vpop.permute.xlu0 %825 }
 0xdc1   :  { %2453 = vmatmul.msk.bf16.vlgmr.msra.gmra.mxu0 %vm128_vm5, %v826_v19  ;;  %2456 = vmatmul.msk.bf16.vlgmr.msrb.gmra.mxu2 %vm128_vm5, %v826_v19 }
 0xdda   :  { %v845_v9 = vpop.permute.xlu1 %844 }
 0xddb   :  { %2454 = vmatmul.msk.bf16.vlgmr.msrb.gmra.mxu1 %vm128_vm5, %v845_v9 }
 0xe3e   :  { %v839_v20 = vpop.f32.mrf.mxu0 }
 0xe3f   :  { %v840_v42 = vadd.f32 %v3134_v61, %v839_v20 }
 0xe44   :  { %v910_v22 = vpop.f32.mrf.mxu2 }
 0xe45   :  { %v914_v23 = vadd.f32 %v910_v22, %v124_v60 }
 0xe46   :  { %v841_v24 = vpop.f32.mrf.mxu0 }
 0xe47   :  { %2925 = vtanh.f32 %v914_v23  ;;  %v2457_v46 = vmul.f32 -1.442695, %v914_v23  ;;  %v3318_v23 = vld [vmem:[#allocation2 + $0x78] ss:$0 sm:$0xff] }
 0xe4c   :  { %v912_v25 = vpop.f32.mrf.mxu2 }
 0xe4d   :  { %v2926_v7 = vpop.eup %2925 }
 0xe4e   :  { %937 = vrot.lane.b32.xlu2 %v2926_v7, %s3038_s28 }
 0xe58   :  { %v858_v26 = vpop.f32.mrf.mxu1 }
 0xe59   :  { %v862_v11 = vadd.f32 %v858_v26, %v840_v42 }
 0xe5b   :  { %2927 = vtanh.f32 %v862_v11  ;;  %v2455_v34 = vmul.f32 -1.442695, %v862_v11 }
 0xe5c   :  { %2929 = vpow2.f32 %v2457_v46 }
 0xe60   :  { %v860_v49 = vpop.f32.mrf.mxu1 }
 0xe61   :  { %v2928_v27 = vpop.eup %2927 }
 0xe62   :  { %885 = vrot.lane.b32.xlu0 %v2928_v27, %s3038_s28  ;;  %v2930_v15 = vpop.eup %2929 }
 0xe63   :  { %v918_v28 = vadd.f32 1.0, %v2930_v15 }
 0xe65   :  { %2931 = vrcp.f32 %v918_v28  ;;  %v930_v31 = vand.u32 2147483648, %v918_v28  ;;  %vm924_vm4 = vweird.f32 %v918_v28  ;;  %v928_v61 = vand.u32 2147483647, %v918_v28 }
 0xe66   :  { %2933 = vpow2.f32 %v2455_v34 }
 0xe67   :  { %v931_v33 = vor.u32 1.1754944e-38, %v930_v31  ;;  %vm929_vm7 = vcmp.eq.f32.partialorder %v928_v61, 8.507059e+37 }
 0xe6b   :  { %v2932_v50 = vpop.eup %2931 }
 0xe6c   :  { %v920_v13 = vmul.f32 %v2932_v50, %v918_v28  ;;  %vm925_vm3 = vweird.f32 %v2932_v50  ;;  %v2934_v39 = vpop.eup %2933 }
 0xe6d   :  { %vm926_vm6 = vmor %vm924_vm4, %vm925_vm3  ;;  %v866_v40 = vadd.f32 1.0, %v2934_v39 }
 0xe6e   :  { %v921_v14 = vsub.f32 1.0, %v920_v13 }
 0xe6f   :  { %2935 = vrcp.f32 %v866_v40  ;;  %v878_v52 = vand.u32 2147483648, %v866_v40  ;;  %vm872_vm9 = vweird.f32 %v866_v40  ;;  %v876_v53 = vand.u32 2147483647, %v866_v40 }
 0xe70   :  { %v922_v29 = vmul.f32 %v2932_v50, %v921_v14 }
 0xe71   :  { %v879_v55 = vor.u32 1.1754944e-38, %v878_v52  ;;  %vm877_vm11 = vcmp.eq.f32.partialorder %v876_v53, 8.507059e+37 }
 0xe72   :  { %v923_v30 = vadd.f32 %v2932_v50, %v922_v29 }
 0xe74   :  { %v927_v32 = vsel %vm926_vm6, %v2932_v50, %v923_v30 }
 0xe75   :  { %v932_v35 = vsel %vm929_vm7, %v931_v33, %v927_v32  ;;  %v2936_v43 = vpop.eup %2935 }
 0xe76   :  { %v868_v44 = vmul.f32 %v2936_v43, %v866_v40  ;;  %vm873_vm8 = vweird.f32 %v2936_v43  ;;  %v935_v62 = vmul.f32 %v932_v35, %v3277_v1 }
 0xe77   :  { %vm874_vm10 = vmor %vm872_vm9, %vm873_vm8 }
 0xe78   :  { %v869_v45 = vsub.f32 1.0, %v868_v44 }
 0xe7a   :  { %v870_v48 = vmul.f32 %v2936_v43, %v869_v45 }
 0xe7c   :  { %v871_v51 = vadd.f32 %v2936_v43, %v870_v48 }
 0xe7e   :  { %v875_v54 = vsel %vm874_vm10, %v2936_v43, %v871_v51  ;;  %vm1221_vm10 = vcmask 64512  }
 0xe7f   :  { %v880_v41 = vsel %vm877_vm11, %v879_v55, %v875_v54 }
 0xe80   :  { %v883_v56 = vmul.f32 %v880_v41, %v3282_v6 }
 0xea8   :  { %v938_v36 = vpop.permute.xlu2 %937 }
 0xea9   :  { %v940_v38 = vmul.f32 %v938_v36, %v932_v35 }
 0xeab   :  { %942 = vrot.lane.b32.xlu1 %v940_v38, %s3040_s5 }
 0xed4   :  { %v886_v58 = vpop.permute.xlu0 %885 }
 0xed5   :  { %v888_v59 = vmul.f32 %v886_v58, %v880_v41 }
 0xed7   :  { %890 = vrot.lane.b32.xlu2 %v888_v59, %s3040_s5 }
 0xf1d   :  { %v943_v37 = vpop.permute.xlu1 %942 }
 0xf1e   :  { %v3301_v63 = vadd.f32 %v943_v37, %v935_v62 }
 0xf20   :  { %2937 = vtanh.f32 %v3301_v63 }
 0xf26   :  { %v2938_v0 = vpop.eup %2937 }
 0xf27   :  { %948 = vrot.lane.b32.xlu0 %v2938_v0, %s3038_s28 }
 0xf31   :  { %v891_v47 = vpop.permute.xlu2 %890 }
 0xf32   :  { %v3306_v2 = vadd.f32 %v891_v47, %v883_v56 }
 0xf34   :  { %2939 = vtanh.f32 %v3306_v2 }
 0xf3a   :  { %v2940_v3 = vpop.eup %2939 }
 0xf3b   :  { %896 = vrot.lane.b32.xlu1 %v2940_v3, %s3038_s28 }
 0xf99   :  { %v949_v5 = vpop.permute.xlu0 %948 }
 0xf9a   :  { %v951_v1 = vmul.f32 %v949_v5, %v932_v35 }
 0xf9c   :  { %v952_v8 = vpack.c.bf16 %v951_v1, %v951_v1 }
 0xf9e   :  { %954 = vrot.lane.b32.xlu2 %v952_v8, %s3040_s5 }
 0xfad   :  { %v897_v10 = vpop.permute.xlu1 %896 }
 0xfae   :  { %v899_v4 = vmul.f32 %v897_v10, %v880_v41 }
 0xfb0   :  { %v900_v12 = vpack.c.bf16 %v899_v4, %v899_v4 }
 0xfb2   :  { %973 = vrot.lane.b32.xlu0 %v900_v12, %s3040_s5 }
 0xff8   :  { %v955_v57 = vpop.permute.xlu2 %954 }
 0xff9   :  { %2458 = vmatmul.msk.bf16.vlgmr.msrb.gmra.mxu3 %vm128_vm5, %v955_v57  ;;  %2461 = vmatmul.msk.bf16.vlgmr.msra.gmra.mxu1 %vm128_vm5, %v955_v57 }
0x1024   :  { %v974_v6 = vpop.permute.xlu0 %973 }
0x1025   :  { %2459 = vmatmul.msk.bf16.vlgmr.msrb.gmra.mxu0 %vm128_vm5, %v974_v6 }
0x1076   :  { %v1039_v18 = vpop.f32.mrf.mxu1 }
0x1077   :  { %v1043_v19 = vadd.f32 %v1039_v18, %v126_v17 }
0x1079   :  { %2941 = vtanh.f32 %v1043_v19  ;;  %v2462_v16 = vmul.f32 -1.442695, %v1043_v19 }
0x107c   :  { %v968_v9 = vpop.f32.mrf.mxu3 }
0x107d   :  { %v969_v24 = vadd.f32 %v3318_v23, %v968_v9 }
0x107e   :  { %v1041_v20 = vpop.f32.mrf.mxu1 }
0x107f   :  { %v2942_v60 = vpop.eup %2941 }
0x1080   :  { %1066 = vrot.lane.b32.xlu1 %v2942_v60, %s3038_s28 }
0x1084   :  { %v970_v22 = vpop.f32.mrf.mxu3 }
0x10a2   :  { %v987_v25 = vpop.f32.mrf.mxu0 }
0x10a3   :  { %v991_v7 = vadd.f32 %v987_v25, %v969_v24 }
0x10a5   :  { %2943 = vtanh.f32 %v991_v7  ;;  %v2460_v49 = vmul.f32 -1.442695, %v991_v7 }
0x10a6   :  { %2945 = vpow2.f32 %v2462_v16 }
0x10aa   :  { %v989_v42 = vpop.f32.mrf.mxu0 }
0x10ab   :  { %v2944_v26 = vpop.eup %2943 }
0x10ac   :  { %1014 = vrot.lane.b32.xlu2 %v2944_v26, %s3038_s28  ;;  %v2946_v21 = vpop.eup %2945 }
0x10ad   :  { %v1047_v11 = vadd.f32 1.0, %v2946_v21 }
0x10af   :  { %2947 = vrcp.f32 %v1047_v11  ;;  %v1059_v29 = vand.u32 2147483648, %v1047_v11  ;;  %vm1053_vm13 = vweird.f32 %v1047_v11  ;;  %v1057_v30 = vand.u32 2147483647, %v1047_v11 }
0x10b0   :  { %2949 = vpow2.f32 %v2460_v49 }
0x10b1   :  { %v1060_v32 = vor.u32 1.1754944e-38, %v1059_v29  ;;  %vm1058_vm15 = vcmp.eq.f32.partialorder %v1057_v30, 8.507059e+37  ;;  %v1158_v29 = vld [vmem:[#allocation2 + $0x80] sm:$0xff] }
0x10b5   :  { %v2948_v27 = vpop.eup %2947 }
0x10b6   :  { %v1049_v46 = vmul.f32 %v2948_v27, %v1047_v11  ;;  %v2950_v15 = vpop.eup %2949  ;;  %vm1054_vm12 = vweird.f32 %v2948_v27 }
0x10b7   :  { %v995_v50 = vadd.f32 1.0, %v2950_v15  ;;  %vm1055_vm14 = vmor %vm1053_vm13, %vm1054_vm12 }
0x10b8   :  { %v1050_v28 = vsub.f32 1.0, %v1049_v46 }
0x10b9   :  { %2951 = vrcp.f32 %v995_v50  ;;  %v1007_v43 = vand.u32 2147483648, %v995_v50  ;;  %vm1001_vm2 = vweird.f32 %v995_v50  ;;  %v1005_v44 = vand.u32 2147483647, %v995_v50 }
0x10ba   :  { %v1051_v13 = vmul.f32 %v2948_v27, %v1050_v28 }
0x10bb   :  { %v1008_v48 = vor.u32 1.1754944e-38, %v1007_v43  ;;  %vm1006_vm4 = vcmp.eq.f32.partialorder %v1005_v44, 8.507059e+37 }
0x10bc   :  { %v1052_v14 = vadd.f32 %v2948_v27, %v1051_v13  ;;  %v1160_v13 = vld [vmem:[#allocation2 + $0x90] sm:$0xff] }
0x10be   :  { %v1056_v31 = vsel %vm1055_vm14, %v2948_v27, %v1052_v14  ;;  %v1159_v14 = vld [vmem:[#allocation2 + $0x88] sm:$0xff] }
0x10bf   :  { %v2952_v61 = vpop.eup %2951  ;;  %v1061_v34 = vsel %vm1058_vm15, %v1060_v32, %v1056_v31  ;;  %v2828_v32 = vld [vmem:[#allocation2 + $0xa0] ss:$0 sm:$0xff] }
0x10c0   :  { %v997_v36 = vmul.f32 %v2952_v61, %v995_v50  ;;  %vm1002_vm1 = vweird.f32 %v2952_v61  ;;  %v1064_v54 = vmul.f32 %v1061_v34, %v3301_v63  ;;  %v1161_v50 = vld [vmem:[#allocation2 + $0x98] sm:$0xff] }
0x10c1   :  { %vm1003_vm3 = vmor %vm1001_vm2, %vm1002_vm1  ;;  %1181 = vmatpush.msra.mxu0 %v1161_v50  ;;  %v2831_v50 = vld [vmem:[#allocation2 + $0xd8] ss:$0 sm:$0xff] }
0x10c2   :  { %v998_v38 = vsub.f32 1.0, %v997_v36 }
0x10c3   :  { %1182 = vmatpush.msra.mxu0 %v1160_v13 }
0x10c4   :  { %v999_v39 = vmul.f32 %v2952_v61, %v998_v38 }
0x10c5   :  { %1183 = vmatpush.msra.mxu0 %v1159_v14 }
0x10c6   :  { %v1000_v40 = vadd.f32 %v2952_v61, %v999_v39 }
0x10c7   :  { %1184 = vmatpush.msra.mxu0 %v1158_v29  ;;  %v2541_v29 = vld [vmem:[#allocation4 + $0x80] sm:$0xf] }
0x10c8   :  { %v1004_v45 = vsel %vm1003_vm3, %v2952_v61, %v1000_v40 }
0x10c9   :  { %v1009_v52 = vsel %vm1006_vm4, %v1008_v48, %v1004_v45 }
0x10ca   :  { %v1012_v59 = vmul.f32 %v1009_v52, %v3306_v2 }
0x10f2   :  { %v1067_v33 = vpop.permute.xlu1 %1066 }
0x10f3   :  { %v1069_v35 = vmul.f32 %v1067_v33, %v1061_v34 }
0x10f5   :  { %1071 = vrot.lane.b32.xlu0 %v1069_v35, %s3040_s5 }
0x1106   :  { %v1015_v51 = vpop.permute.xlu2 %1014 }
0x1107   :  { %v1017_v53 = vmul.f32 %v1015_v51, %v1009_v52 }
0x1109   :  { %1019 = vrot.lane.b32.xlu1 %v1017_v53, %s3040_s5 }
0x1167   :  { %v1072_v55 = vpop.permute.xlu0 %1071 }
0x1168   :  { %v1074_v58 = vadd.f32 %v1072_v55, %v1064_v54 }
0x116a   :  { %2953 = vtanh.f32 %v1074_v58 }
0x1170   :  { %v2954_v41 = vpop.eup %2953 }
0x1171   :  { %1077 = vrot.lane.b32.xlu2 %v2954_v41, %s3038_s28 }
0x117b   :  { %v1020_v62 = vpop.permute.xlu1 %1019 }
0x117c   :  { %v1022_v37 = vadd.f32 %v1020_v62, %v1012_v59 }
0x117e   :  { %2955 = vtanh.f32 %v1022_v37 }
0x1184   :  { %v2956_v0 = vpop.eup %2955 }
0x1185   :  { %1025 = vrot.lane.b32.xlu0 %v2956_v0, %s3038_s28 }
0x11cb   :  { %v1078_v56 = vpop.permute.xlu2 %1077 }
0x11cc   :  { %v1080_v47 = vmul.f32 %v1078_v56, %v1061_v34  ;;  %v1190_v56 = vld [vmem:[#allocation2 + $0xb0] sm:$0xff] }
0x11ce   :  { %v1081_v3 = vpack.c.bf16 %v1080_v47, %v1080_v47 }
0x11d0   :  { %1083 = vrot.lane.b32.xlu1 %v1081_v3, %s3040_s5 }
0x11f7   :  { %v1026_v63 = vpop.permute.xlu0 %1025 }
0x11f8   :  { %v1028_v5 = vmul.f32 %v1026_v63, %v1009_v52 }
0x11fa   :  { %v1029_v1 = vpack.c.bf16 %v1028_v5, %v1028_v5 }
0x11fc   :  { %1102 = vrot.lane.b32.xlu2 %v1029_v1, %s3040_s5 }
0x1242   :  { %v1084_v8 = vpop.permute.xlu1 %1083 }
0x1243   :  { %2463 = vmatmul.msk.bf16.vlgmr.msra.gmra.mxu2 %vm128_vm5, %v1084_v8 }
0x1256   :  { %v1103_v2 = vpop.permute.xlu2 %1102 }
0x1257   :  { %2464 = vmatmul.msk.bf16.vlgmr.msra.gmra.mxu3 %vm128_vm5, %v1103_v2 }
0x12c6   :  { %v1097_v10 = vpop.f32.mrf.mxu2 }
0x12c7   :  { %v1098_v12 = vadd.f32 %v3318_v23, %v1097_v10  ;;  %v1189_v10 = vld [vmem:[#allocation2 + $0xa8] sm:$0xff] }
0x12ce   :  { %v1099_v4 = vpop.f32.mrf.mxu2 }
0x12cf   :  { %v1192_v4 = vld [vmem:[#allocation2 + $0xc0] sm:$0xff] }
0x12da   :  { %v1116_v57 = vpop.f32.mrf.mxu3 }
0x12db   :  { %v1120_v6 = vadd.f32 %v1116_v57, %v1098_v12  ;;  %v1191_v12 = vld [vmem:[#allocation2 + $0xb8] sm:$0xff] }
0x12dd   :  { %2957 = vtanh.f32 %v1120_v6  ;;  %v2465_v19 = vmul.f32 -1.442695, %v1120_v6 }
0x12df   :  { %2959 = vpow2.f32 %v2465_v19 }
0x12e2   :  { %v1118_v17 = vpop.f32.mrf.mxu3 }
0x12e3   :  { %v2958_v18 = vpop.eup %2957 }
0x12e4   :  { %1143 = vrot.lane.b32.xlu0 %v2958_v18, %s3038_s28  ;;  %v2829_v18 = vld [vmem:[#allocation2 + $0xc8] ss:$0 sm:$0xff] }
0x12e5   :  { %v2960_v9 = vpop.eup %2959 }
0x12e6   :  { %v1124_v20 = vadd.f32 1.0, %v2960_v9 }
0x12e8   :  { %2961 = vrcp.f32 %v1124_v20  ;;  %v1136_v42 = vand.u32 2147483648, %v1124_v20  ;;  %vm1130_vm7 = vweird.f32 %v1124_v20  ;;  %v1134_v23 = vand.u32 2147483647, %v1124_v20 }
0x12ea   :  { %v1137_v16 = vor.u32 1.1754944e-38, %v1136_v42  ;;  %vm1135_vm9 = vcmp.eq.f32.partialorder %v1134_v23, 8.507059e+37 }
0x12ee   :  { %v2962_v60 = vpop.eup %2961 }
0x12ef   :  { %v1126_v22 = vmul.f32 %v2962_v60, %v1124_v20  ;;  %vm1131_vm6 = vweird.f32 %v2962_v60 }
0x12f0   :  { %vm1132_vm8 = vmor %vm1130_vm7, %vm1131_vm6 }
0x12f1   :  { %v1127_v24 = vsub.f32 1.0, %v1126_v22 }
0x12f3   :  { %v1128_v25 = vmul.f32 %v2962_v60, %v1127_v24 }
0x12f5   :  { %v1129_v7 = vadd.f32 %v2962_v60, %v1128_v25 }
0x12f7   :  { %v1133_v26 = vsel %vm1132_vm8, %v2962_v60, %v1129_v7  ;;  %v3045_v7 = vmov 32.0  }
0x12f8   :  { %v1138_v11 = vsel %vm1135_vm9, %v1137_v16, %v1133_v26 }
0x12f9   :  { %v1141_v27 = vmul.f32 %v1138_v11, %v1022_v37 }
0x1356   :  { %v1144_v21 = vpop.permute.xlu0 %1143 }
0x1357   :  { %v1146_v49 = vmul.f32 %v1144_v21, %v1138_v11 }
0x1359   :  { %1148 = vrot.lane.b32.xlu1 %v1146_v49, %s3040_s5 }
0x13cb   :  { %v1149_v46 = vpop.permute.xlu1 %1148 }
0x13cc   :  { %v1151_v15 = vadd.f32 %v1149_v46, %v1141_v27 }
0x13ce   :  { %2963 = vtanh.f32 %v1151_v15 }
0x13d4   :  { %v2964_v28 = vpop.eup %2963 }
0x13d5   :  { %1154 = vrot.lane.b32.xlu2 %v2964_v28, %s3038_s28  ;;  %v2830_v28 = vld [vmem:[#allocation2 + $0xd0] ss:$0 sm:$0xff] }
0x142f   :  { %v1155_v30 = vpop.permute.xlu2 %1154 }
0x1430   :  { %v3336_v31 = vmul.f32 %v1155_v30, %v1138_v11  ;;  %v2773_v30 = vld [vmem:[#allocation4 + $0xbc] sm:$0xf0] }
0x1432   :  { %1165 = vrot.lane.b32.xlu0 %v3336_v31, %s3040_s5 }
0x14a4   :  { %v1166_v61 = vpop.permute.xlu0 %1165 }
0x14a5   :  { %2466 = vmatmul.msk.f32.vlgmr.msra.gmra.mxu0 %vm128_vm5, %v1166_v61 }
0x1522   :  { %v1186_v33 = vpop.f32.mrf.mxu0 }
0x1523   :  { %v1187_v34 = vadd.f32 %v2828_v32, %v1186_v33  ;;  %v2542_v32 = vor.u32 %v2773_v30, %v2541_v29  ;;  %v2543_v33 = vld [vmem:[#allocation4 + $0xc0] sm:$0xf0]  ;;  %v2573_v30 = vld [vmem:[#allocation4 + $0xa0] sm:$0xf] }
0x1525   :  { %1259 = vrot.lane.b32.xlu0 %v1187_v34, %s3041_s0  ;;  %1261 = vrot.lane.b32.xlu2 %v1187_v34, %s3042_s18 }
0x1526   :  { %1194 = vrot.lane.b32.xlu1 %v1187_v34, %s3043_s19 }
0x157f   :  { %v1262_v35 = vpop.permute.xlu2 %1261 }
0x1580   :  { %2470 = vmatpush.xpose.msk.msrb.mxu3 %vm86_vm0, %v1262_v35  ;;  %v2774_v35 = vld [vmem:[#allocation4 + $0xc4] sm:$0xf0] }
0x1584   :  { %1703 = vmatpush.bf16.msra.mxu3 %v2542_v32  ;;  %v2575_v32 = vld [vmem:[#allocation4 + $0xe0] sm:$0xf0] }
0x1597   :  { %v1260_v36 = vpop.permute.xlu0 %1259 }
0x1598   :  { %v1195_v38 = vpop.permute.xlu1 %1194  ;;  %2471 = vmatmul.msk.f32.vlgmr.msrb.gmra.mxu3 %vm86_vm0, %v1260_v36 }
0x1599   :  { %2467 = vmatpush.xpose.msk.msrb.mxu1 %vm86_vm0, %v1195_v38 }
0x159c   :  { %2468 = vmatmul.msk.f32.vlgmr.msrb.gmra.mxu1 %vm86_vm0, %v1187_v34 }
0x159d   :  { %1342 = vmatpush.msra.mxu1 %v1192_v4 }
0x159f   :  { %1343 = vmatpush.msra.mxu1 %v1191_v12 }
0x1619   :  { %v1217_v39 = vpop.f32.mrf.mxu1 }
0x161a   :  { %v1220_v40 = vmul.f32 0.25, %v1217_v39 }
0x161b   :  { %v1284_v43 = vpop.f32.mrf.mxu3 }
0x161c   :  { %v1287_v44 = vmul.f32 0.25, %v1284_v43  ;;  %v1222_v45 = vsel %vm1221_vm10, %v1220_v40, -inf  ;;  %v2551_v43 = vld [vmem:[#allocation4 + $0xc8] sm:$0xf0] }
0x161d   :  { %1223 = vmax.xlane.f32.xlu1 %v1222_v45 }
0x161e   :  { %v1288_v48 = vsel %vm1221_vm10, %v1287_v44, -inf }
0x161f   :  { %1289 = vmax.xlane.f32.xlu2 %v1288_v48  ;;  %v2757_v48 = vld [vmem:[#allocation4 + $0x3c] sm:$0xf0] }
0x1637   :  { %1233 = vrot.lane.b32.xlu2 %v1187_v34, %s3038_s28 }
0x1690   :  { %v1224_v51 = vpop.xlane.xlu1 %1223 }
0x1691   :  { %v1225_v52 = vsub.f32 %v1220_v40, %v1224_v51  ;;  %v2766_v40 = vld [vmem:[#allocation4 + $0x8c] sm:$0xf]  ;;  %v2749_v51 = vld [vmem:[#allocation4 + $0x4] sm:$0xf] }
0x1692   :  { %v1290_v53 = vpop.xlane.xlu2 %1289  ;;  %v2554_v45 = vor.u32 %v2766_v40, %v2551_v43  ;;  %v2509_v40 = vld [vmem:[#allocation4 + $0x20] sm:$0xf] }
0x1693   :  { %v1226_v54 = vmul.f32 1.442695, %v1225_v52  ;;  %v1291_v55 = vsub.f32 %v1287_v44, %v1290_v53  ;;  %v2477_v44 = vld [vmem:[#allocation4] sm:$0xf]  ;;  %v2479_v52 = vld [vmem:[#allocation4 + $0x40] sm:$0xf0] }
0x1694   :  { %v2761_v43 = vld [vmem:[#allocation4 + $0x5c] sm:$0xf0] }
0x1695   :  { %2965 = vpow2.f32 %v1226_v54  ;;  %v1292_v58 = vmul.f32 1.442695, %v1291_v55  ;;  %v2478_v54 = vor.u32 %v2757_v48, %v2477_v44  ;;  %v2482_v55 = vor.u32 %v2749_v51, %v2479_v52  ;;  %v2753_v51 = vld [vmem:[#allocation4 + $0x24] sm:$0xf] }
0x1696   :  { %v2511_v52 = vld [vmem:[#allocation4 + $0x60] sm:$0xf0] }
0x1697   :  { %2967 = vpow2.f32 %v1292_v58  ;;  %v2485_v58 = vld [vmem:[#allocation4 + $0x8] sm:$0xf]  ;;  %1704 = vmatpush.bf16.msra.mxu3 %v2478_v54 }
0x1698   :  { %v2762_v54 = vld [vmem:[#allocation4 + $0x64] sm:$0xf0] }
0x169a   :  { %v1234_v41 = vpop.permute.xlu2 %1233 }
0x169b   :  { %v2966_v59 = vpop.eup %2965  ;;  %1254 = vmatpush.msrb.mxu2 %v1234_v41  ;;  %v2758_v41 = vld [vmem:[#allocation4 + $0x44] sm:$0xf0] }
0x169c   :  { %v1228_v62 = vsel %vm1221_vm10, %v2966_v59, 0.0 }
0x169d   :  { %v2968_v37 = vpop.eup %2967  ;;  %1229 = vadd.xlane.f32.xlu0 %v1228_v62  ;;  %1365 = vmatpush.msra.mxu2 %v1190_v56  ;;  %v2750_v62 = vld [vmem:[#allocation4 + $0xc] sm:$0xf] }
0x169e   :  { %v1294_v0 = vsel %vm1221_vm10, %v2968_v37, 0.0 }
0x169f   :  { %1295 = vadd.xlane.f32.xlu1 %v1294_v0  ;;  %1366 = vmatpush.msra.mxu2 %v1189_v10 }
0x16b1   :  { %1299 = vrot.lane.b32.xlu0 %v1187_v34, %s3044_s20  ;;  %v2549_v34 = vld [vmem:[#allocation4 + $0x88] sm:$0xf] }
0x16b2   :  { %v2550_v39 = vor.u32 %v2774_v35, %v2549_v34  ;;  %v2778_v34 = vld [vmem:[#allocation4 + $0xe4] sm:$0xf0]  ;;  %v2770_v35 = vld [vmem:[#allocation4 + $0xac] sm:$0xf] }
0x16b4   :  { %1729 = vmatpush.bf16.msrb.mxu1 %v2550_v39 }
0x1710   :  { %v1230_v47 = vpop.xlane.xlu0 %1229 }
0x1711   :  { %2969 = vrcp.f32 %v1230_v47 }
0x1712   :  { %v1296_v63 = vpop.xlane.xlu1 %1295 }
0x1713   :  { %2971 = vrcp.f32 %v1296_v63 }
0x1714   :  { %2973 = vrcp.f32 %v3045_v7  ;;  %v2768_v7 = vld [vmem:[#allocation4 + $0x9c] sm:$0xf] }
0x1717   :  { %v2970_v3 = vpop.eup %2969 }
0x1718   :  { %v1232_v5 = vmul.f32 %v2970_v3, %v2966_v59  ;;  %v2486_v59 = vor.u32 %v2758_v41, %v2485_v58  ;;  %v2519_v58 = vld [vmem:[#allocation4 + $0x68] sm:$0xf0]  ;;  %v2510_v41 = vor.u32 %v2761_v43, %v2509_v40  ;;  %v2799_v43 = vld [vmem:[#allocation4 + $0x194] sm:$0xf] }
0x1719   :  { %v2972_v1 = vpop.eup %2971 }
0x171a   :  { %2469 = vmatmul.msk.f32.vlgmr.msrb.gmra.mxu2 %vm1221_vm10, %v1232_v5  ;;  %v1298_v8 = vmul.f32 %v2972_v1, %v2968_v37  ;;  %v2974_v42 = vpop.eup %2973  ;;  %v2487_v37 = vld [vmem:[#allocation4 + $0x48] sm:$0xf0]  ;;  %1730 = vmatpush.bf16.msrb.mxu1 %v2486_v59  ;;  %v2514_v59 = vor.u32 %v2753_v51, %v2511_v52  ;;  %v2709_v51 = vld [vmem:[#allocation4 + $0x198] sm:$0xf] }
0x171b   :  { %v1389_v23 = vmul.f32 32.0, %v2974_v42  ;;  %1742 = vmatpush.bf16.msrb.mxu2 %v2554_v45  ;;  %v2490_v0 = vor.u32 %v2750_v62, %v2487_v37 }
0x171d   :  { %v1390_v26 = vsub.f32 1.0, %v1389_v23  ;;  %v2493_v23 = vld [vmem:[#allocation4 + $0x10] sm:$0xf] }
0x171f   :  { %v1391_v16 = vmul.f32 %v2974_v42, %v1390_v26  ;;  %1743 = vmatpush.bf16.msrb.mxu2 %v2490_v0  ;;  %v2589_v0 = vld [vmem:[#allocation4 + $0xb0] sm:$0xf] }
0x1721   :  { %v1392_v21 = vadd.f32 %v2974_v42, %v1391_v16  ;;  %v2759_v16 = vld [vmem:[#allocation4 + $0x4c] sm:$0xf0] }
0x1723   :  { %v1300_v2 = vpop.permute.xlu0 %1299 }
0x1724   :  { %1320 = vmatpush.msrb.mxu0 %v1300_v2 }
0x1725   :  { %2472 = vmatmul.msk.f32.vlgmr.msrb.gmra.mxu0 %vm1221_vm10, %v1298_v8 }
0x179d   :  { %v1256_v57 = vpop.f32.mrf.mxu2 }
0x179e   :  { %2474 = vmatmul.msk.f32.vlgmr.msra.gmra.mxu2 %vm86_vm0, %v1256_v57 }
0x17a2   :  { %v1322_v6 = vpop.f32.mrf.mxu0 }
0x17a3   :  { %2473 = vmatmul.msk.f32.vlgmr.msra.gmra.mxu1 %vm86_vm0, %v1322_v6  ;;  %vm1393_vm0 = vweird.f32 %v2974_v42 }
0x17a4   :  { %v3359_v11 = vsel %vm1393_vm0, %v2974_v42, %v1392_v21  ;;  %v2567_v42 = vld [vmem:[#allocation4 + $0xd8] sm:$0xf0]  ;;  %v2751_v21 = vld [vmem:[#allocation4 + $0x14] sm:$0xf] }
0x17a5   :  { %v2570_v26 = vor.u32 %v2768_v7, %v2567_v42 }
0x17a7   :  { %1794 = vmatpush.bf16.msra.mxu2 %v2570_v26  ;;  %v2687_v26 = vld [vmem:[#allocation4 + $0x1c0] sm:$0xf0] }
0x1820   :  { %v1345_v17 = vpop.f32.mrf.mxu1 }
0x1821   :  { %v1368_v19 = vpop.f32.mrf.mxu2 }
0x1822   :  { %v1369_v9 = vadd.f32 %v1368_v19, %v1345_v17  ;;  %v2557_v17 = vld [vmem:[#allocation4 + $0x90] sm:$0xf]  ;;  %v2767_v19 = vld [vmem:[#allocation4 + $0x94] sm:$0xf] }
0x1824   :  { %v1373_v20 = vadd.f32 %v2829_v18, %v1369_v9  ;;  %v2775_v18 = vld [vmem:[#allocation4 + $0xcc] sm:$0xf0] }
0x1825   :  { %v2558_v9 = vor.u32 %v2775_v18, %v2557_v17  ;;  %v2755_v18 = vld [vmem:[#allocation4 + $0x34] sm:$0xf] }
0x1826   :  { %1375 = vrot.lane.b32.xlu1 %v1373_v20, %s3043_s19  ;;  %v2559_v20 = vld [vmem:[#allocation4 + $0xd0] sm:$0xf0] }
0x1827   :  { %1755 = vmatpush.bf16.msrb.mxu3 %v2558_v9  ;;  %v2533_v9 = vld [vmem:[#allocation4 + $0x38] sm:$0xf] }
0x1898   :  { %v1376_v60 = vpop.permute.xlu1 %1375 }
0x1899   :  { %v1378_v22 = vadd.f32 %v1376_v60, %v3336_v31  ;;  %v2765_v31 = vld [vmem:[#allocation4 + $0x84] sm:$0xf]  ;;  %v2565_v60 = vld [vmem:[#allocation4 + $0x98] sm:$0xf] }
0x189a   :  { %v2546_v38 = vor.u32 %v2765_v31, %v2543_v33  ;;  %v2777_v31 = vld [vmem:[#allocation4 + $0xdc] sm:$0xf0]  ;;  %v2581_v33 = vld [vmem:[#allocation4 + $0xa8] sm:$0xf] }
0x189b   :  { %1382 = vrot.lane.b32.xlu2 %v1378_v22, %s3040_s5  ;;  %v2582_v45 = vor.u32 %v2778_v34, %v2581_v33  ;;  %v2621_v34 = vld [vmem:[#allocation4 + $0x100] sm:$0xf] }
0x189c   :  { %1716 = vmatpush.bf16.msra.mxu0 %v2546_v38  ;;  %v2574_v38 = vor.u32 %v2777_v31, %v2573_v30  ;;  %v2623_v30 = vld [vmem:[#allocation4 + $0x140] sm:$0xf0]  ;;  %v2629_v31 = vld [vmem:[#allocation4 + $0x108] sm:$0xf] }
0x18a0   :  { %1717 = vmatpush.bf16.msra.mxu0 %v2482_v55  ;;  %v2754_v55 = vld [vmem:[#allocation4 + $0x2c] sm:$0xf] }
0x18a1   :  { %v2522_v37 = vor.u32 %v2754_v55, %v2519_v58  ;;  %v2800_v55 = vld [vmem:[#allocation4 + $0x19c] sm:$0xf] }
0x18f5   :  { %v1383_v24 = vpop.permute.xlu2 %1382 }
0x18f6   :  { %v1385_v25 = vsel %vm128_vm5, %v1383_v24, 0.0  ;;  %v2562_v24 = vor.u32 %v2767_v19, %v2559_v20  ;;  %v2527_v19 = vld [vmem:[#allocation4 + $0x70] sm:$0xf0]  ;;  %v2764_v20 = vld [vmem:[#allocation4 + $0x74] sm:$0xf0] }
0x18f7   :  { %1386 = vadd.xlane.f32.xlu0 %v1385_v25  ;;  %v2534_v7 = vor.u32 %v2764_v20, %v2533_v9  ;;  %v2801_v9 = vld [vmem:[#allocation4 + $0x1a4] sm:$0xf] }
0x18f8   :  { %1768 = vmatpush.bf16.msrb.mxu0 %v2562_v24  ;;  %v2719_v20 = vld [vmem:[#allocation4 + $0x1e0] sm:$0xf0] }
0x196a   :  { %v1387_v49 = vpop.xlane.xlu0 %1386 }
0x196b   :  { %v1395_v27 = vmul.f32 %v3359_v11, %v1387_v49  ;;  %v2495_v49 = vld [vmem:[#allocation4 + $0x50] sm:$0xf0] }
0x196d   :  { %v1396_v46 = vsub.f32 %v1378_v22, %v1395_v27  ;;  %v2776_v22 = vld [vmem:[#allocation4 + $0xd4] sm:$0xf0]  ;;  %v2494_v27 = vor.u32 %v2759_v16, %v2493_v23  ;;  %v2797_v23 = vld [vmem:[#allocation4 + $0x184] sm:$0xf]  ;;  %v2693_v16 = vld [vmem:[#allocation4 + $0x188] sm:$0xf] }
0x196e   :  { %v2566_v25 = vor.u32 %v2776_v22, %v2565_v60  ;;  %v2756_v60 = vld [vmem:[#allocation4 + $0x3c] sm:$0xf] }
0x196f   :  { %v1397_v15 = vmul.f32 %v1396_v46, %v1396_v46  ;;  %1756 = vmatpush.bf16.msrb.mxu3 %v2494_v27  ;;  %v2535_v22 = vld [vmem:[#allocation4 + $0x78] sm:$0xf0]  ;;  %v2805_v27 = vld [vmem:[#allocation4 + $0x1bc] sm:$0xf0] }
0x1970   :  { %1781 = vmatpush.bf16.msra.mxu1 %v2566_v25  ;;  %v2530_v25 = vor.u32 %v2755_v18, %v2527_v19  ;;  %v2538_v42 = vor.u32 %v2756_v60, %v2535_v22  ;;  %v2725_v22 = vld [vmem:[#allocation4 + $0x1a8] sm:$0xf] }
0x1971   :  { %1399 = vrot.lane.b32.xlu2 %v1397_v15, %s3040_s5  ;;  %v2501_v15 = vld [vmem:[#allocation4 + $0x18] sm:$0xf] }
0x1979   :  { %1420 = vrot.lane.b32.xlu2 %v2830_v28, %s3043_s19  ;;  %v2760_v28 = vld [vmem:[#allocation4 + $0x54] sm:$0xf0] }
0x1981   :  { %1426 = vrot.lane.b32.xlu2 %v2831_v50, %s3043_s19  ;;  %v2752_v50 = vld [vmem:[#allocation4 + $0x1c] sm:$0xf] }
0x19cb   :  { %v1400_v13 = vpop.permute.xlu2 %1399 }
0x19cc   :  { %v1402_v14 = vsel %vm128_vm5, %v1400_v13, 0.0  ;;  %v2502_v13 = vor.u32 %v2760_v28, %v2501_v15  ;;  %v2695_v15 = vld [vmem:[#allocation4 + $0x1c8] sm:$0xf0]  ;;  %v2690_v28 = vor.u32 %v2797_v23, %v2687_v26  ;;  %v2722_v26 = vor.u32 %v2801_v9, %v2719_v20 }
0x19cd   :  { %1403 = vadd.xlane.f32.xlu1 %v1402_v14  ;;  %v2503_v14 = vld [vmem:[#allocation4 + $0x58] sm:$0xf0] }
0x19ce   :  { %v2506_v29 = vor.u32 %v2752_v50, %v2503_v14  ;;  %1782 = vmatpush.bf16.msra.mxu1 %v2502_v13 }
0x19d0   :  { %1795 = vmatpush.bf16.msra.mxu2 %v2506_v29  ;;  %v2781_v29 = vld [vmem:[#allocation4 + $0x104] sm:$0xf] }
0x19d3   :  { %v1421_v63 = vpop.permute.xlu2 %1420 }
0x19db   :  { %v1427_v4 = vpop.permute.xlu2 %1426 }
0x1a40   :  { %v1404_v61 = vpop.xlane.xlu1 %1403 }
0x1a41   :  { %v1405_v36 = vmul.f32 %v1404_v61, %v3359_v11  ;;  %v2769_v61 = vld [vmem:[#allocation4 + $0xa4] sm:$0xf] }
0x1a42   :  { %v2578_v39 = vor.u32 %v2769_v61, %v2575_v32  ;;  %v2626_v61 = vor.u32 %v2781_v29, %v2623_v30  ;;  %v2790_v32 = vld [vmem:[#allocation4 + $0x144] sm:$0xf0]  ;;  %v2802_v29 = vld [vmem:[#allocation4 + $0x1ac] sm:$0xf] }
0x1a43   :  { %v1406_v53 = vadd.f32 1e-05, %v1405_v36  ;;  %v2583_v36 = vld [vmem:[#allocation4 + $0xe8] sm:$0xf0]  ;;  %v2630_v33 = vor.u32 %v2790_v32, %v2629_v31  ;;  %v2785_v32 = vld [vmem:[#allocation4 + $0x124] sm:$0xf] }
0x1a44   :  { %v2586_v48 = vor.u32 %v2770_v35, %v2583_v36  ;;  %v2789_v35 = vld [vmem:[#allocation4 + $0x13c] sm:$0xf0]  ;;  %v2782_v36 = vld [vmem:[#allocation4 + $0x10c] sm:$0xf] }
0x1a45   :  { %2975 = vrsqrt.f32 %v1406_v53  ;;  %vm1413_vm12 = vweird.f32 %v1406_v53  ;;  %v2727_v30 = vld [vmem:[#allocation4 + $0x1e8] sm:$0xf0] }
0x1a4b   :  { %v2976_v56 = vpop.eup %2975 }
0x1a4c   :  { %v1408_v47 = vmul.f32 %v2976_v56, %v1406_v53  ;;  %vm1414_vm11 = vweird.f32 %v2976_v56  ;;  %v2517_v53 = vld [vmem:[#allocation4 + $0x28] sm:$0xf] }
0x1a4d   :  { %vm1415_vm13 = vmor %vm1413_vm12, %vm1414_vm11  ;;  %v2518_v62 = vor.u32 %v2762_v54, %v2517_v53  ;;  %v2701_v53 = vld [vmem:[#allocation4 + $0x190] sm:$0xf] }
0x1a4e   :  { %v1409_v3 = vmul.f32 %v2976_v56, %v1408_v47  ;;  %v2771_v47 = vld [vmem:[#allocation4 + $0xb4] sm:$0xf]  ;;  %v2807_v54 = vld [vmem:[#allocation4 + $0x1cc] sm:$0xf0] }
0x1a4f   :  { %v2702_v58 = vor.u32 %v2807_v54, %v2701_v53  ;;  %v2653_v54 = vld [vmem:[#allocation4 + $0x120] sm:$0xf] }
0x1a50   :  { %v1410_v5 = vmul.f32 0.5, %v1409_v3  ;;  %v2591_v3 = vld [vmem:[#allocation4 + $0xf0] sm:$0xf0] }
0x1a52   :  { %v1411_v1 = vsub.f32 1.5, %v1410_v5  ;;  %v2780_v5 = vld [vmem:[#allocation4 + $0xf4] sm:$0xf0] }
0x1a54   :  { %v1412_v8 = vmul.f32 %v2976_v56, %v1411_v1  ;;  %v2772_v1 = vld [vmem:[#allocation4 + $0xbc] sm:$0xf] }
0x1a56   :  { %v1416_v2 = vsel %vm1415_vm13, %v2976_v56, %v1412_v8  ;;  %v2779_v56 = vld [vmem:[#allocation4 + $0xec] sm:$0xf0]  ;;  %v2599_v8 = vld [vmem:[#allocation4 + $0xf8] sm:$0xf0] }
0x1a57   :  { %v1417_v10 = vmul.f32 %v1416_v2, %v1396_v46  ;;  %v2498_v46 = vor.u32 %v2751_v21, %v2495_v49  ;;  %v2590_v2 = vor.u32 %v2779_v56, %v2589_v0  ;;  %v2602_v17 = vor.u32 %v2772_v1, %v2599_v8  ;;  %v2806_v21 = vld [vmem:[#allocation4 + $0x1c4] sm:$0xf0]  ;;  %v2685_v49 = vld [vmem:[#allocation4 + $0x180] sm:$0xf]  ;;  %v2645_v0 = vld [vmem:[#allocation4 + $0x118] sm:$0xf] }
0x1a58   :  { %v2694_v50 = vor.u32 %v2806_v21, %v2693_v16  ;;  %v2686_v13 = vor.u32 %v2805_v27, %v2685_v49  ;;  %v2784_v1 = vld [vmem:[#allocation4 + $0x11c] sm:$0xf] }
0x1a59   :  { %v1423_v12 = vmul.f32 %v1421_v63, %v1417_v10  ;;  %1769 = vmatpush.bf16.msrb.mxu0 %v2498_v46  ;;  %v2597_v63 = vld [vmem:[#allocation4 + $0xb8] sm:$0xf]  ;;  %v2594_v10 = vor.u32 %v2771_v47, %v2591_v3  ;;  %v2798_v46 = vld [vmem:[#allocation4 + $0x18c] sm:$0xf] }
0x1a5a   :  { %v2698_v14 = vor.u32 %v2798_v46, %v2695_v15  ;;  %v2792_v47 = vld [vmem:[#allocation4 + $0x154] sm:$0xf0] }
0x1a5b   :  { %v3367_v57 = vadd.f32 %v1427_v4, %v1423_v12  ;;  %v2525_v4 = vld [vmem:[#allocation4 + $0x30] sm:$0xf]  ;;  %v2646_v3 = vor.u32 %v2792_v47, %v2645_v0  ;;  %v2803_v0 = vld [vmem:[#allocation4 + $0x1b4] sm:$0xf] }
0x1a5c   :  { %v2763_v12 = vld [vmem:[#allocation4 + $0x6c] sm:$0xf0] }
0x1a5d   :  { %v1494_v6 = vpack.c.bf16 %v3367_v57, %v3367_v57  ;;  %v2526_v24 = vor.u32 %v2763_v12, %v2525_v4  ;;  %v3409_v4 = vld [vmem:[%s3451_s3] sm:$0xff] }
0x1a5e   :  { %v1500_v12 = vperm.slane %v3409_v4, 1  ;;  %v1502_v23 = vperm.slane %v3409_v4, 3 }
0x1a5f   :  { %1532 = vrot.lane.b32.xlu2 %v1494_v6, %s3040_s5  ;;  %v2598_v6 = vor.u32 %v2780_v5, %v2597_v63  ;;  %v2637_v63 = vld [vmem:[#allocation4 + $0x110] sm:$0xf] }
0x1a60   :  { %v2791_v5 = vld [vmem:[#allocation4 + $0x14c] sm:$0xf0] }
0x1a61   :  { %v2638_v8 = vor.u32 %v2791_v5, %v2637_v63  ;;  %v2741_v63 = vld [vmem:[#allocation4 + $0x1b8] sm:$0xf] }
0x1a62   :  { %v2812_v5 = vld [vmem:[#allocation4 + $0x1f4] sm:$0xf0] }
0x1ab9   :  { %v3372_v44 = vpop.permute.xlu2 %1532 }
0x1aba   :  { %2603 = vmatmul.msk.bf16.vlgmr.msra.gmra.mxu3 %vm128_vm5, %v3372_v44  ;;  %2604 = vmatmul.msk.bf16.vlgmr.msra.gmra.mxu0 %vm128_vm5, %v3372_v44 }
0x1abb   :  { %2605 = vmatmul.msk.bf16.vlgmr.msrb.gmra.mxu1 %vm128_vm5, %v3372_v44  ;;  %2606 = vmatmul.msk.bf16.vlgmr.msrb.gmra.mxu2 %vm128_vm5, %v3372_v44 }
0x1abc   :  { %1807 = vmatpush.bf16.msra.mxu3 %v2574_v38  ;;  %1820 = vmatpush.bf16.msra.mxu0 %v2578_v39  ;;  %v2622_v38 = vor.u32 %v2789_v35, %v2621_v34  ;;  %v2631_v39 = vld [vmem:[#allocation4 + $0x148] sm:$0xf0] }
0x1abd   :  { %1833 = vmatpush.bf16.msrb.mxu1 %v2582_v45  ;;  %1846 = vmatpush.bf16.msrb.mxu2 %v2586_v48  ;;  %v2634_v40 = vor.u32 %v2782_v36, %v2631_v39  ;;  %v2703_v45 = vld [vmem:[#allocation4 + $0x1d0] sm:$0xf0]  ;;  %v2661_v36 = vld [vmem:[#allocation4 + $0x128] sm:$0xf] }
0x1abe   :  { %v2706_v48 = vor.u32 %v2799_v43, %v2703_v45 }
0x1ac0   :  { %1808 = vmatpush.bf16.msra.mxu3 %v2510_v41  ;;  %1821 = vmatpush.bf16.msra.mxu0 %v2514_v59  ;;  %v2711_v41 = vld [vmem:[#allocation4 + $0x1d8] sm:$0xf0] }
0x1ac1   :  { %1834 = vmatpush.bf16.msrb.mxu1 %v2518_v62  ;;  %1847 = vmatpush.bf16.msrb.mxu2 %v2522_v37  ;;  %v2714_v59 = vor.u32 %v2800_v55, %v2711_v41  ;;  %v2783_v62 = vld [vmem:[#allocation4 + $0x114] sm:$0xf]  ;;  %v2793_v55 = vld [vmem:[#allocation4 + $0x15c] sm:$0xf0]  ;;  %v2786_v41 = vld [vmem:[#allocation4 + $0x12c] sm:$0xf] }
0x1ac2   :  { %v2639_v37 = vld [vmem:[#allocation4 + $0x150] sm:$0xf0] }
0x1ac3   :  { %v2642_v56 = vor.u32 %v2783_v62, %v2639_v37 }
0x1aca   :  { %2607 = vmatmul.msk.bf16.vlgmr.msrb.gmra.mxu3 %vm128_vm5, %v3372_v44  ;;  %2608 = vmatmul.msk.bf16.vlgmr.msrb.gmra.mxu0 %vm128_vm5, %v3372_v44 }
0x1acb   :  { %2609 = vmatmul.msk.bf16.vlgmr.msra.gmra.mxu1 %vm128_vm5, %v3372_v44  ;;  %2610 = vmatmul.msk.bf16.vlgmr.msra.gmra.mxu2 %vm128_vm5, %v3372_v44 }
0x1acc   :  { %1859 = vmatpush.bf16.msrb.mxu3 %v2590_v2  ;;  %1872 = vmatpush.bf16.msrb.mxu0 %v2594_v10  ;;  %v2647_v2 = vld [vmem:[#allocation4 + $0x158] sm:$0xf0] }
0x1acd   :  { %1885 = vmatpush.bf16.msra.mxu1 %v2598_v6  ;;  %1898 = vmatpush.bf16.msra.mxu2 %v2602_v17  ;;  %v2650_v10 = vor.u32 %v2784_v1, %v2647_v2  ;;  %v1501_v6 = vperm.slane %v3409_v4, 2 }
0x1ad0   :  { %1860 = vmatpush.bf16.msrb.mxu3 %v2526_v24  ;;  %1873 = vmatpush.bf16.msrb.mxu0 %v2530_v25  ;;  %v2810_v24 = vld [vmem:[#allocation4 + $0x1e4] sm:$0xf0] }
0x1ad1   :  { %1886 = vmatpush.bf16.msra.mxu1 %v2534_v7  ;;  %1899 = vmatpush.bf16.msra.mxu2 %v2538_v42  ;;  %v1499_v7 = vperm.slane %v3409_v4, 0  ;;  %v2726_v21 = vor.u32 %v2810_v24, %v2725_v22  ;;  %v2733_v22 = vld [vmem:[#allocation4 + $0x1b0] sm:$0xf] }
0x1ad2   :  { %v2811_v24 = vld [vmem:[#allocation4 + $0x1ec] sm:$0xf0] }
0x1ada   :  { %2611 = vmatmul.msk.bf16.vlgmr.msra.gmra.mxu3 %vm128_vm5, %v3372_v44  ;;  %2612 = vmatmul.msk.bf16.vlgmr.msra.gmra.mxu0 %vm128_vm5, %v3372_v44 }
0x1adb   :  { %2613 = vmatmul.msk.bf16.vlgmr.msrb.gmra.mxu1 %vm128_vm5, %v3372_v44  ;;  %2614 = vmatmul.msk.bf16.vlgmr.msrb.gmra.mxu2 %vm128_vm5, %v3372_v44 }
0x1adc   :  { %2118 = vmatpush.bf16.xpose.msra.mxu0 %v2690_v28  ;;  %2131 = vmatpush.bf16.xpose.msrb.mxu1 %v2694_v50  ;;  %v2717_v28 = vld [vmem:[#allocation4 + $0x1a0] sm:$0xf] }
0x1add   :  { %2105 = vmatpush.bf16.xpose.msra.mxu3 %v2686_v13  ;;  %2144 = vmatpush.bf16.xpose.msrb.mxu2 %v2698_v14  ;;  %v2809_v50 = vld [vmem:[#allocation4 + $0x1dc] sm:$0xf0] }
0x1ade   :  { %v2718_v35 = vor.u32 %v2809_v50, %v2717_v28  ;;  %v2796_v28 = vld [vmem:[#allocation4 + $0x174] sm:$0xf0] }
0x1ae4   :  { %2119 = vmatpush.bf16.xpose.msra.mxu0 %v2626_v61  ;;  %2132 = vmatpush.bf16.xpose.msrb.mxu1 %v2630_v33  ;;  %v2655_v33 = vld [vmem:[#allocation4 + $0x160] sm:$0xf0] }
0x1ae5   :  { %2106 = vmatpush.bf16.xpose.msra.mxu3 %v2622_v38  ;;  %2145 = vmatpush.bf16.xpose.msrb.mxu2 %v2634_v40  ;;  %v2794_v38 = vld [vmem:[#allocation4 + $0x164] sm:$0xf0]  ;;  %v2730_v40 = vor.u32 %v2802_v29, %v2727_v30  ;;  %v2658_v45 = vor.u32 %v2785_v32, %v2655_v33 }
0x1aea   :  { %2615 = vmatmul.msk.bf16.vlgmr.msrb.gmra.mxu3 %vm128_vm5, %v3372_v44  ;;  %2616 = vmatmul.msk.bf16.vlgmr.msrb.gmra.mxu0 %vm128_vm5, %v3372_v44 }
0x1aeb   :  { %2617 = vmatmul.msk.bf16.vlgmr.msra.gmra.mxu1 %vm128_vm5, %v3372_v44  ;;  %2618 = vmatmul.msk.bf16.vlgmr.msra.gmra.mxu2 %vm128_vm5, %v3372_v44  ;;  %v2808_v44 = vld [vmem:[#allocation4 + $0x1d4] sm:$0xf0] }
0x1aec   :  { %v2710_v52 = vor.u32 %v2808_v44, %v2709_v51  ;;  %2170 = vmatpush.bf16.xpose.msrb.mxu0 %v2706_v48  ;;  %v1504_v48 = vperm.slane %v3409_v4, 5  ;;  %v2662_v51 = vor.u32 %v2794_v38, %v2661_v36  ;;  %v2788_v38 = vld [vmem:[#allocation4 + $0x13c] sm:$0xf] }
0x1aed   :  { %2157 = vmatpush.bf16.xpose.msrb.mxu3 %v2702_v58  ;;  %2196 = vmatpush.bf16.xpose.msra.mxu2 %v2714_v59  ;;  %v2663_v59 = vld [vmem:[#allocation4 + $0x168] sm:$0xf0] }
0x1aee   :  { %2183 = vmatpush.bf16.xpose.msra.mxu1 %v2710_v52  ;;  %v1505_v52 = vperm.slane %v3409_v4, 6  ;;  %v2666_v2 = vor.u32 %v2786_v41, %v2663_v59 }
0x1af4   :  { %2171 = vmatpush.bf16.xpose.msrb.mxu0 %v2642_v56  ;;  %v2735_v56 = vld [vmem:[#allocation4 + $0x1f0] sm:$0xf0] }
0x1af5   :  { %2158 = vmatpush.bf16.xpose.msrb.mxu3 %v2638_v8  ;;  %2197 = vmatpush.bf16.xpose.msra.mxu2 %v2650_v10  ;;  %v1503_v8 = vperm.slane %v3409_v4, 4 }
0x1af6   :  { %2184 = vmatpush.bf16.xpose.msra.mxu1 %v2646_v3  ;;  %v2654_v3 = vor.u32 %v2793_v55, %v2653_v54 }
0x1b37   :  { %v1719_v17 = vpop.f32.mrf.mxu0 }
0x1b38   :  { %v1720_v18 = vadd.f32 %v1719_v17, %v1500_v12  ;;  %v1732_v19 = vpop.f32.mrf.mxu1  ;;  %v1506_v12 = vperm.slane %v3409_v4, 7 }
0x1b39   :  { %v1733_v60 = vadd.f32 %v1732_v19, %v1501_v6  ;;  %v2738_v6 = vor.u32 %v2803_v0, %v2735_v56 }
0x1b3a   :  { %v1906_v25 = vmax.f32 %v1720_v18, 0.0  ;;  %v2742_v18 = vor.u32 %v2812_v5, %v2741_v63 }
0x1b3b   :  { %v1907_v42 = vmax.f32 %v1733_v60, 0.0 }
0x1b3c   :  { %v1922_v16 = vpack.c.bf16 %v1906_v25, %v1906_v25 }
0x1b3d   :  { %v1923_v49 = vpack.c.bf16 %v1907_v42, %v1907_v42  ;;  %v1706_v27 = vpop.f32.mrf.mxu3  ;;  %v2804_v42 = vld [vmem:[#allocation4 + $0x1bc] sm:$0xf] }
0x1b3e   :  { %v1707_v46 = vadd.f32 %v1706_v27, %v1499_v7  ;;  %v1745_v15 = vpop.f32.mrf.mxu2  ;;  %2120 = vmatmul.bf16.vlgmr.msra.gmra.mxu0 %v1922_v16  ;;  %v2787_v16 = vld [vmem:[#allocation4 + $0x134] sm:$0xf]  ;;  %v3422_v27 = vld [vmem:[%s3451_s3 + $0x8] sm:$0xff] }
0x1b3f   :  { %v1746_v13 = vadd.f32 %v1745_v15, %v1502_v23  ;;  %2133 = vmatmul.bf16.vlgmr.msrb.gmra.mxu1 %v1923_v49  ;;  %v1721_v14 = vpop.f32.mrf.mxu0  ;;  %2222 = vmatpush.bf16.xpose.msra.mxu0 %v2722_v26  ;;  %v2743_v23 = vld [vmem:[#allocation4 + $0x1f8] sm:$0xf0]  ;;  %v2677_v15 = vld [vmem:[#allocation4 + $0x138] sm:$0xf]  ;;  %v1508_v30 = vperm.slane %v3422_v27, 1  ;;  %v1509_v32 = vperm.slane %v3422_v27, 2 }
0x1b40   :  { %v1905_v31 = vmax.f32 %v1707_v46, 0.0  ;;  %v1734_v61 = vpop.f32.mrf.mxu1  ;;  %2235 = vmatpush.bf16.xpose.msrb.mxu1 %v2726_v21  ;;  %v2671_v21 = vld [vmem:[#allocation4 + $0x170] sm:$0xf0]  ;;  %v2734_v46 = vor.u32 %v2811_v24, %v2733_v22  ;;  %v1510_v54 = vperm.slane %v3422_v27, 3 }
0x1b41   :  { %v1908_v34 = vmax.f32 %v1746_v13, 0.0  ;;  %v2746_v13 = vor.u32 %v2804_v42, %v2743_v23  ;;  %v2674_v29 = vor.u32 %v2787_v16, %v2671_v21 }
0x1b42   :  { %v1921_v39 = vpack.c.bf16 %v1905_v31, %v1905_v31  ;;  %v2678_v31 = vor.u32 %v2796_v28, %v2677_v15 }
0x1b43   :  { %v1924_v43 = vpack.c.bf16 %v1908_v34, %v1908_v34  ;;  %v2669_v34 = vld [vmem:[#allocation4 + $0x130] sm:$0xf] }
0x1b44   :  { %2107 = vmatmul.bf16.vlgmr.msra.gmra.mxu3 %v1921_v39  ;;  %v2679_v39 = vld [vmem:[#allocation4 + $0x178] sm:$0xf0] }
0x1b45   :  { %2146 = vmatmul.bf16.vlgmr.msrb.gmra.mxu2 %v1924_v43  ;;  %v1708_v44 = vpop.f32.mrf.mxu3  ;;  %2209 = vmatpush.bf16.xpose.msra.mxu3 %v2718_v35  ;;  %v2795_v35 = vld [vmem:[#allocation4 + $0x16c] sm:$0xf0] }
0x1b46   :  { %v1747_v53 = vpop.f32.mrf.mxu2  ;;  %2248 = vmatpush.bf16.xpose.msrb.mxu2 %v2730_v40  ;;  %v1507_v44 = vperm.slane %v3422_v27, 0 }
0x1b47   :  { %v1771_v58 = vpop.f32.mrf.mxu0  ;;  %2223 = vmatpush.bf16.xpose.msra.mxu0 %v2658_v45 }
0x1b48   :  { %v1772_v62 = vadd.f32 %v1771_v58, %v1504_v48  ;;  %v1784_v37 = vpop.f32.mrf.mxu1  ;;  %2236 = vmatpush.bf16.xpose.msrb.mxu1 %v2662_v51  ;;  %v2670_v48 = vor.u32 %v2795_v35, %v2669_v34 }
0x1b49   :  { %v1785_v47 = vadd.f32 %v1784_v37, %v1505_v52  ;;  %v2682_v52 = vor.u32 %v2788_v38, %v2679_v39 }
0x1b4a   :  { %v1910_v1 = vmax.f32 %v1772_v62, 0.0 }
0x1b4b   :  { %v1911_v10 = vmax.f32 %v1785_v47, 0.0 }
0x1b4c   :  { %v1926_v17 = vpack.c.bf16 %v1910_v1, %v1910_v1  ;;  %v1512_v1 = vperm.slane %v3422_v27, 5 }
0x1b4d   :  { %v1927_v19 = vpack.c.bf16 %v1911_v10, %v1911_v10  ;;  %v1758_v9 = vpop.f32.mrf.mxu3  ;;  %2210 = vmatpush.bf16.xpose.msra.mxu3 %v2654_v3 }
0x1b4e   :  { %v1759_v20 = vadd.f32 %v1758_v9, %v1503_v8  ;;  %v1797_v60 = vpop.f32.mrf.mxu2  ;;  %2172 = vmatmul.bf16.vlgmr.msrb.gmra.mxu0 %v1926_v17  ;;  %2249 = vmatpush.bf16.xpose.msrb.mxu2 %v2666_v2  ;;  %v1513_v2 = vperm.slane %v3422_v27, 6  ;;  %v1511_v9 = vperm.slane %v3422_v27, 4 }
0x1b4f   :  { %v1798_v25 = vadd.f32 %v1797_v60, %v1506_v12  ;;  %2185 = vmatmul.bf16.vlgmr.msra.gmra.mxu1 %v1927_v19  ;;  %v1773_v7 = vpop.f32.mrf.mxu0  ;;  %2274 = vmatpush.bf16.xpose.msrb.mxu0 %v2738_v6  ;;  %v1514_v60 = vperm.slane %v3422_v27, 7 }
0x1b50   :  { %v1909_v26 = vmax.f32 %v1759_v20, 0.0  ;;  %v1786_v4 = vpop.f32.mrf.mxu1  ;;  %2287 = vmatpush.bf16.xpose.msra.mxu1 %v2742_v18 }
0x1b51   :  { %v1912_v49 = vmax.f32 %v1798_v25, 0.0 }
0x1b52   :  { %v1925_v50 = vpack.c.bf16 %v1909_v26, %v1909_v26 }
0x1b53   :  { %v1928_v14 = vpack.c.bf16 %v1912_v49, %v1912_v49 }
0x1b54   :  { %2159 = vmatmul.bf16.vlgmr.msrb.gmra.mxu3 %v1925_v50 }
0x1b55   :  { %2198 = vmatmul.bf16.vlgmr.msra.gmra.mxu2 %v1928_v14  ;;  %v1760_v61 = vpop.f32.mrf.mxu3  ;;  %2261 = vmatpush.bf16.xpose.msrb.mxu3 %v2734_v46 }
0x1b56   :  { %v1799_v33 = vpop.f32.mrf.mxu2  ;;  %2300 = vmatpush.bf16.xpose.msra.mxu2 %v2746_v13 }
0x1b57   :  { %v1823_v36 = vpop.f32.mrf.mxu0  ;;  %2275 = vmatpush.bf16.xpose.msrb.mxu0 %v2674_v29 }
0x1b58   :  { %v1824_v40 = vadd.f32 %v1823_v36, %v1508_v30  ;;  %v1836_v43 = vpop.f32.mrf.mxu1  ;;  %2288 = vmatpush.bf16.xpose.msra.mxu1 %v2678_v31  ;;  %v2832_v31 = vld [vmem:[#allocation2 + $0x140] ss:$0 sm:$0xff] }
0x1b59   :  { %v1837_v45 = vadd.f32 %v1836_v43, %v1509_v32 }
0x1b5a   :  { %v1914_v51 = vmax.f32 %v1824_v40, 0.0 }
0x1b5b   :  { %v1915_v53 = vmax.f32 %v1837_v45, 0.0 }
0x1b5c   :  { %v1930_v55 = vpack.c.bf16 %v1914_v51, %v1914_v51 }
0x1b5d   :  { %v1931_v58 = vpack.c.bf16 %v1915_v53, %v1915_v53  ;;  %v1810_v41 = vpop.f32.mrf.mxu3  ;;  %2262 = vmatpush.bf16.xpose.msrb.mxu3 %v2670_v48 }
0x1b5e   :  { %v1811_v59 = vadd.f32 %v1810_v41, %v1507_v44  ;;  %v1849_v62 = vpop.f32.mrf.mxu2  ;;  %2224 = vmatmul.bf16.vlgmr.msra.gmra.mxu0 %v1930_v55  ;;  %2301 = vmatpush.bf16.xpose.msra.mxu2 %v2682_v52 }
0x1b5f   :  { %v1850_v37 = vadd.f32 %v1849_v62, %v1510_v54  ;;  %2237 = vmatmul.bf16.vlgmr.msrb.gmra.mxu1 %v1931_v58  ;;  %v1825_v0 = vpop.f32.mrf.mxu0 }
0x1b60   :  { %v1913_v56 = vmax.f32 %v1811_v59, 0.0  ;;  %v1838_v47 = vpop.f32.mrf.mxu1 }
0x1b61   :  { %v1916_v3 = vmax.f32 %v1850_v37, 0.0 }
0x1b62   :  { %v1929_v63 = vpack.c.bf16 %v1913_v56, %v1913_v56 }
0x1b63   :  { %v1932_v5 = vpack.c.bf16 %v1916_v3, %v1916_v3 }
0x1b64   :  { %2211 = vmatmul.bf16.vlgmr.msra.gmra.mxu3 %v1929_v63 }
0x1b65   :  { %2250 = vmatmul.bf16.vlgmr.msrb.gmra.mxu2 %v1932_v5  ;;  %v1812_v8 = vpop.f32.mrf.mxu3 }
0x1b66   :  { %v1851_v10 = vpop.f32.mrf.mxu2 }
0x1b67   :  { %v1875_v12 = vpop.f32.mrf.mxu0 }
0x1b68   :  { %v1876_v6 = vadd.f32 %v1875_v12, %v1512_v1  ;;  %v1888_v17 = vpop.f32.mrf.mxu1 }
0x1b69   :  { %v1889_v18 = vadd.f32 %v1888_v17, %v1513_v2 }
0x1b6a   :  { %v1918_v19 = vmax.f32 %v1876_v6, 0.0 }
0x1b6b   :  { %v1919_v20 = vmax.f32 %v1889_v18, 0.0 }
0x1b6c   :  { %v1934_v22 = vpack.c.bf16 %v1918_v19, %v1918_v19 }
0x1b6d   :  { %v1935_v24 = vpack.c.bf16 %v1919_v20, %v1919_v20  ;;  %v1862_v25 = vpop.f32.mrf.mxu3 }
0x1b6e   :  { %v1863_v7 = vadd.f32 %v1862_v25, %v1511_v9  ;;  %v1901_v42 = vpop.f32.mrf.mxu2  ;;  %2276 = vmatmul.bf16.vlgmr.msrb.gmra.mxu0 %v1934_v22 }
0x1b6f   :  { %v1902_v23 = vadd.f32 %v1901_v42, %v1514_v60  ;;  %2289 = vmatmul.bf16.vlgmr.msra.gmra.mxu1 %v1935_v24  ;;  %v1877_v26 = vpop.f32.mrf.mxu0 }
0x1b70   :  { %v1917_v4 = vmax.f32 %v1863_v7, 0.0  ;;  %v1890_v16 = vpop.f32.mrf.mxu1 }
0x1b71   :  { %v1920_v21 = vmax.f32 %v1902_v23, 0.0 }
0x1b72   :  { %v1933_v49 = vpack.c.bf16 %v1917_v4, %v1917_v4 }
0x1b73   :  { %v1936_v46 = vpack.c.bf16 %v1920_v21, %v1920_v21  ;;  %v2833_v21 = vld [vmem:[#allocation2 + $0xe0] ss:$0 sm:$0xff] }
0x1b74   :  { %2263 = vmatmul.bf16.vlgmr.msrb.gmra.mxu3 %v1933_v49  ;;  %v2834_v49 = vld [vmem:[#allocation2 + $0xe8] ss:$0 sm:$0xff] }
0x1b75   :  { %2302 = vmatmul.bf16.vlgmr.msra.gmra.mxu2 %v1936_v46  ;;  %v1864_v15 = vpop.f32.mrf.mxu3 }
0x1b76   :  { %v1903_v28 = vpop.f32.mrf.mxu2  ;;  %v2359_v15 = vld [vmem:[#allocation2 + $0x108] sm:$0xff] }
0x1b77   :  { %v2358_v28 = vld [vmem:[#allocation2 + $0x100] sm:$0xff]  ;;  %2379 = vmatpush.msra.mxu3 %v2359_v15 }
0x1b79   :  { %2380 = vmatpush.msra.mxu3 %v2358_v28 }
0x1bbb   :  { %v2121_v50 = vpop.f32.mrf.mxu0 }
0x1bbc   :  { %v2134_v27 = vpop.f32.mrf.mxu1 }
0x1bc3   :  { %v2123_v13 = vpop.f32.mrf.mxu0 }
0x1bc4   :  { %v2136_v14 = vpop.f32.mrf.mxu1 }
0x1bc5   :  { %v2356_v14 = vld [vmem:[#allocation2 + $0xf0] sm:$0xff] }
0x1bc7   :  { %v2108_v29 = vpop.f32.mrf.mxu3 }
0x1bc8   :  { %v2147_v30 = vpop.f32.mrf.mxu2  ;;  %v2109_v33 = vadd.f32 %v2832_v31, %v2108_v29 }
0x1bca   :  { %v2122_v36 = vadd.f32 %v2121_v50, %v2109_v33  ;;  %v2357_v50 = vld [vmem:[#allocation2 + $0xf8] sm:$0xff] }
0x1bcb   :  { %v2173_v61 = vpop.f32.mrf.mxu0  ;;  %2381 = vmatpush.msra.mxu3 %v2357_v50 }
0x1bcc   :  { %v2186_v32 = vpop.f32.mrf.mxu1  ;;  %v2135_v40 = vadd.f32 %v2134_v27, %v2122_v36 }
0x1bcd   :  { %2382 = vmatpush.msra.mxu3 %v2356_v14 }
0x1bce   :  { %v2148_v48 = vadd.f32 %v2147_v30, %v2135_v40 }
0x1bcf   :  { %v2110_v34 = vpop.f32.mrf.mxu3 }
0x1bd0   :  { %v2149_v35 = vpop.f32.mrf.mxu2 }
0x1bd3   :  { %v2175_v38 = vpop.f32.mrf.mxu0 }
0x1bd4   :  { %v2188_v39 = vpop.f32.mrf.mxu1 }
0x1bd7   :  { %v2160_v43 = vpop.f32.mrf.mxu3 }
0x1bd8   :  { %v2199_v45 = vpop.f32.mrf.mxu2  ;;  %v2161_v44 = vadd.f32 %v2160_v43, %v2148_v48  ;;  %v2391_v43 = vld [vmem:[#allocation2 + $0x130] sm:$0xff]  ;;  %v2390_v48 = vld [vmem:[#allocation2 + $0x128] sm:$0xff] }
0x1bd9   :  { %2409 = vmatpush.msra.mxu0 %v2391_v43 }
0x1bda   :  { %v2174_v54 = vadd.f32 %v2173_v61, %v2161_v44  ;;  %v2388_v44 = vld [vmem:[#allocation2 + $0x118] sm:$0xff] }
0x1bdb   :  { %v2225_v51 = vpop.f32.mrf.mxu0  ;;  %2410 = vmatpush.msra.mxu0 %v2390_v48 }
0x1bdc   :  { %v2238_v52 = vpop.f32.mrf.mxu1  ;;  %v2187_v41 = vadd.f32 %v2186_v32, %v2174_v54 }
0x1bde   :  { %v2200_v37 = vadd.f32 %v2199_v45, %v2187_v41 }
0x1bdf   :  { %v2162_v53 = vpop.f32.mrf.mxu3 }
0x1be0   :  { %v2201_v55 = vpop.f32.mrf.mxu2 }
0x1be3   :  { %v2227_v58 = vpop.f32.mrf.mxu0 }
0x1be4   :  { %v2240_v59 = vpop.f32.mrf.mxu1  ;;  %v2836_v58 = vld [vmem:[#allocation2 + $0x138] ss:$0 sm:$0xff] }
0x1be7   :  { %v2212_v62 = vpop.f32.mrf.mxu3 }
0x1be8   :  { %v2251_v0 = vpop.f32.mrf.mxu2  ;;  %v2213_v56 = vadd.f32 %v2212_v62, %v2200_v37 }
0x1bea   :  { %v2226_v63 = vadd.f32 %v2225_v51, %v2213_v56  ;;  %v2389_v51 = vld [vmem:[#allocation2 + $0x120] sm:$0xff] }
0x1beb   :  { %v2277_v47 = vpop.f32.mrf.mxu0  ;;  %2411 = vmatpush.msra.mxu0 %v2389_v51 }
0x1bec   :  { %v2290_v3 = vpop.f32.mrf.mxu1  ;;  %v2239_v8 = vadd.f32 %v2238_v52, %v2226_v63  ;;  %v2835_v52 = vld [vmem:[#allocation2 + $0x110] ss:$0 sm:$0xff] }
0x1bed   :  { %2412 = vmatpush.msra.mxu0 %v2388_v44 }
0x1bee   :  { %v2252_v12 = vadd.f32 %v2251_v0, %v2239_v8 }
0x1bef   :  { %v2214_v5 = vpop.f32.mrf.mxu3 }
0x1bf0   :  { %v2253_v1 = vpop.f32.mrf.mxu2 }
0x1bf3   :  { %v2279_v2 = vpop.f32.mrf.mxu0 }
0x1bf4   :  { %v2292_v10 = vpop.f32.mrf.mxu1 }
0x1bf7   :  { %v2264_v6 = vpop.f32.mrf.mxu3 }
0x1bf8   :  { %v2265_v17 = vadd.f32 %v2264_v6, %v2252_v12  ;;  %v2303_v18 = vpop.f32.mrf.mxu2 }
0x1bfa   :  { %v2278_v19 = vadd.f32 %v2277_v47, %v2265_v17 }
0x1bfc   :  { %v2291_v9 = vadd.f32 %v2290_v3, %v2278_v19 }
0x1bfe   :  { %v2304_v20 = vadd.f32 %v2303_v18, %v2291_v9 }
0x1bff   :  { %v2266_v60 = vpop.f32.mrf.mxu3 }
0x1c00   :  { %v2305_v22 = vpop.f32.mrf.mxu2  ;;  %2308 = vrot.lane.b32.xlu2 %v2304_v20, %s3043_s19 }
0x1c5a   :  { %v2309_v24 = vpop.permute.xlu2 %2308 }
0x1c5b   :  { %v2311_v25 = vadd.f32 %v2309_v24, %v3367_v57 }
0x1c5d   :  { %2315 = vrot.lane.b32.xlu0 %v2311_v25, %s3040_s5 }
0x1ccf   :  { %v2316_v7 = vpop.permute.xlu0 %2315 }
0x1cd0   :  { %v2318_v42 = vsel %vm128_vm5, %v2316_v7, 0.0 }
0x1cd1   :  { %2319 = vadd.xlane.f32.xlu2 %v2318_v42 }
0x1d44   :  { %v2320_v23 = vpop.xlane.xlu2 %2319 }
0x1d45   :  { %v2321_v26 = vmul.f32 %v2320_v23, %v3359_v11 }
0x1d47   :  { %v2322_v4 = vsub.f32 %v2311_v25, %v2321_v26 }
0x1d49   :  { %v2323_v16 = vmul.f32 %v2322_v4, %v2322_v4 }
0x1d4b   :  { %2325 = vrot.lane.b32.xlu1 %v2323_v16, %s3040_s5 }
0x1d53   :  { %2346 = vrot.lane.b32.xlu1 %v2833_v21, %s3043_s19 }
0x1d5b   :  { %2352 = vrot.lane.b32.xlu1 %v2834_v49, %s3043_s19 }
0x1dbd   :  { %v2326_v57 = vpop.permute.xlu1 %2325 }
0x1dbe   :  { %v2328_v46 = vsel %vm128_vm5, %v2326_v57, 0.0 }
0x1dbf   :  { %2329 = vadd.xlane.f32.xlu0 %v2328_v46 }
0x1dc5   :  { %v2347_v32 = vpop.permute.xlu1 %2346 }
0x1dcd   :  { %v2353_v39 = vpop.permute.xlu1 %2352 }
0x1e32   :  { %v2330_v27 = vpop.xlane.xlu0 %2329 }
0x1e33   :  { %v2331_v13 = vmul.f32 %v2330_v27, %v3359_v11 }
0x1e35   :  { %v2332_v29 = vadd.f32 1e-05, %v2331_v13 }
0x1e37   :  { %2977 = vrsqrt.f32 %v2332_v29  ;;  %vm2339_vm15 = vweird.f32 %v2332_v29 }
0x1e3d   :  { %v2978_v30 = vpop.eup %2977 }
0x1e3e   :  { %v2334_v31 = vmul.f32 %v2978_v30, %v2332_v29  ;;  %vm2340_vm14 = vweird.f32 %v2978_v30 }
0x1e3f   :  { %vm2341_vm1 = vmor %vm2339_vm15, %vm2340_vm14 }
0x1e40   :  { %v2335_v61 = vmul.f32 %v2978_v30, %v2334_v31 }
0x1e42   :  { %v2336_v33 = vmul.f32 0.5, %v2335_v61 }
0x1e44   :  { %v2337_v34 = vsub.f32 1.5, %v2336_v33 }
0x1e46   :  { %v2338_v35 = vmul.f32 %v2978_v30, %v2337_v34 }
0x1e48   :  { %v2342_v36 = vsel %vm2341_vm1, %v2978_v30, %v2338_v35 }
0x1e49   :  { %v2343_v38 = vmul.f32 %v2342_v36, %v2322_v4 }
0x1e4b   :  { %v2349_v40 = vmul.f32 %v2347_v32, %v2343_v38 }
0x1e4d   :  { %v2355_v11 = vadd.f32 %v2353_v39, %v2349_v40 }
0x1e4f   :  { %2363 = vrot.lane.b32.xlu2 %v2355_v11, %s3040_s5 }
0x1ea9   :  { %v2364_v45 = vpop.permute.xlu2 %2363 }
0x1eaa   :  { %2747 = vmatmul.msk.f32.vlgmr.msra.gmra.mxu3 %vm128_vm5, %v2364_v45 }
0x1f2d   :  { %v2384_v53 = vpop.f32.mrf.mxu3 }
0x1f2e   :  { %v2385_v54 = vadd.f32 %v2835_v52, %v2384_v53 }
0x1f30   :  { %v2387_v55 = vmax.f32 %v2385_v54, 0.0 }
0x1f32   :  { %2748 = vmatmul.msk.f32.vlgmr.msra.gmra.mxu0 %vm128_vm5, %v2387_v55 }
0x1faf   :  { %v2414_v41 = vpop.f32.mrf.mxu0 }
0x1fb0   :  { %v2415_v59 = vadd.f32 %v2836_v58, %v2414_v41 }
0x1fb2   :  { %2417 = vst [vmem:[%s3452_s4] sm:$0xff] %v2415_v59 }
0x1fb3   :  { %2422 = vsyncpa [#allocation3], 1 }
0x1fb4   :  { %2423 = vsyncpa [#allocation5], 1 }

</bundles_post_ra>
